<compile_context>
chip_gen: v7x
topology: tpu7x:2x2x1
jax: 0.10.0
libtpu: 0.0.40
codegen_flags: <defaults>
</compile_context>

<pallas_src>
import functools
from math import exp

import numpy as np
import jax
import jax.numpy as jnp
from jax import lax
from jax.experimental import pallas as pl
from jax.experimental.pallas import tpu as pltpu

_F32 = jnp.float32
_WEIGHTS = np.array([0.0448, 0.2856, 0.3001, 0.2363, 0.1333], dtype=np.float32)
_ENTROPY_EPS = 1e-12


# --------------------------------------------------------------------------
# Host-side construction of the tiny band / pooling matrices
# --------------------------------------------------------------------------
def _gaussian_1d(win, sigma=1.5):
    g = np.array(
        [exp(-(x - win // 2) ** 2 / float(2 * sigma ** 2)) for x in range(win)],
        dtype=np.float64)
    return (g / g.sum()).astype(np.float32)


def _band_matrix(n_out, n_in, taps):
    # M[o, i] = taps[i - o]  (valid conv as a matmul)
    m = np.zeros((n_out, n_in), np.float32)
    k = len(taps)
    for o in range(n_out):
        m[o, o:o + k] = taps
    return m


def _pool_matrix(n):
    # (n//2, n) matrix averaging adjacent pairs (== avg_pool2d kernel 2, one axis)
    m = np.zeros((n // 2, n), np.float32)
    for i in range(n // 2):
        m[i, 2 * i] = 0.5
        m[i, 2 * i + 1] = 0.5
    return m


def _lane_dense(x):
    """Flatten, zero-pad to a multiple of 1024 (8 sublanes x 128 lanes) and
    reshape to (m, 128) so the in-kernel reductions use full vregs."""
    flat = jnp.asarray(x, _F32).reshape(-1)
    n = int(flat.shape[0])
    pad = (-n) % 1024
    if pad:
        flat = jnp.concatenate([flat, jnp.zeros((pad,), _F32)])
    return flat.reshape(-1, 128)


def _per_level_dynamic_range(img1, levels):
    """Per-level dynamic range L (torch val_range=None), computed on the whole
    (avg-pooled) first image exactly like the reference; returned as int32."""
    Ls = []
    x = jnp.asarray(img1, _F32)
    for l in range(levels):
        mx = jnp.max(x)
        mn = jnp.min(x)
        max_val = jnp.where(mx > 128.0, 255, 1)
        min_val = jnp.where(mn < -0.5, -1, 0)
        Ls.append((max_val - min_val).astype(jnp.int32))
        if l + 1 < levels:
            B, C, h, w = x.shape
            x = x[:, :, :2 * (h // 2), :2 * (w // 2)]
            x = x.reshape(B, C, h // 2, 2, w // 2, 2).mean(axis=(3, 5))
    return jnp.stack(Ls)


# --------------------------------------------------------------------------
# Fused kernel: 5-level MS-SSIM pyramid + sum((img1-img2)^2) + memory stats
# One grid step == one (H, W) image plane of the folded B*C axis.
# --------------------------------------------------------------------------
def _combined_kernel(L_ref, x1_ref, x2_ref, *rest, levels, eps, conv_dtype):
    n = levels
    gr = rest[0:n]                       # row band matrices   (ho_l, h_l)
    gc = rest[n:2 * n]                   # col band matrices   (w_l, wo_l)
    pr = rest[2 * n:3 * n - 1]           # row pool matrices   (h_l//2, h_l)
    pc = rest[3 * n - 1:4 * n - 2]       # col pool matrices   (w_l, w_l//2)
    ta_ref, sa_ref, tr_ref, sr_ref = rest[4 * n - 2:4 * n + 2]
    o_ref = rest[4 * n + 2]              # (8, 128) stats tile for this step

    a = x1_ref[...]                      # img1 plane (reconstruction)
    b = x2_ref[...]                      # img2 plane (input)

    stats = []                           # (column, scalar value)

    # full-resolution squared-difference sum (Intensity / L2 losses)
    d = a - b
    stats.append((2 * n, jnp.sum(d * d)))

    for l in range(n):
        grm = gr[l][...].astype(conv_dtype)
        gcm = gc[l][...].astype(conv_dtype)
        h, w = a.shape
        ho = gr[l].shape[0]

        L = L_ref[l].astype(_F32)
        c1v = 0.01 * L
        c2v = 0.03 * L
        C1 = c1v * c1v
        C2 = c2v * c2v

        # --- separable depthwise Gaussian conv of ALL 5 signals:
        #     one left matmul + one right matmul -----------------------------
        xcat = jnp.concatenate([a, b, a * a, b * b, a * b], axis=1)       # (h, 5w)
        t = jnp.dot(grm, xcat.astype(conv_dtype),
                    preferred_element_type=_F32)                          # (ho, 5w)
        tstack = jnp.concatenate(
            [t[:, k * w:(k + 1) * w] for k in range(5)], axis=0)          # (5ho, w)
        c = jnp.dot(tstack.astype(conv_dtype), gcm,
                    preferred_element_type=_F32)                          # (5ho, wo)
        mu1 = c[0 * ho:1 * ho]
        mu2 = c[1 * ho:2 * ho]
        s11 = c[2 * ho:3 * ho]
        s22 = c[3 * ho:4 * ho]
        s12 = c[4 * ho:5 * ho]

        mu1_sq = mu1 * mu1
        mu2_sq = mu2 * mu2
        mu1_mu2 = mu1 * mu2
        sigma1_sq = s11 - mu1_sq          # cancellation-prone path kept in f32
        sigma2_sq = s22 - mu2_sq
        sigma12 = s12 - mu1_mu2

        v1 = 2.0 * sigma12 + C2
        v2 = sigma1_sq + sigma2_sq + C2
        cs_map = v1 / v2
        ssim_map = cs_map * ((2.0 * mu1_mu2 + C1)
                             * pl.reciprocal(mu1_sq + mu2_sq + C1, approx=False))

        stats.append((l, jnp.sum(ssim_map)))
        stats.append((n + l, jnp.sum(cs_map)))

        # --- 2x2 avg-pool of both images: 2 matmuls for the pair ------------
        if l + 1 < n:
            prm = pr[l][...].astype(conv_dtype)
            pcm = pc[l][...].astype(conv_dtype)
            h2 = pr[l].shape[0]
            pcat = jnp.concatenate([a, b], axis=1)                        # (h, 2w)
            tp = jnp.dot(prm, pcat.astype(conv_dtype),
                         preferred_element_type=_F32)                     # (h2, 2w)
            tps = jnp.concatenate([tp[:, :w], tp[:, w:]], axis=0)         # (2h2, w)
            pp = jnp.dot(tps.astype(conv_dtype), pcm,
                         preferred_element_type=_F32)                     # (2h2, w2)
            a = pp[:h2]
            b = pp[h2:]

    # ---- fused memory entropy / sparsity reductions (counted once) --------
    gate = jnp.where(pl.program_id(0) == 0, 1.0, 0.0).astype(_F32)
    ta = ta_ref[...]
    sa = sa_ref[...]
    tr = tr_ref[...]
    sr = sr_ref[...]
    stats.append((2 * n + 1, gate * jnp.sum(ta * jnp.log(ta + eps))))
    stats.append((2 * n + 2, gate * jnp.sum(sa * jnp.log(sa + eps))))
    stats.append((2 * n + 3, gate * jnp.sum(tr * tr)))
    stats.append((2 * n + 4, gate * jnp.sum(sr * sr)))

    # pack all scalar stats into row 0 of this step's (8, 128) output tile
    rows = lax.broadcasted_iota(jnp.int32, (8, 128), 0)
    cols = lax.broadcasted_iota(jnp.int32, (8, 128), 1)
    tile = jnp.zeros((8, 128), _F32)
    for col, val in stats:
        tile = jnp.where((rows == 0) & (cols == col), val, tile)
    o_ref[...] = tile


def _combined_stats(img1, img2, mem_inputs, window_size=11, levels=5,
                    conv_dtype=_F32):
    """One pallas_call; returns (per-column summed stats (128,), per-level
    ssim-map element counts).  img1 defines the dynamic range (torch img1)."""
    B, C, H, W = img1.shape
    BC = B * C
    x1 = jnp.asarray(img1, _F32).reshape(BC, H, W)
    x2 = jnp.asarray(img2, _F32).reshape(BC, H, W)

    L_levels = _per_level_dynamic_range(img1, levels)          # (levels,) int32

    gr_list, gc_list, pr_list, pc_list, counts = [], [], [], [], []
    h, w = H, W
    for l in range(levels):
        win = min(window_size, h, w)
        g = _gaussian_1d(win)
        ho, wo = h - win + 1, w - win + 1
        counts.append(BC * ho * wo)
        gr_list.append(jnp.asarray(_band_matrix(ho, h, g), conv_dtype))
        gc_list.append(jnp.asarray(_band_matrix(wo, w, g).T, conv_dtype))
        if l + 1 < levels:
            pr_list.append(jnp.asarray(_pool_matrix(h), conv_dtype))
            pc_list.append(jnp.asarray(_pool_matrix(w).T, conv_dtype))
            h, w = h // 2, w // 2

    ta, sa, tr, sr = mem_inputs

    img_spec = pl.BlockSpec((None, H, W), lambda i, L: (i, 0, 0))

    def _const_spec(arr):
        # full-array block at a constant index -> stays VMEM-resident
        return pl.BlockSpec(arr.shape, lambda i, L: (0,) * arr.ndim)

    in_specs = ([img_spec, img_spec]
                + [_const_spec(m) for m in gr_list + gc_list + pr_list + pc_list]
                + [_const_spec(m) for m in (ta, sa, tr, sr)])
    out_spec = pl.BlockSpec((None, 8, 128), lambda i, L: (i, 0, 0))

    grid_spec = pltpu.PrefetchScalarGridSpec(
        num_scalar_prefetch=1,          # per-level dynamic range L, in SMEM
        grid=(BC,),
        in_specs=in_specs,
        out_specs=out_spec,
    )

    out = pl.pallas_call(
        functools.partial(_combined_kernel, levels=levels, eps=_ENTROPY_EPS,
                          conv_dtype=conv_dtype),
        out_shape=jax.ShapeDtypeStruct((BC, 8, 128), _F32),
        grid_spec=grid_spec,
        compiler_params=pltpu.CompilerParams(
            dimension_semantics=("parallel",),      # megacore on v7x
            vmem_limit_bytes=32 * 1024 * 1024),
    )(L_levels, x1, x2, *gr_list, *gc_list, *pr_list, *pc_list, ta, sa, tr, sr)

    stats = jnp.sum(out[:, 0, :], axis=0)           # reduce over the B*C grid
    return stats, counts


# --------------------------------------------------------------------------
# CombinedLoss forward
# --------------------------------------------------------------------------
def combined_loss_forward(input_imgs, reconstructed_imgs, memory_results, config,
                          labels=None):
    loss_dict = {}
    levels = 5

    tmp = memory_results.get('temporal_output') if memory_results else None
    spa = memory_results.get('spatial_output') if memory_results else None
    t_att = tmp.get('att') if tmp is not None else None
    s_att = spa.get('att') if spa is not None else None
    t_raw = tmp.get('raw_attention') if tmp is not None else None
    s_raw = spa.get('raw_attention') if spa is not None else None

    def dense_or_zero(x):
        return _lane_dense(x) if x is not None else jnp.zeros((8, 128), _F32)

    mem_inputs = tuple(dense_or_zero(x) for x in (t_att, s_att, t_raw, s_raw))

    # torch call is self.msssim_loss(reconstructed_imgs, input_imgs):
    # img1 (= defines the dynamic range L) is the reconstruction.
    stats, counts = _combined_stats(reconstructed_imgs, input_imgs, mem_inputs,
                                    window_size=11, levels=levels)

    counts_arr = jnp.asarray(counts, _F32)
    mssim = (stats[0:levels] / counts_arr + 1.0) / 2.0
    mcs = (stats[levels:2 * levels] / counts_arr + 1.0) / 2.0
    weights = jnp.asarray(_WEIGHTS[:levels])
    pow1 = mcs ** weights
    pow2 = mssim ** weights
    msssim_val = jnp.prod(pow1[:-1] * pow2[-1])     # same broadcast as torch

    n_img = float(np.prod(input_imgs.shape))
    sq = stats[2 * levels]
    intensity_loss = sq / n_img                      # mean(|pred - target|^2)
    l2_loss = jnp.sqrt(sq / n_img + 1e-8)            # sqrt(mean(sq diff) + eps)
    msssim_loss = (1.0 - msssim_val) / 2.0

    intensity_weight = 1.0
    l2_weight = 1.0
    msssim_weight = 1.0
    reconstruction_loss = (intensity_weight * intensity_loss
                           + l2_weight * l2_loss
                           + msssim_weight * msssim_loss)
    loss_dict['intensity_loss'] = intensity_loss
    loss_dict['l2_loss'] = l2_loss
    loss_dict['msssim_loss'] = msssim_loss
    loss_dict['reconstruction_loss'] = reconstruction_loss

    # ---- memory entropy + sparsity losses (reductions already fused) ------
    entropy_weight = 0.0002
    memory_loss = 0.0
    ta_xlogx = stats[2 * levels + 1]
    sa_xlogx = stats[2 * levels + 2]
    tr_sq = stats[2 * levels + 3]
    sr_sq = stats[2 * levels + 4]

    if t_att is not None:
        rows = float(int(np.prod(t_att.shape)) // int(t_att.shape[1]))
        temp_entropy = -ta_xlogx / rows
        memory_loss = memory_loss + entropy_weight * temp_entropy
        loss_dict['temporal_entropy'] = temp_entropy
    if s_att is not None:
        rows = float(int(np.prod(s_att.shape)) // int(s_att.shape[1]))
        spa_entropy = -sa_xlogx / rows
        memory_loss = memory_loss + entropy_weight * spa_entropy
        loss_dict['spatial_entropy'] = spa_entropy
    loss_dict['total_memory_loss'] = memory_loss

    sparsity_loss = 0.0
    count = 0
    if t_raw is not None:
        rows = float(int(np.prod(t_raw.shape)) // int(t_raw.shape[1]))
        sparsity_loss = sparsity_loss + tr_sq / rows
        count += 1
    if s_raw is not None:
        rows = float(int(np.prod(s_raw.shape)) // int(s_raw.shape[1]))
        sparsity_loss = sparsity_loss + sr_sq / rows
        count += 1
    if count > 0:
        sparsity_loss = sparsity_loss / count
    loss_dict['sparsity_loss'] = sparsity_loss

    total_loss = (config.LOSS.RECONSTRUCTION_WEIGHT * reconstruction_loss
                  + config.LOSS.MEMORY_WEIGHT * memory_loss
                  + config.LOSS.SPARSITY_WEIGHT * sparsity_loss)
    loss_dict['total_loss'] = total_loss
    return loss_dict


class _NS:
    pass


def _make_config():
    cfg = _NS()
    cfg.LOSS = _NS()
    cfg.LOSS.RECONSTRUCTION_WEIGHT = 1.0
    cfg.LOSS.MEMORY_WEIGHT = 1.0
    cfg.LOSS.SPARSITY_WEIGHT = 0.1
    return cfg


if __name__ == "__main__":
    key = jax.random.PRNGKey(0)
    k1, k2, k3, k4, k5, k6 = jax.random.split(key, 6)

    # H=W=32 so the 5 MS-SSIM pyramid levels (32,16,8,4,2) are all valid.
    B, C, H, W = 2, 3, 32, 32
    input_imgs = jax.random.uniform(k1, (B, C, H, W), dtype=jnp.float32)
    reconstructed_imgs = jnp.clip(
        input_imgs + 0.05 * jax.random.normal(k2, (B, C, H, W), dtype=jnp.float32),
        0.0, 1.0)

    # memory module outputs: 2D attention maps (N, mem_slots), row-softmaxed
    temp_att = jax.nn.softmax(jax.random.normal(k3, (16, 64)), axis=1)
    temp_raw = jax.nn.softmax(jax.random.normal(k4, (16, 64)), axis=1)
    spa_att = jax.nn.softmax(jax.random.normal(k5, (32, 32)), axis=1)
    spa_raw = jax.nn.softmax(jax.random.normal(k6, (32, 32)), axis=1)
    memory_results = {
        'temporal_output': {'att': temp_att, 'raw_attention': temp_raw},
        'spatial_output': {'att': spa_att, 'raw_attention': spa_raw},
    }

    config = _make_config()
    loss_dict = combined_loss_forward(input_imgs, reconstructed_imgs,
                                      memory_results, config)
    jax.block_until_ready(loss_dict['total_loss'])
    print("KERNEL_OK")
</pallas_src>

<mosaic_0001>
module attributes {stable_mosaic.version = 11 : i64} {
  func.func @_combined_kernel(%arg0: i32, %arg1: memref<5xi32, #tpu.memory_space<smem>>, %arg2: memref<1x32x32xf32, #tpu.memory_space<vmem>>, %arg3: memref<1x32x32xf32, #tpu.memory_space<vmem>>, %arg4: memref<22x32xf32, #tpu.memory_space<vmem>>, %arg5: memref<6x16xf32, #tpu.memory_space<vmem>>, %arg6: memref<1x8xf32, #tpu.memory_space<vmem>>, %arg7: memref<1x4xf32, #tpu.memory_space<vmem>>, %arg8: memref<1x2xf32, #tpu.memory_space<vmem>>, %arg9: memref<32x22xf32, #tpu.memory_space<vmem>>, %arg10: memref<16x6xf32, #tpu.memory_space<vmem>>, %arg11: memref<8x1xf32, #tpu.memory_space<vmem>>, %arg12: memref<4x1xf32, #tpu.memory_space<vmem>>, %arg13: memref<2x1xf32, #tpu.memory_space<vmem>>, %arg14: memref<16x32xf32, #tpu.memory_space<vmem>>, %arg15: memref<8x16xf32, #tpu.memory_space<vmem>>, %arg16: memref<4x8xf32, #tpu.memory_space<vmem>>, %arg17: memref<2x4xf32, #tpu.memory_space<vmem>>, %arg18: memref<32x16xf32, #tpu.memory_space<vmem>>, %arg19: memref<16x8xf32, #tpu.memory_space<vmem>>, %arg20: memref<8x4xf32, #tpu.memory_space<vmem>>, %arg21: memref<4x2xf32, #tpu.memory_space<vmem>>, %arg22: memref<8x128xf32, #tpu.memory_space<vmem>>, %arg23: memref<8x128xf32, #tpu.memory_space<vmem>>, %arg24: memref<8x128xf32, #tpu.memory_space<vmem>>, %arg25: memref<8x128xf32, #tpu.memory_space<vmem>>, %arg26: memref<1x8x128xf32, #tpu.memory_space<vmem>>) attributes {dimension_semantics = [#tpu.dimension_semantics<parallel>], iteration_bounds = array<i64: 6>, scalar_prefetch = 1 : i64, scratch_operands = 0 : i64, tpu.core_type = #tpu.core_type<tc>, window_params = [{transform_indices = @transform_0, window_bounds = array<i64: 1, 32, 32>}, {transform_indices = @transform_1, window_bounds = array<i64: 1, 32, 32>}, {pipeline_mode = #tpu.pipeline_mode<synchronous>, transform_indices = @transform_2, window_bounds = array<i64: 22, 32>}, {pipeline_mode = #tpu.pipeline_mode<synchronous>, transform_indices = @transform_3, window_bounds = array<i64: 6, 16>}, {pipeline_mode = #tpu.pipeline_mode<synchronous>, transform_indices = @transform_4, window_bounds = array<i64: 1, 8>}, {pipeline_mode = #tpu.pipeline_mode<synchronous>, transform_indices = @transform_5, window_bounds = array<i64: 1, 4>}, {pipeline_mode = #tpu.pipeline_mode<synchronous>, transform_indices = @transform_6, window_bounds = array<i64: 1, 2>}, {pipeline_mode = #tpu.pipeline_mode<synchronous>, transform_indices = @transform_7, window_bounds = array<i64: 32, 22>}, {pipeline_mode = #tpu.pipeline_mode<synchronous>, transform_indices = @transform_8, window_bounds = array<i64: 16, 6>}, {pipeline_mode = #tpu.pipeline_mode<synchronous>, transform_indices = @transform_9, window_bounds = array<i64: 8, 1>}, {pipeline_mode = #tpu.pipeline_mode<synchronous>, transform_indices = @transform_10, window_bounds = array<i64: 4, 1>}, {pipeline_mode = #tpu.pipeline_mode<synchronous>, transform_indices = @transform_11, window_bounds = array<i64: 2, 1>}, {pipeline_mode = #tpu.pipeline_mode<synchronous>, transform_indices = @transform_12, window_bounds = array<i64: 16, 32>}, {pipeline_mode = #tpu.pipeline_mode<synchronous>, transform_indices = @transform_13, window_bounds = array<i64: 8, 16>}, {pipeline_mode = #tpu.pipeline_mode<synchronous>, transform_indices = @transform_14, window_bounds = array<i64: 4, 8>}, {pipeline_mode = #tpu.pipeline_mode<synchronous>, transform_indices = @transform_15, window_bounds = array<i64: 2, 4>}, {pipeline_mode = #tpu.pipeline_mode<synchronous>, transform_indices = @transform_16, window_bounds = array<i64: 32, 16>}, {pipeline_mode = #tpu.pipeline_mode<synchronous>, transform_indices = @transform_17, window_bounds = array<i64: 16, 8>}, {pipeline_mode = #tpu.pipeline_mode<synchronous>, transform_indices = @transform_18, window_bounds = array<i64: 8, 4>}, {pipeline_mode = #tpu.pipeline_mode<synchronous>, transform_indices = @transform_19, window_bounds = array<i64: 4, 2>}, {pipeline_mode = #tpu.pipeline_mode<synchronous>, transform_indices = @transform_20, window_bounds = array<i64: 8, 128>}, {pipeline_mode = #tpu.pipeline_mode<synchronous>, transform_indices = @transform_21, window_bounds = array<i64: 8, 128>}, {pipeline_mode = #tpu.pipeline_mode<synchronous>, transform_indices = @transform_22, window_bounds = array<i64: 8, 128>}, {pipeline_mode = #tpu.pipeline_mode<synchronous>, transform_indices = @transform_23, window_bounds = array<i64: 8, 128>}, {transform_indices = @transform_24, window_bounds = array<i64: 1, 8, 128>}]} {
    %c0 = arith.constant 0 : index
    %c0_0 = arith.constant 0 : index
    %c0_1 = arith.constant 0 : index
    %0 = vector.load %arg2[%c0, %c0_0, %c0_1] : memref<1x32x32xf32, #tpu.memory_space<vmem>>, vector<1x32x32xf32>
    %1 = vector.shape_cast %0 : vector<1x32x32xf32> to vector<32x32xf32>
    %c0_2 = arith.constant 0 : index
    %c0_3 = arith.constant 0 : index
    %c0_4 = arith.constant 0 : index
    %2 = vector.load %arg3[%c0_2, %c0_3, %c0_4] : memref<1x32x32xf32, #tpu.memory_space<vmem>>, vector<1x32x32xf32>
    %3 = vector.shape_cast %2 : vector<1x32x32xf32> to vector<32x32xf32>
    %4 = arith.subf %1, %3 : vector<32x32xf32>
    %5 = arith.mulf %4, %4 : vector<32x32xf32>
    %6 = vector.shape_cast %5 : vector<32x32xf32> to vector<1x32x32xf32>
    %cst = arith.constant dense<0.000000e+00> : vector<1xf32>
    %7 = vector.multi_reduction <add>, %6, %cst [1, 2] : vector<1x32x32xf32> to vector<1xf32>
    %8 = vector.shape_cast %7 : vector<1xf32> to vector<1x1x1xf32>
    %9 = vector.extract %8[0, 0, 0] : f32 from vector<1x1x1xf32>
    %c0_5 = arith.constant 0 : index
    %c0_6 = arith.constant 0 : index
    %10 = vector.load %arg4[%c0_5, %c0_6] : memref<22x32xf32, #tpu.memory_space<vmem>>, vector<22x32xf32>
    %c0_7 = arith.constant 0 : index
    %c0_8 = arith.constant 0 : index
    %11 = vector.load %arg9[%c0_7, %c0_8] : memref<32x22xf32, #tpu.memory_space<vmem>>, vector<32x22xf32>
    %c0_9 = arith.constant 0 : index
    %12 = memref.load %arg1[%c0_9] : memref<5xi32, #tpu.memory_space<smem>>
    %13 = arith.sitofp %12 : i32 to f32
    %cst_10 = arith.constant 0.00999999977 : f32
    %14 = arith.mulf %cst_10, %13 : f32
    %cst_11 = arith.constant 3.000000e-02 : f32
    %15 = arith.mulf %cst_11, %13 : f32
    %16 = arith.mulf %14, %14 : f32
    %17 = arith.mulf %15, %15 : f32
    %18 = arith.mulf %1, %1 : vector<32x32xf32>
    %19 = arith.mulf %3, %3 : vector<32x32xf32>
    %20 = arith.mulf %1, %3 : vector<32x32xf32>
    %21 = tpu.concatenate %1, %3, %18, %19, %20 in 1 : vector<32x32xf32>, vector<32x32xf32>, vector<32x32xf32>, vector<32x32xf32>, vector<32x32xf32> -> vector<32x160xf32>
    %cst_12 = arith.constant dense<0.000000e+00> : vector<22x160xf32>
    %22 = tpu.matmul %10, %21, %cst_12 {dimension_numbers = #tpu.dot_dimension_numbers<[1], [0], [0], [1], [0, 0, 1, 1], [], []>} : vector<22x32xf32>, vector<32x160xf32>, vector<22x160xf32> -> vector<22x160xf32>
    %23 = vector.extract_strided_slice %22 {offsets = [0, 0], sizes = [22, 32], strides = [1, 1]} : vector<22x160xf32> to vector<22x32xf32>
    %24 = vector.extract_strided_slice %22 {offsets = [0, 32], sizes = [22, 32], strides = [1, 1]} : vector<22x160xf32> to vector<22x32xf32>
    %25 = vector.extract_strided_slice %22 {offsets = [0, 64], sizes = [22, 32], strides = [1, 1]} : vector<22x160xf32> to vector<22x32xf32>
    %26 = vector.extract_strided_slice %22 {offsets = [0, 96], sizes = [22, 32], strides = [1, 1]} : vector<22x160xf32> to vector<22x32xf32>
    %27 = vector.extract_strided_slice %22 {offsets = [0, 128], sizes = [22, 32], strides = [1, 1]} : vector<22x160xf32> to vector<22x32xf32>
    %28 = tpu.concatenate %23, %24, %25, %26, %27 in 0 : vector<22x32xf32>, vector<22x32xf32>, vector<22x32xf32>, vector<22x32xf32>, vector<22x32xf32> -> vector<110x32xf32>
    %cst_13 = arith.constant dense<0.000000e+00> : vector<110x22xf32>
    %29 = tpu.matmul %28, %11, %cst_13 {dimension_numbers = #tpu.dot_dimension_numbers<[1], [0], [0], [1], [0, 0, 1, 1], [], []>} : vector<110x32xf32>, vector<32x22xf32>, vector<110x22xf32> -> vector<110x22xf32>
    %30 = vector.extract_strided_slice %29 {offsets = [0, 0], sizes = [22, 22], strides = [1, 1]} : vector<110x22xf32> to vector<22x22xf32>
    %31 = vector.extract_strided_slice %29 {offsets = [22, 0], sizes = [22, 22], strides = [1, 1]} : vector<110x22xf32> to vector<22x22xf32>
    %32 = vector.extract_strided_slice %29 {offsets = [44, 0], sizes = [22, 22], strides = [1, 1]} : vector<110x22xf32> to vector<22x22xf32>
    %33 = vector.extract_strided_slice %29 {offsets = [66, 0], sizes = [22, 22], strides = [1, 1]} : vector<110x22xf32> to vector<22x22xf32>
    %34 = vector.extract_strided_slice %29 {offsets = [88, 0], sizes = [22, 22], strides = [1, 1]} : vector<110x22xf32> to vector<22x22xf32>
    %35 = arith.mulf %30, %30 : vector<22x22xf32>
    %36 = arith.mulf %31, %31 : vector<22x22xf32>
    %37 = arith.mulf %30, %31 : vector<22x22xf32>
    %38 = arith.subf %32, %35 : vector<22x22xf32>
    %39 = arith.subf %33, %36 : vector<22x22xf32>
    %40 = arith.subf %34, %37 : vector<22x22xf32>
    %cst_14 = arith.constant 2.000000e+00 : f32
    %41 = vector.broadcast %cst_14 : f32 to vector<22x22xf32>
    %42 = arith.mulf %41, %40 : vector<22x22xf32>
    %43 = vector.broadcast %17 : f32 to vector<22x22xf32>
    %44 = arith.addf %42, %43 : vector<22x22xf32>
    %45 = arith.addf %38, %39 : vector<22x22xf32>
    %46 = vector.broadcast %17 : f32 to vector<22x22xf32>
    %47 = arith.addf %45, %46 : vector<22x22xf32>
    %48 = arith.divf %44, %47 : vector<22x22xf32>
    %cst_15 = arith.constant 2.000000e+00 : f32
    %49 = vector.broadcast %cst_15 : f32 to vector<22x22xf32>
    %50 = arith.mulf %49, %37 : vector<22x22xf32>
    %51 = vector.broadcast %16 : f32 to vector<22x22xf32>
    %52 = arith.addf %50, %51 : vector<22x22xf32>
    %53 = arith.addf %35, %36 : vector<22x22xf32>
    %54 = vector.broadcast %16 : f32 to vector<22x22xf32>
    %55 = arith.addf %53, %54 : vector<22x22xf32>
    %56 = tpu.reciprocal %55 : vector<22x22xf32> -> vector<22x22xf32>
    %57 = arith.mulf %52, %56 : vector<22x22xf32>
    %58 = arith.mulf %48, %57 : vector<22x22xf32>
    %59 = vector.shape_cast %58 : vector<22x22xf32> to vector<1x22x22xf32>
    %cst_16 = arith.constant dense<0.000000e+00> : vector<1xf32>
    %60 = vector.multi_reduction <add>, %59, %cst_16 [1, 2] : vector<1x22x22xf32> to vector<1xf32>
    %61 = vector.shape_cast %60 : vector<1xf32> to vector<1x1x1xf32>
    %62 = vector.extract %61[0, 0, 0] : f32 from vector<1x1x1xf32>
    %63 = vector.shape_cast %48 : vector<22x22xf32> to vector<1x22x22xf32>
    %cst_17 = arith.constant dense<0.000000e+00> : vector<1xf32>
    %64 = vector.multi_reduction <add>, %63, %cst_17 [1, 2] : vector<1x22x22xf32> to vector<1xf32>
    %65 = vector.shape_cast %64 : vector<1xf32> to vector<1x1x1xf32>
    %66 = vector.extract %65[0, 0, 0] : f32 from vector<1x1x1xf32>
    %c0_18 = arith.constant 0 : index
    %c0_19 = arith.constant 0 : index
    %67 = vector.load %arg14[%c0_18, %c0_19] : memref<16x32xf32, #tpu.memory_space<vmem>>, vector<16x32xf32>
    %c0_20 = arith.constant 0 : index
    %c0_21 = arith.constant 0 : index
    %68 = vector.load %arg18[%c0_20, %c0_21] : memref<32x16xf32, #tpu.memory_space<vmem>>, vector<32x16xf32>
    %69 = tpu.concatenate %1, %3 in 1 : vector<32x32xf32>, vector<32x32xf32> -> vector<32x64xf32>
    %cst_22 = arith.constant dense<0.000000e+00> : vector<16x64xf32>
    %70 = tpu.matmul %67, %69, %cst_22 {dimension_numbers = #tpu.dot_dimension_numbers<[1], [0], [0], [1], [0, 0, 1, 1], [], []>} : vector<16x32xf32>, vector<32x64xf32>, vector<16x64xf32> -> vector<16x64xf32>
    %71 = vector.extract_strided_slice %70 {offsets = [0, 0], sizes = [16, 32], strides = [1, 1]} : vector<16x64xf32> to vector<16x32xf32>
    %72 = vector.extract_strided_slice %70 {offsets = [0, 32], sizes = [16, 32], strides = [1, 1]} : vector<16x64xf32> to vector<16x32xf32>
    %73 = tpu.concatenate %71, %72 in 0 : vector<16x32xf32>, vector<16x32xf32> -> vector<32x32xf32>
    %cst_23 = arith.constant dense<0.000000e+00> : vector<32x16xf32>
    %74 = tpu.matmul %73, %68, %cst_23 {dimension_numbers = #tpu.dot_dimension_numbers<[1], [0], [0], [1], [0, 0, 1, 1], [], []>} : vector<32x32xf32>, vector<32x16xf32>, vector<32x16xf32> -> vector<32x16xf32>
    %75 = vector.extract_strided_slice %74 {offsets = [0, 0], sizes = [16, 16], strides = [1, 1]} : vector<32x16xf32> to vector<16x16xf32>
    %76 = vector.extract_strided_slice %74 {offsets = [16, 0], sizes = [16, 16], strides = [1, 1]} : vector<32x16xf32> to vector<16x16xf32>
    %c0_24 = arith.constant 0 : index
    %c0_25 = arith.constant 0 : index
    %77 = vector.load %arg5[%c0_24, %c0_25] : memref<6x16xf32, #tpu.memory_space<vmem>>, vector<6x16xf32>
    %c0_26 = arith.constant 0 : index
    %c0_27 = arith.constant 0 : index
    %78 = vector.load %arg10[%c0_26, %c0_27] : memref<16x6xf32, #tpu.memory_space<vmem>>, vector<16x6xf32>
    %c1 = arith.constant 1 : index
    %79 = memref.load %arg1[%c1] : memref<5xi32, #tpu.memory_space<smem>>
    %80 = arith.sitofp %79 : i32 to f32
    %cst_28 = arith.constant 0.00999999977 : f32
    %81 = arith.mulf %cst_28, %80 : f32
    %cst_29 = arith.constant 3.000000e-02 : f32
    %82 = arith.mulf %cst_29, %80 : f32
    %83 = arith.mulf %81, %81 : f32
    %84 = arith.mulf %82, %82 : f32
    %85 = arith.mulf %75, %75 : vector<16x16xf32>
    %86 = arith.mulf %76, %76 : vector<16x16xf32>
    %87 = arith.mulf %75, %76 : vector<16x16xf32>
    %88 = tpu.concatenate %75, %76, %85, %86, %87 in 1 : vector<16x16xf32>, vector<16x16xf32>, vector<16x16xf32>, vector<16x16xf32>, vector<16x16xf32> -> vector<16x80xf32>
    %cst_30 = arith.constant dense<0.000000e+00> : vector<6x80xf32>
    %89 = tpu.matmul %77, %88, %cst_30 {dimension_numbers = #tpu.dot_dimension_numbers<[1], [0], [0], [1], [0, 0, 1, 1], [], []>} : vector<6x16xf32>, vector<16x80xf32>, vector<6x80xf32> -> vector<6x80xf32>
    %90 = vector.extract_strided_slice %89 {offsets = [0, 0], sizes = [6, 16], strides = [1, 1]} : vector<6x80xf32> to vector<6x16xf32>
    %91 = vector.extract_strided_slice %89 {offsets = [0, 16], sizes = [6, 16], strides = [1, 1]} : vector<6x80xf32> to vector<6x16xf32>
    %92 = vector.extract_strided_slice %89 {offsets = [0, 32], sizes = [6, 16], strides = [1, 1]} : vector<6x80xf32> to vector<6x16xf32>
    %93 = vector.extract_strided_slice %89 {offsets = [0, 48], sizes = [6, 16], strides = [1, 1]} : vector<6x80xf32> to vector<6x16xf32>
    %94 = vector.extract_strided_slice %89 {offsets = [0, 64], sizes = [6, 16], strides = [1, 1]} : vector<6x80xf32> to vector<6x16xf32>
    %95 = tpu.concatenate %90, %91, %92, %93, %94 in 0 : vector<6x16xf32>, vector<6x16xf32>, vector<6x16xf32>, vector<6x16xf32>, vector<6x16xf32> -> vector<30x16xf32>
    %cst_31 = arith.constant dense<0.000000e+00> : vector<30x6xf32>
    %96 = tpu.matmul %95, %78, %cst_31 {dimension_numbers = #tpu.dot_dimension_numbers<[1], [0], [0], [1], [0, 0, 1, 1], [], []>} : vector<30x16xf32>, vector<16x6xf32>, vector<30x6xf32> -> vector<30x6xf32>
    %97 = vector.extract_strided_slice %96 {offsets = [0, 0], sizes = [6, 6], strides = [1, 1]} : vector<30x6xf32> to vector<6x6xf32>
    %98 = vector.extract_strided_slice %96 {offsets = [6, 0], sizes = [6, 6], strides = [1, 1]} : vector<30x6xf32> to vector<6x6xf32>
    %99 = vector.extract_strided_slice %96 {offsets = [12, 0], sizes = [6, 6], strides = [1, 1]} : vector<30x6xf32> to vector<6x6xf32>
    %100 = vector.extract_strided_slice %96 {offsets = [18, 0], sizes = [6, 6], strides = [1, 1]} : vector<30x6xf32> to vector<6x6xf32>
    %101 = vector.extract_strided_slice %96 {offsets = [24, 0], sizes = [6, 6], strides = [1, 1]} : vector<30x6xf32> to vector<6x6xf32>
    %102 = arith.mulf %97, %97 : vector<6x6xf32>
    %103 = arith.mulf %98, %98 : vector<6x6xf32>
    %104 = arith.mulf %97, %98 : vector<6x6xf32>
    %105 = arith.subf %99, %102 : vector<6x6xf32>
    %106 = arith.subf %100, %103 : vector<6x6xf32>
    %107 = arith.subf %101, %104 : vector<6x6xf32>
    %cst_32 = arith.constant 2.000000e+00 : f32
    %108 = vector.broadcast %cst_32 : f32 to vector<6x6xf32>
    %109 = arith.mulf %108, %107 : vector<6x6xf32>
    %110 = vector.broadcast %84 : f32 to vector<6x6xf32>
    %111 = arith.addf %109, %110 : vector<6x6xf32>
    %112 = arith.addf %105, %106 : vector<6x6xf32>
    %113 = vector.broadcast %84 : f32 to vector<6x6xf32>
    %114 = arith.addf %112, %113 : vector<6x6xf32>
    %115 = arith.divf %111, %114 : vector<6x6xf32>
    %cst_33 = arith.constant 2.000000e+00 : f32
    %116 = vector.broadcast %cst_33 : f32 to vector<6x6xf32>
    %117 = arith.mulf %116, %104 : vector<6x6xf32>
    %118 = vector.broadcast %83 : f32 to vector<6x6xf32>
    %119 = arith.addf %117, %118 : vector<6x6xf32>
    %120 = arith.addf %102, %103 : vector<6x6xf32>
    %121 = vector.broadcast %83 : f32 to vector<6x6xf32>
    %122 = arith.addf %120, %121 : vector<6x6xf32>
    %123 = tpu.reciprocal %122 : vector<6x6xf32> -> vector<6x6xf32>
    %124 = arith.mulf %119, %123 : vector<6x6xf32>
    %125 = arith.mulf %115, %124 : vector<6x6xf32>
    %126 = vector.shape_cast %125 : vector<6x6xf32> to vector<1x6x6xf32>
    %cst_34 = arith.constant dense<0.000000e+00> : vector<1xf32>
    %127 = vector.multi_reduction <add>, %126, %cst_34 [1, 2] : vector<1x6x6xf32> to vector<1xf32>
    %128 = vector.shape_cast %127 : vector<1xf32> to vector<1x1x1xf32>
    %129 = vector.extract %128[0, 0, 0] : f32 from vector<1x1x1xf32>
    %130 = vector.shape_cast %115 : vector<6x6xf32> to vector<1x6x6xf32>
    %cst_35 = arith.constant dense<0.000000e+00> : vector<1xf32>
    %131 = vector.multi_reduction <add>, %130, %cst_35 [1, 2] : vector<1x6x6xf32> to vector<1xf32>
    %132 = vector.shape_cast %131 : vector<1xf32> to vector<1x1x1xf32>
    %133 = vector.extract %132[0, 0, 0] : f32 from vector<1x1x1xf32>
    %c0_36 = arith.constant 0 : index
    %c0_37 = arith.constant 0 : index
    %134 = vector.load %arg15[%c0_36, %c0_37] : memref<8x16xf32, #tpu.memory_space<vmem>>, vector<8x16xf32>
    %c0_38 = arith.constant 0 : index
    %c0_39 = arith.constant 0 : index
    %135 = vector.load %arg19[%c0_38, %c0_39] : memref<16x8xf32, #tpu.memory_space<vmem>>, vector<16x8xf32>
    %136 = tpu.concatenate %75, %76 in 1 : vector<16x16xf32>, vector<16x16xf32> -> vector<16x32xf32>
    %cst_40 = arith.constant dense<0.000000e+00> : vector<8x32xf32>
    %137 = tpu.matmul %134, %136, %cst_40 {dimension_numbers = #tpu.dot_dimension_numbers<[1], [0], [0], [1], [0, 0, 1, 1], [], []>} : vector<8x16xf32>, vector<16x32xf32>, vector<8x32xf32> -> vector<8x32xf32>
    %138 = vector.extract_strided_slice %137 {offsets = [0, 0], sizes = [8, 16], strides = [1, 1]} : vector<8x32xf32> to vector<8x16xf32>
    %139 = vector.extract_strided_slice %137 {offsets = [0, 16], sizes = [8, 16], strides = [1, 1]} : vector<8x32xf32> to vector<8x16xf32>
    %140 = tpu.concatenate %138, %139 in 0 : vector<8x16xf32>, vector<8x16xf32> -> vector<16x16xf32>
    %cst_41 = arith.constant dense<0.000000e+00> : vector<16x8xf32>
    %141 = tpu.matmul %140, %135, %cst_41 {dimension_numbers = #tpu.dot_dimension_numbers<[1], [0], [0], [1], [0, 0, 1, 1], [], []>} : vector<16x16xf32>, vector<16x8xf32>, vector<16x8xf32> -> vector<16x8xf32>
    %142 = vector.extract_strided_slice %141 {offsets = [0, 0], sizes = [8, 8], strides = [1, 1]} : vector<16x8xf32> to vector<8x8xf32>
    %143 = vector.extract_strided_slice %141 {offsets = [8, 0], sizes = [8, 8], strides = [1, 1]} : vector<16x8xf32> to vector<8x8xf32>
    %c0_42 = arith.constant 0 : index
    %c0_43 = arith.constant 0 : index
    %144 = vector.load %arg6[%c0_42, %c0_43] : memref<1x8xf32, #tpu.memory_space<vmem>>, vector<1x8xf32>
    %c0_44 = arith.constant 0 : index
    %c0_45 = arith.constant 0 : index
    %145 = vector.load %arg11[%c0_44, %c0_45] : memref<8x1xf32, #tpu.memory_space<vmem>>, vector<8x1xf32>
    %c2 = arith.constant 2 : index
    %146 = memref.load %arg1[%c2] : memref<5xi32, #tpu.memory_space<smem>>
    %147 = arith.sitofp %146 : i32 to f32
    %cst_46 = arith.constant 0.00999999977 : f32
    %148 = arith.mulf %cst_46, %147 : f32
    %cst_47 = arith.constant 3.000000e-02 : f32
    %149 = arith.mulf %cst_47, %147 : f32
    %150 = arith.mulf %148, %148 : f32
    %151 = arith.mulf %149, %149 : f32
    %152 = arith.mulf %142, %142 : vector<8x8xf32>
    %153 = arith.mulf %143, %143 : vector<8x8xf32>
    %154 = arith.mulf %142, %143 : vector<8x8xf32>
    %155 = tpu.concatenate %142, %143, %152, %153, %154 in 1 : vector<8x8xf32>, vector<8x8xf32>, vector<8x8xf32>, vector<8x8xf32>, vector<8x8xf32> -> vector<8x40xf32>
    %cst_48 = arith.constant dense<0.000000e+00> : vector<1x40xf32>
    %156 = tpu.matmul %144, %155, %cst_48 {dimension_numbers = #tpu.dot_dimension_numbers<[1], [0], [0], [1], [0, 0, 1, 1], [], []>} : vector<1x8xf32>, vector<8x40xf32>, vector<1x40xf32> -> vector<1x40xf32>
    %157 = vector.extract_strided_slice %156 {offsets = [0, 0], sizes = [1, 8], strides = [1, 1]} : vector<1x40xf32> to vector<1x8xf32>
    %158 = vector.extract_strided_slice %156 {offsets = [0, 8], sizes = [1, 8], strides = [1, 1]} : vector<1x40xf32> to vector<1x8xf32>
    %159 = vector.extract_strided_slice %156 {offsets = [0, 16], sizes = [1, 8], strides = [1, 1]} : vector<1x40xf32> to vector<1x8xf32>
    %160 = vector.extract_strided_slice %156 {offsets = [0, 24], sizes = [1, 8], strides = [1, 1]} : vector<1x40xf32> to vector<1x8xf32>
    %161 = vector.extract_strided_slice %156 {offsets = [0, 32], sizes = [1, 8], strides = [1, 1]} : vector<1x40xf32> to vector<1x8xf32>
    %162 = tpu.concatenate %157, %158, %159, %160, %161 in 0 : vector<1x8xf32>, vector<1x8xf32>, vector<1x8xf32>, vector<1x8xf32>, vector<1x8xf32> -> vector<5x8xf32>
    %cst_49 = arith.constant dense<0.000000e+00> : vector<5x1xf32>
    %163 = tpu.matmul %162, %145, %cst_49 {dimension_numbers = #tpu.dot_dimension_numbers<[1], [0], [0], [1], [0, 0, 1, 1], [], []>} : vector<5x8xf32>, vector<8x1xf32>, vector<5x1xf32> -> vector<5x1xf32>
    %164 = vector.extract_strided_slice %163 {offsets = [0, 0], sizes = [1, 1], strides = [1, 1]} : vector<5x1xf32> to vector<1x1xf32>
    %165 = vector.extract_strided_slice %163 {offsets = [1, 0], sizes = [1, 1], strides = [1, 1]} : vector<5x1xf32> to vector<1x1xf32>
    %166 = vector.extract_strided_slice %163 {offsets = [2, 0], sizes = [1, 1], strides = [1, 1]} : vector<5x1xf32> to vector<1x1xf32>
    %167 = vector.extract_strided_slice %163 {offsets = [3, 0], sizes = [1, 1], strides = [1, 1]} : vector<5x1xf32> to vector<1x1xf32>
    %168 = vector.extract_strided_slice %163 {offsets = [4, 0], sizes = [1, 1], strides = [1, 1]} : vector<5x1xf32> to vector<1x1xf32>
    %169 = arith.mulf %164, %164 : vector<1x1xf32>
    %170 = arith.mulf %165, %165 : vector<1x1xf32>
    %171 = arith.mulf %164, %165 : vector<1x1xf32>
    %172 = arith.subf %166, %169 : vector<1x1xf32>
    %173 = arith.subf %167, %170 : vector<1x1xf32>
    %174 = arith.subf %168, %171 : vector<1x1xf32>
    %cst_50 = arith.constant 2.000000e+00 : f32
    %175 = vector.broadcast %cst_50 : f32 to vector<1x1xf32>
    %176 = arith.mulf %175, %174 : vector<1x1xf32>
    %177 = vector.broadcast %151 : f32 to vector<1x1xf32>
    %178 = arith.addf %176, %177 : vector<1x1xf32>
    %179 = arith.addf %172, %173 : vector<1x1xf32>
    %180 = vector.broadcast %151 : f32 to vector<1x1xf32>
    %181 = arith.addf %179, %180 : vector<1x1xf32>
    %182 = arith.divf %178, %181 : vector<1x1xf32>
    %cst_51 = arith.constant 2.000000e+00 : f32
    %183 = vector.broadcast %cst_51 : f32 to vector<1x1xf32>
    %184 = arith.mulf %183, %171 : vector<1x1xf32>
    %185 = vector.broadcast %150 : f32 to vector<1x1xf32>
    %186 = arith.addf %184, %185 : vector<1x1xf32>
    %187 = arith.addf %169, %170 : vector<1x1xf32>
    %188 = vector.broadcast %150 : f32 to vector<1x1xf32>
    %189 = arith.addf %187, %188 : vector<1x1xf32>
    %190 = tpu.reciprocal %189 : vector<1x1xf32> -> vector<1x1xf32>
    %191 = arith.mulf %186, %190 : vector<1x1xf32>
    %192 = arith.mulf %182, %191 : vector<1x1xf32>
    %193 = vector.shape_cast %192 : vector<1x1xf32> to vector<1x1x1xf32>
    %cst_52 = arith.constant dense<0.000000e+00> : vector<1xf32>
    %194 = vector.multi_reduction <add>, %193, %cst_52 [1, 2] : vector<1x1x1xf32> to vector<1xf32>
    %195 = vector.shape_cast %194 : vector<1xf32> to vector<1x1x1xf32>
    %196 = vector.extract %195[0, 0, 0] : f32 from vector<1x1x1xf32>
    %197 = vector.shape_cast %182 : vector<1x1xf32> to vector<1x1x1xf32>
    %cst_53 = arith.constant dense<0.000000e+00> : vector<1xf32>
    %198 = vector.multi_reduction <add>, %197, %cst_53 [1, 2] : vector<1x1x1xf32> to vector<1xf32>
    %199 = vector.shape_cast %198 : vector<1xf32> to vector<1x1x1xf32>
    %200 = vector.extract %199[0, 0, 0] : f32 from vector<1x1x1xf32>
    %c0_54 = arith.constant 0 : index
    %c0_55 = arith.constant 0 : index
    %201 = vector.load %arg16[%c0_54, %c0_55] : memref<4x8xf32, #tpu.memory_space<vmem>>, vector<4x8xf32>
    %c0_56 = arith.constant 0 : index
    %c0_57 = arith.constant 0 : index
    %202 = vector.load %arg20[%c0_56, %c0_57] : memref<8x4xf32, #tpu.memory_space<vmem>>, vector<8x4xf32>
    %203 = tpu.concatenate %142, %143 in 1 : vector<8x8xf32>, vector<8x8xf32> -> vector<8x16xf32>
    %cst_58 = arith.constant dense<0.000000e+00> : vector<4x16xf32>
    %204 = tpu.matmul %201, %203, %cst_58 {dimension_numbers = #tpu.dot_dimension_numbers<[1], [0], [0], [1], [0, 0, 1, 1], [], []>} : vector<4x8xf32>, vector<8x16xf32>, vector<4x16xf32> -> vector<4x16xf32>
    %205 = vector.extract_strided_slice %204 {offsets = [0, 0], sizes = [4, 8], strides = [1, 1]} : vector<4x16xf32> to vector<4x8xf32>
    %206 = vector.extract_strided_slice %204 {offsets = [0, 8], sizes = [4, 8], strides = [1, 1]} : vector<4x16xf32> to vector<4x8xf32>
    %207 = tpu.concatenate %205, %206 in 0 : vector<4x8xf32>, vector<4x8xf32> -> vector<8x8xf32>
    %cst_59 = arith.constant dense<0.000000e+00> : vector<8x4xf32>
    %208 = tpu.matmul %207, %202, %cst_59 {dimension_numbers = #tpu.dot_dimension_numbers<[1], [0], [0], [1], [0, 0, 1, 1], [], []>} : vector<8x8xf32>, vector<8x4xf32>, vector<8x4xf32> -> vector<8x4xf32>
    %209 = vector.extract_strided_slice %208 {offsets = [0, 0], sizes = [4, 4], strides = [1, 1]} : vector<8x4xf32> to vector<4x4xf32>
    %210 = vector.extract_strided_slice %208 {offsets = [4, 0], sizes = [4, 4], strides = [1, 1]} : vector<8x4xf32> to vector<4x4xf32>
    %c0_60 = arith.constant 0 : index
    %c0_61 = arith.constant 0 : index
    %211 = vector.load %arg7[%c0_60, %c0_61] : memref<1x4xf32, #tpu.memory_space<vmem>>, vector<1x4xf32>
    %c0_62 = arith.constant 0 : index
    %c0_63 = arith.constant 0 : index
    %212 = vector.load %arg12[%c0_62, %c0_63] : memref<4x1xf32, #tpu.memory_space<vmem>>, vector<4x1xf32>
    %c3 = arith.constant 3 : index
    %213 = memref.load %arg1[%c3] : memref<5xi32, #tpu.memory_space<smem>>
    %214 = arith.sitofp %213 : i32 to f32
    %cst_64 = arith.constant 0.00999999977 : f32
    %215 = arith.mulf %cst_64, %214 : f32
    %cst_65 = arith.constant 3.000000e-02 : f32
    %216 = arith.mulf %cst_65, %214 : f32
    %217 = arith.mulf %215, %215 : f32
    %218 = arith.mulf %216, %216 : f32
    %219 = arith.mulf %209, %209 : vector<4x4xf32>
    %220 = arith.mulf %210, %210 : vector<4x4xf32>
    %221 = arith.mulf %209, %210 : vector<4x4xf32>
    %222 = tpu.concatenate %209, %210, %219, %220, %221 in 1 : vector<4x4xf32>, vector<4x4xf32>, vector<4x4xf32>, vector<4x4xf32>, vector<4x4xf32> -> vector<4x20xf32>
    %cst_66 = arith.constant dense<0.000000e+00> : vector<1x20xf32>
    %223 = tpu.matmul %211, %222, %cst_66 {dimension_numbers = #tpu.dot_dimension_numbers<[1], [0], [0], [1], [0, 0, 1, 1], [], []>} : vector<1x4xf32>, vector<4x20xf32>, vector<1x20xf32> -> vector<1x20xf32>
    %224 = vector.extract_strided_slice %223 {offsets = [0, 0], sizes = [1, 4], strides = [1, 1]} : vector<1x20xf32> to vector<1x4xf32>
    %225 = vector.extract_strided_slice %223 {offsets = [0, 4], sizes = [1, 4], strides = [1, 1]} : vector<1x20xf32> to vector<1x4xf32>
    %226 = vector.extract_strided_slice %223 {offsets = [0, 8], sizes = [1, 4], strides = [1, 1]} : vector<1x20xf32> to vector<1x4xf32>
    %227 = vector.extract_strided_slice %223 {offsets = [0, 12], sizes = [1, 4], strides = [1, 1]} : vector<1x20xf32> to vector<1x4xf32>
    %228 = vector.extract_strided_slice %223 {offsets = [0, 16], sizes = [1, 4], strides = [1, 1]} : vector<1x20xf32> to vector<1x4xf32>
    %229 = tpu.concatenate %224, %225, %226, %227, %228 in 0 : vector<1x4xf32>, vector<1x4xf32>, vector<1x4xf32>, vector<1x4xf32>, vector<1x4xf32> -> vector<5x4xf32>
    %cst_67 = arith.constant dense<0.000000e+00> : vector<5x1xf32>
    %230 = tpu.matmul %229, %212, %cst_67 {dimension_numbers = #tpu.dot_dimension_numbers<[1], [0], [0], [1], [0, 0, 1, 1], [], []>} : vector<5x4xf32>, vector<4x1xf32>, vector<5x1xf32> -> vector<5x1xf32>
    %231 = vector.extract_strided_slice %230 {offsets = [0, 0], sizes = [1, 1], strides = [1, 1]} : vector<5x1xf32> to vector<1x1xf32>
    %232 = vector.extract_strided_slice %230 {offsets = [1, 0], sizes = [1, 1], strides = [1, 1]} : vector<5x1xf32> to vector<1x1xf32>
    %233 = vector.extract_strided_slice %230 {offsets = [2, 0], sizes = [1, 1], strides = [1, 1]} : vector<5x1xf32> to vector<1x1xf32>
    %234 = vector.extract_strided_slice %230 {offsets = [3, 0], sizes = [1, 1], strides = [1, 1]} : vector<5x1xf32> to vector<1x1xf32>
    %235 = vector.extract_strided_slice %230 {offsets = [4, 0], sizes = [1, 1], strides = [1, 1]} : vector<5x1xf32> to vector<1x1xf32>
    %236 = arith.mulf %231, %231 : vector<1x1xf32>
    %237 = arith.mulf %232, %232 : vector<1x1xf32>
    %238 = arith.mulf %231, %232 : vector<1x1xf32>
    %239 = arith.subf %233, %236 : vector<1x1xf32>
    %240 = arith.subf %234, %237 : vector<1x1xf32>
    %241 = arith.subf %235, %238 : vector<1x1xf32>
    %cst_68 = arith.constant 2.000000e+00 : f32
    %242 = vector.broadcast %cst_68 : f32 to vector<1x1xf32>
    %243 = arith.mulf %242, %241 : vector<1x1xf32>
    %244 = vector.broadcast %218 : f32 to vector<1x1xf32>
    %245 = arith.addf %243, %244 : vector<1x1xf32>
    %246 = arith.addf %239, %240 : vector<1x1xf32>
    %247 = vector.broadcast %218 : f32 to vector<1x1xf32>
    %248 = arith.addf %246, %247 : vector<1x1xf32>
    %249 = arith.divf %245, %248 : vector<1x1xf32>
    %cst_69 = arith.constant 2.000000e+00 : f32
    %250 = vector.broadcast %cst_69 : f32 to vector<1x1xf32>
    %251 = arith.mulf %250, %238 : vector<1x1xf32>
    %252 = vector.broadcast %217 : f32 to vector<1x1xf32>
    %253 = arith.addf %251, %252 : vector<1x1xf32>
    %254 = arith.addf %236, %237 : vector<1x1xf32>
    %255 = vector.broadcast %217 : f32 to vector<1x1xf32>
    %256 = arith.addf %254, %255 : vector<1x1xf32>
    %257 = tpu.reciprocal %256 : vector<1x1xf32> -> vector<1x1xf32>
    %258 = arith.mulf %253, %257 : vector<1x1xf32>
    %259 = arith.mulf %249, %258 : vector<1x1xf32>
    %260 = vector.shape_cast %259 : vector<1x1xf32> to vector<1x1x1xf32>
    %cst_70 = arith.constant dense<0.000000e+00> : vector<1xf32>
    %261 = vector.multi_reduction <add>, %260, %cst_70 [1, 2] : vector<1x1x1xf32> to vector<1xf32>
    %262 = vector.shape_cast %261 : vector<1xf32> to vector<1x1x1xf32>
    %263 = vector.extract %262[0, 0, 0] : f32 from vector<1x1x1xf32>
    %264 = vector.shape_cast %249 : vector<1x1xf32> to vector<1x1x1xf32>
    %cst_71 = arith.constant dense<0.000000e+00> : vector<1xf32>
    %265 = vector.multi_reduction <add>, %264, %cst_71 [1, 2] : vector<1x1x1xf32> to vector<1xf32>
    %266 = vector.shape_cast %265 : vector<1xf32> to vector<1x1x1xf32>
    %267 = vector.extract %266[0, 0, 0] : f32 from vector<1x1x1xf32>
    %c0_72 = arith.constant 0 : index
    %c0_73 = arith.constant 0 : index
    %268 = vector.load %arg17[%c0_72, %c0_73] : memref<2x4xf32, #tpu.memory_space<vmem>>, vector<2x4xf32>
    %c0_74 = arith.constant 0 : index
    %c0_75 = arith.constant 0 : index
    %269 = vector.load %arg21[%c0_74, %c0_75] : memref<4x2xf32, #tpu.memory_space<vmem>>, vector<4x2xf32>
    %270 = tpu.concatenate %209, %210 in 1 : vector<4x4xf32>, vector<4x4xf32> -> vector<4x8xf32>
    %cst_76 = arith.constant dense<0.000000e+00> : vector<2x8xf32>
    %271 = tpu.matmul %268, %270, %cst_76 {dimension_numbers = #tpu.dot_dimension_numbers<[1], [0], [0], [1], [0, 0, 1, 1], [], []>} : vector<2x4xf32>, vector<4x8xf32>, vector<2x8xf32> -> vector<2x8xf32>
    %272 = vector.extract_strided_slice %271 {offsets = [0, 0], sizes = [2, 4], strides = [1, 1]} : vector<2x8xf32> to vector<2x4xf32>
    %273 = vector.extract_strided_slice %271 {offsets = [0, 4], sizes = [2, 4], strides = [1, 1]} : vector<2x8xf32> to vector<2x4xf32>
    %274 = tpu.concatenate %272, %273 in 0 : vector<2x4xf32>, vector<2x4xf32> -> vector<4x4xf32>
    %cst_77 = arith.constant dense<0.000000e+00> : vector<4x2xf32>
    %275 = tpu.matmul %274, %269, %cst_77 {dimension_numbers = #tpu.dot_dimension_numbers<[1], [0], [0], [1], [0, 0, 1, 1], [], []>} : vector<4x4xf32>, vector<4x2xf32>, vector<4x2xf32> -> vector<4x2xf32>
    %276 = vector.extract_strided_slice %275 {offsets = [0, 0], sizes = [2, 2], strides = [1, 1]} : vector<4x2xf32> to vector<2x2xf32>
    %277 = vector.extract_strided_slice %275 {offsets = [2, 0], sizes = [2, 2], strides = [1, 1]} : vector<4x2xf32> to vector<2x2xf32>
    %c0_78 = arith.constant 0 : index
    %c0_79 = arith.constant 0 : index
    %278 = vector.load %arg8[%c0_78, %c0_79] : memref<1x2xf32, #tpu.memory_space<vmem>>, vector<1x2xf32>
    %c0_80 = arith.constant 0 : index
    %c0_81 = arith.constant 0 : index
    %279 = vector.load %arg13[%c0_80, %c0_81] : memref<2x1xf32, #tpu.memory_space<vmem>>, vector<2x1xf32>
    %c4 = arith.constant 4 : index
    %280 = memref.load %arg1[%c4] : memref<5xi32, #tpu.memory_space<smem>>
    %281 = arith.sitofp %280 : i32 to f32
    %cst_82 = arith.constant 0.00999999977 : f32
    %282 = arith.mulf %cst_82, %281 : f32
    %cst_83 = arith.constant 3.000000e-02 : f32
    %283 = arith.mulf %cst_83, %281 : f32
    %284 = arith.mulf %282, %282 : f32
    %285 = arith.mulf %283, %283 : f32
    %286 = arith.mulf %276, %276 : vector<2x2xf32>
    %287 = arith.mulf %277, %277 : vector<2x2xf32>
    %288 = arith.mulf %276, %277 : vector<2x2xf32>
    %289 = tpu.concatenate %276, %277, %286, %287, %288 in 1 : vector<2x2xf32>, vector<2x2xf32>, vector<2x2xf32>, vector<2x2xf32>, vector<2x2xf32> -> vector<2x10xf32>
    %cst_84 = arith.constant dense<0.000000e+00> : vector<1x10xf32>
    %290 = tpu.matmul %278, %289, %cst_84 {dimension_numbers = #tpu.dot_dimension_numbers<[1], [0], [0], [1], [0, 0, 1, 1], [], []>} : vector<1x2xf32>, vector<2x10xf32>, vector<1x10xf32> -> vector<1x10xf32>
    %291 = vector.extract_strided_slice %290 {offsets = [0, 0], sizes = [1, 2], strides = [1, 1]} : vector<1x10xf32> to vector<1x2xf32>
    %292 = vector.extract_strided_slice %290 {offsets = [0, 2], sizes = [1, 2], strides = [1, 1]} : vector<1x10xf32> to vector<1x2xf32>
    %293 = vector.extract_strided_slice %290 {offsets = [0, 4], sizes = [1, 2], strides = [1, 1]} : vector<1x10xf32> to vector<1x2xf32>
    %294 = vector.extract_strided_slice %290 {offsets = [0, 6], sizes = [1, 2], strides = [1, 1]} : vector<1x10xf32> to vector<1x2xf32>
    %295 = vector.extract_strided_slice %290 {offsets = [0, 8], sizes = [1, 2], strides = [1, 1]} : vector<1x10xf32> to vector<1x2xf32>
    %296 = tpu.concatenate %291, %292, %293, %294, %295 in 0 : vector<1x2xf32>, vector<1x2xf32>, vector<1x2xf32>, vector<1x2xf32>, vector<1x2xf32> -> vector<5x2xf32>
    %cst_85 = arith.constant dense<0.000000e+00> : vector<5x1xf32>
    %297 = tpu.matmul %296, %279, %cst_85 {dimension_numbers = #tpu.dot_dimension_numbers<[1], [0], [0], [1], [0, 0, 1, 1], [], []>} : vector<5x2xf32>, vector<2x1xf32>, vector<5x1xf32> -> vector<5x1xf32>
    %298 = vector.extract_strided_slice %297 {offsets = [0, 0], sizes = [1, 1], strides = [1, 1]} : vector<5x1xf32> to vector<1x1xf32>
    %299 = vector.extract_strided_slice %297 {offsets = [1, 0], sizes = [1, 1], strides = [1, 1]} : vector<5x1xf32> to vector<1x1xf32>
    %300 = vector.extract_strided_slice %297 {offsets = [2, 0], sizes = [1, 1], strides = [1, 1]} : vector<5x1xf32> to vector<1x1xf32>
    %301 = vector.extract_strided_slice %297 {offsets = [3, 0], sizes = [1, 1], strides = [1, 1]} : vector<5x1xf32> to vector<1x1xf32>
    %302 = vector.extract_strided_slice %297 {offsets = [4, 0], sizes = [1, 1], strides = [1, 1]} : vector<5x1xf32> to vector<1x1xf32>
    %303 = arith.mulf %298, %298 : vector<1x1xf32>
    %304 = arith.mulf %299, %299 : vector<1x1xf32>
    %305 = arith.mulf %298, %299 : vector<1x1xf32>
    %306 = arith.subf %300, %303 : vector<1x1xf32>
    %307 = arith.subf %301, %304 : vector<1x1xf32>
    %308 = arith.subf %302, %305 : vector<1x1xf32>
    %cst_86 = arith.constant 2.000000e+00 : f32
    %309 = vector.broadcast %cst_86 : f32 to vector<1x1xf32>
    %310 = arith.mulf %309, %308 : vector<1x1xf32>
    %311 = vector.broadcast %285 : f32 to vector<1x1xf32>
    %312 = arith.addf %310, %311 : vector<1x1xf32>
    %313 = arith.addf %306, %307 : vector<1x1xf32>
    %314 = vector.broadcast %285 : f32 to vector<1x1xf32>
    %315 = arith.addf %313, %314 : vector<1x1xf32>
    %316 = arith.divf %312, %315 : vector<1x1xf32>
    %cst_87 = arith.constant 2.000000e+00 : f32
    %317 = vector.broadcast %cst_87 : f32 to vector<1x1xf32>
    %318 = arith.mulf %317, %305 : vector<1x1xf32>
    %319 = vector.broadcast %284 : f32 to vector<1x1xf32>
    %320 = arith.addf %318, %319 : vector<1x1xf32>
    %321 = arith.addf %303, %304 : vector<1x1xf32>
    %322 = vector.broadcast %284 : f32 to vector<1x1xf32>
    %323 = arith.addf %321, %322 : vector<1x1xf32>
    %324 = tpu.reciprocal %323 : vector<1x1xf32> -> vector<1x1xf32>
    %325 = arith.mulf %320, %324 : vector<1x1xf32>
    %326 = arith.mulf %316, %325 : vector<1x1xf32>
    %327 = vector.shape_cast %326 : vector<1x1xf32> to vector<1x1x1xf32>
    %cst_88 = arith.constant dense<0.000000e+00> : vector<1xf32>
    %328 = vector.multi_reduction <add>, %327, %cst_88 [1, 2] : vector<1x1x1xf32> to vector<1xf32>
    %329 = vector.shape_cast %328 : vector<1xf32> to vector<1x1x1xf32>
    %330 = vector.extract %329[0, 0, 0] : f32 from vector<1x1x1xf32>
    %331 = vector.shape_cast %316 : vector<1x1xf32> to vector<1x1x1xf32>
    %cst_89 = arith.constant dense<0.000000e+00> : vector<1xf32>
    %332 = vector.multi_reduction <add>, %331, %cst_89 [1, 2] : vector<1x1x1xf32> to vector<1xf32>
    %333 = vector.shape_cast %332 : vector<1xf32> to vector<1x1x1xf32>
    %334 = vector.extract %333[0, 0, 0] : f32 from vector<1x1x1xf32>
    %c0_i32 = arith.constant 0 : i32
    %335 = arith.cmpi eq, %arg0, %c0_i32 : i32
    %cst_90 = arith.constant 1.000000e+00 : f32
    %cst_91 = arith.constant 0.000000e+00 : f32
    %336 = arith.select %335, %cst_90, %cst_91 : f32
    %c0_92 = arith.constant 0 : index
    %c0_93 = arith.constant 0 : index
    %337 = vector.load %arg22[%c0_92, %c0_93] : memref<8x128xf32, #tpu.memory_space<vmem>>, vector<8x128xf32>
    %c0_94 = arith.constant 0 : index
    %c0_95 = arith.constant 0 : index
    %338 = vector.load %arg23[%c0_94, %c0_95] : memref<8x128xf32, #tpu.memory_space<vmem>>, vector<8x128xf32>
    %c0_96 = arith.constant 0 : index
    %c0_97 = arith.constant 0 : index
    %339 = vector.load %arg24[%c0_96, %c0_97] : memref<8x128xf32, #tpu.memory_space<vmem>>, vector<8x128xf32>
    %c0_98 = arith.constant 0 : index
    %c0_99 = arith.constant 0 : index
    %340 = vector.load %arg25[%c0_98, %c0_99] : memref<8x128xf32, #tpu.memory_space<vmem>>, vector<8x128xf32>
    %cst_100 = arith.constant 9.99999996E-13 : f32
    %341 = vector.broadcast %cst_100 : f32 to vector<8x128xf32>
    %342 = arith.addf %337, %341 : vector<8x128xf32>
    %343 = math.log %342 : vector<8x128xf32>
    %344 = arith.mulf %337, %343 : vector<8x128xf32>
    %345 = vector.shape_cast %344 : vector<8x128xf32> to vector<1x8x128xf32>
    %cst_101 = arith.constant dense<0.000000e+00> : vector<1xf32>
    %346 = vector.multi_reduction <add>, %345, %cst_101 [1, 2] : vector<1x8x128xf32> to vector<1xf32>
    %347 = vector.shape_cast %346 : vector<1xf32> to vector<1x1x1xf32>
    %348 = vector.extract %347[0, 0, 0] : f32 from vector<1x1x1xf32>
    %349 = arith.mulf %336, %348 : f32
    %cst_102 = arith.constant 9.99999996E-13 : f32
    %350 = vector.broadcast %cst_102 : f32 to vector<8x128xf32>
    %351 = arith.addf %338, %350 : vector<8x128xf32>
    %352 = math.log %351 : vector<8x128xf32>
    %353 = arith.mulf %338, %352 : vector<8x128xf32>
    %354 = vector.shape_cast %353 : vector<8x128xf32> to vector<1x8x128xf32>
    %cst_103 = arith.constant dense<0.000000e+00> : vector<1xf32>
    %355 = vector.multi_reduction <add>, %354, %cst_103 [1, 2] : vector<1x8x128xf32> to vector<1xf32>
    %356 = vector.shape_cast %355 : vector<1xf32> to vector<1x1x1xf32>
    %357 = vector.extract %356[0, 0, 0] : f32 from vector<1x1x1xf32>
    %358 = arith.mulf %336, %357 : f32
    %359 = arith.mulf %339, %339 : vector<8x128xf32>
    %360 = vector.shape_cast %359 : vector<8x128xf32> to vector<1x8x128xf32>
    %cst_104 = arith.constant dense<0.000000e+00> : vector<1xf32>
    %361 = vector.multi_reduction <add>, %360, %cst_104 [1, 2] : vector<1x8x128xf32> to vector<1xf32>
    %362 = vector.shape_cast %361 : vector<1xf32> to vector<1x1x1xf32>
    %363 = vector.extract %362[0, 0, 0] : f32 from vector<1x1x1xf32>
    %364 = arith.mulf %336, %363 : f32
    %365 = arith.mulf %340, %340 : vector<8x128xf32>
    %366 = vector.shape_cast %365 : vector<8x128xf32> to vector<1x8x128xf32>
    %cst_105 = arith.constant dense<0.000000e+00> : vector<1xf32>
    %367 = vector.multi_reduction <add>, %366, %cst_105 [1, 2] : vector<1x8x128xf32> to vector<1xf32>
    %368 = vector.shape_cast %367 : vector<1xf32> to vector<1x1x1xf32>
    %369 = vector.extract %368[0, 0, 0] : f32 from vector<1x1x1xf32>
    %370 = arith.mulf %336, %369 : f32
    %371 = tpu.iota {dimensions = array<i32: 0>} : vector<8x128xi32>
    %372 = tpu.iota {dimensions = array<i32: 1>} : vector<8x128xi32>
    %cst_106 = arith.constant 0.000000e+00 : f32
    %373 = vector.broadcast %cst_106 : f32 to vector<8x128xf32>
    %c0_i32_107 = arith.constant 0 : i32
    %374 = vector.broadcast %c0_i32_107 : i32 to vector<8x128xi32>
    %375 = arith.cmpi eq, %371, %374 : vector<8x128xi32>
    %c10_i32 = arith.constant 10 : i32
    %376 = vector.broadcast %c10_i32 : i32 to vector<8x128xi32>
    %377 = arith.cmpi eq, %372, %376 : vector<8x128xi32>
    %378 = arith.andi %375, %377 : vector<8x128xi1>
    %379 = vector.broadcast %9 : f32 to vector<8x128xf32>
    %380 = arith.select %378, %379, %373 : vector<8x128xi1>, vector<8x128xf32>
    %c0_i32_108 = arith.constant 0 : i32
    %381 = vector.broadcast %c0_i32_108 : i32 to vector<8x128xi32>
    %382 = arith.cmpi eq, %371, %381 : vector<8x128xi32>
    %c0_i32_109 = arith.constant 0 : i32
    %383 = vector.broadcast %c0_i32_109 : i32 to vector<8x128xi32>
    %384 = arith.cmpi eq, %372, %383 : vector<8x128xi32>
    %385 = arith.andi %382, %384 : vector<8x128xi1>
    %386 = vector.broadcast %62 : f32 to vector<8x128xf32>
    %387 = arith.select %385, %386, %380 : vector<8x128xi1>, vector<8x128xf32>
    %c0_i32_110 = arith.constant 0 : i32
    %388 = vector.broadcast %c0_i32_110 : i32 to vector<8x128xi32>
    %389 = arith.cmpi eq, %371, %388 : vector<8x128xi32>
    %c5_i32 = arith.constant 5 : i32
    %390 = vector.broadcast %c5_i32 : i32 to vector<8x128xi32>
    %391 = arith.cmpi eq, %372, %390 : vector<8x128xi32>
    %392 = arith.andi %389, %391 : vector<8x128xi1>
    %393 = vector.broadcast %66 : f32 to vector<8x128xf32>
    %394 = arith.select %392, %393, %387 : vector<8x128xi1>, vector<8x128xf32>
    %c0_i32_111 = arith.constant 0 : i32
    %395 = vector.broadcast %c0_i32_111 : i32 to vector<8x128xi32>
    %396 = arith.cmpi eq, %371, %395 : vector<8x128xi32>
    %c1_i32 = arith.constant 1 : i32
    %397 = vector.broadcast %c1_i32 : i32 to vector<8x128xi32>
    %398 = arith.cmpi eq, %372, %397 : vector<8x128xi32>
    %399 = arith.andi %396, %398 : vector<8x128xi1>
    %400 = vector.broadcast %129 : f32 to vector<8x128xf32>
    %401 = arith.select %399, %400, %394 : vector<8x128xi1>, vector<8x128xf32>
    %c0_i32_112 = arith.constant 0 : i32
    %402 = vector.broadcast %c0_i32_112 : i32 to vector<8x128xi32>
    %403 = arith.cmpi eq, %371, %402 : vector<8x128xi32>
    %c6_i32 = arith.constant 6 : i32
    %404 = vector.broadcast %c6_i32 : i32 to vector<8x128xi32>
    %405 = arith.cmpi eq, %372, %404 : vector<8x128xi32>
    %406 = arith.andi %403, %405 : vector<8x128xi1>
    %407 = vector.broadcast %133 : f32 to vector<8x128xf32>
    %408 = arith.select %406, %407, %401 : vector<8x128xi1>, vector<8x128xf32>
    %c0_i32_113 = arith.constant 0 : i32
    %409 = vector.broadcast %c0_i32_113 : i32 to vector<8x128xi32>
    %410 = arith.cmpi eq, %371, %409 : vector<8x128xi32>
    %c2_i32 = arith.constant 2 : i32
    %411 = vector.broadcast %c2_i32 : i32 to vector<8x128xi32>
    %412 = arith.cmpi eq, %372, %411 : vector<8x128xi32>
    %413 = arith.andi %410, %412 : vector<8x128xi1>
    %414 = vector.broadcast %196 : f32 to vector<8x128xf32>
    %415 = arith.select %413, %414, %408 : vector<8x128xi1>, vector<8x128xf32>
    %c0_i32_114 = arith.constant 0 : i32
    %416 = vector.broadcast %c0_i32_114 : i32 to vector<8x128xi32>
    %417 = arith.cmpi eq, %371, %416 : vector<8x128xi32>
    %c7_i32 = arith.constant 7 : i32
    %418 = vector.broadcast %c7_i32 : i32 to vector<8x128xi32>
    %419 = arith.cmpi eq, %372, %418 : vector<8x128xi32>
    %420 = arith.andi %417, %419 : vector<8x128xi1>
    %421 = vector.broadcast %200 : f32 to vector<8x128xf32>
    %422 = arith.select %420, %421, %415 : vector<8x128xi1>, vector<8x128xf32>
    %c0_i32_115 = arith.constant 0 : i32
    %423 = vector.broadcast %c0_i32_115 : i32 to vector<8x128xi32>
    %424 = arith.cmpi eq, %371, %423 : vector<8x128xi32>
    %c3_i32 = arith.constant 3 : i32
    %425 = vector.broadcast %c3_i32 : i32 to vector<8x128xi32>
    %426 = arith.cmpi eq, %372, %425 : vector<8x128xi32>
    %427 = arith.andi %424, %426 : vector<8x128xi1>
    %428 = vector.broadcast %263 : f32 to vector<8x128xf32>
    %429 = arith.select %427, %428, %422 : vector<8x128xi1>, vector<8x128xf32>
    %c0_i32_116 = arith.constant 0 : i32
    %430 = vector.broadcast %c0_i32_116 : i32 to vector<8x128xi32>
    %431 = arith.cmpi eq, %371, %430 : vector<8x128xi32>
    %c8_i32 = arith.constant 8 : i32
    %432 = vector.broadcast %c8_i32 : i32 to vector<8x128xi32>
    %433 = arith.cmpi eq, %372, %432 : vector<8x128xi32>
    %434 = arith.andi %431, %433 : vector<8x128xi1>
    %435 = vector.broadcast %267 : f32 to vector<8x128xf32>
    %436 = arith.select %434, %435, %429 : vector<8x128xi1>, vector<8x128xf32>
    %c0_i32_117 = arith.constant 0 : i32
    %437 = vector.broadcast %c0_i32_117 : i32 to vector<8x128xi32>
    %438 = arith.cmpi eq, %371, %437 : vector<8x128xi32>
    %c4_i32 = arith.constant 4 : i32
    %439 = vector.broadcast %c4_i32 : i32 to vector<8x128xi32>
    %440 = arith.cmpi eq, %372, %439 : vector<8x128xi32>
    %441 = arith.andi %438, %440 : vector<8x128xi1>
    %442 = vector.broadcast %330 : f32 to vector<8x128xf32>
    %443 = arith.select %441, %442, %436 : vector<8x128xi1>, vector<8x128xf32>
    %c0_i32_118 = arith.constant 0 : i32
    %444 = vector.broadcast %c0_i32_118 : i32 to vector<8x128xi32>
    %445 = arith.cmpi eq, %371, %444 : vector<8x128xi32>
    %c9_i32 = arith.constant 9 : i32
    %446 = vector.broadcast %c9_i32 : i32 to vector<8x128xi32>
    %447 = arith.cmpi eq, %372, %446 : vector<8x128xi32>
    %448 = arith.andi %445, %447 : vector<8x128xi1>
    %449 = vector.broadcast %334 : f32 to vector<8x128xf32>
    %450 = arith.select %448, %449, %443 : vector<8x128xi1>, vector<8x128xf32>
    %c0_i32_119 = arith.constant 0 : i32
    %451 = vector.broadcast %c0_i32_119 : i32 to vector<8x128xi32>
    %452 = arith.cmpi eq, %371, %451 : vector<8x128xi32>
    %c11_i32 = arith.constant 11 : i32
    %453 = vector.broadcast %c11_i32 : i32 to vector<8x128xi32>
    %454 = arith.cmpi eq, %372, %453 : vector<8x128xi32>
    %455 = arith.andi %452, %454 : vector<8x128xi1>
    %456 = vector.broadcast %349 : f32 to vector<8x128xf32>
    %457 = arith.select %455, %456, %450 : vector<8x128xi1>, vector<8x128xf32>
    %c0_i32_120 = arith.constant 0 : i32
    %458 = vector.broadcast %c0_i32_120 : i32 to vector<8x128xi32>
    %459 = arith.cmpi eq, %371, %458 : vector<8x128xi32>
    %c12_i32 = arith.constant 12 : i32
    %460 = vector.broadcast %c12_i32 : i32 to vector<8x128xi32>
    %461 = arith.cmpi eq, %372, %460 : vector<8x128xi32>
    %462 = arith.andi %459, %461 : vector<8x128xi1>
    %463 = vector.broadcast %358 : f32 to vector<8x128xf32>
    %464 = arith.select %462, %463, %457 : vector<8x128xi1>, vector<8x128xf32>
    %c0_i32_121 = arith.constant 0 : i32
    %465 = vector.broadcast %c0_i32_121 : i32 to vector<8x128xi32>
    %466 = arith.cmpi eq, %371, %465 : vector<8x128xi32>
    %c13_i32 = arith.constant 13 : i32
    %467 = vector.broadcast %c13_i32 : i32 to vector<8x128xi32>
    %468 = arith.cmpi eq, %372, %467 : vector<8x128xi32>
    %469 = arith.andi %466, %468 : vector<8x128xi1>
    %470 = vector.broadcast %364 : f32 to vector<8x128xf32>
    %471 = arith.select %469, %470, %464 : vector<8x128xi1>, vector<8x128xf32>
    %c0_i32_122 = arith.constant 0 : i32
    %472 = vector.broadcast %c0_i32_122 : i32 to vector<8x128xi32>
    %473 = arith.cmpi eq, %371, %472 : vector<8x128xi32>
    %c14_i32 = arith.constant 14 : i32
    %474 = vector.broadcast %c14_i32 : i32 to vector<8x128xi32>
    %475 = arith.cmpi eq, %372, %474 : vector<8x128xi32>
    %476 = arith.andi %473, %475 : vector<8x128xi1>
    %477 = vector.broadcast %370 : f32 to vector<8x128xf32>
    %478 = arith.select %476, %477, %471 : vector<8x128xi1>, vector<8x128xf32>
    %c0_123 = arith.constant 0 : index
    %c0_124 = arith.constant 0 : index
    %c0_125 = arith.constant 0 : index
    %479 = vector.load %arg26[%c0_123, %c0_124, %c0_125] : memref<1x8x128xf32, #tpu.memory_space<vmem>>, vector<1x8x128xf32>
    %480 = vector.shape_cast %479 : vector<1x8x128xf32> to vector<8x128xf32>
    %481 = vector.shape_cast %478 : vector<8x128xf32> to vector<1x8x128xf32>
    tpu.vector_store %arg26[%c0_123, %c0_124, %c0_125], %481 {strides = array<i32>} : memref<1x8x128xf32, #tpu.memory_space<vmem>>, vector<1x8x128xf32>,
    return
  }
  func.func @transform_0(%arg0: i32, %arg1: memref<5xi32, #tpu.memory_space<smem>>) -> (i32, i32, i32) {
    %c0_i32 = arith.constant 0 : i32
    %c0_i32_0 = arith.constant 0 : i32
    %c0_i32_1 = arith.constant 0 : i32
    return %arg0, %c0_i32, %c0_i32_0 : i32, i32, i32
  }
  func.func @transform_1(%arg0: i32, %arg1: memref<5xi32, #tpu.memory_space<smem>>) -> (i32, i32, i32) {
    %c0_i32 = arith.constant 0 : i32
    %c0_i32_0 = arith.constant 0 : i32
    %c0_i32_1 = arith.constant 0 : i32
    return %arg0, %c0_i32, %c0_i32_0 : i32, i32, i32
  }
  func.func @transform_2(%arg0: i32, %arg1: memref<5xi32, #tpu.memory_space<smem>>) -> (i32, i32) {
    %c0_i32 = arith.constant 0 : i32
    %c0_i32_0 = arith.constant 0 : i32
    %c0_i32_1 = arith.constant 0 : i32
    return %c0_i32, %c0_i32_0 : i32, i32
  }
  func.func @transform_3(%arg0: i32, %arg1: memref<5xi32, #tpu.memory_space<smem>>) -> (i32, i32) {
    %c0_i32 = arith.constant 0 : i32
    %c0_i32_0 = arith.constant 0 : i32
    %c0_i32_1 = arith.constant 0 : i32
    return %c0_i32, %c0_i32_0 : i32, i32
  }
  func.func @transform_4(%arg0: i32, %arg1: memref<5xi32, #tpu.memory_space<smem>>) -> (i32, i32) {
    %c0_i32 = arith.constant 0 : i32
    %c0_i32_0 = arith.constant 0 : i32
    %c0_i32_1 = arith.constant 0 : i32
    return %c0_i32, %c0_i32_0 : i32, i32
  }
  func.func @transform_5(%arg0: i32, %arg1: memref<5xi32, #tpu.memory_space<smem>>) -> (i32, i32) {
    %c0_i32 = arith.constant 0 : i32
    %c0_i32_0 = arith.constant 0 : i32
    %c0_i32_1 = arith.constant 0 : i32
    return %c0_i32, %c0_i32_0 : i32, i32
  }
  func.func @transform_6(%arg0: i32, %arg1: memref<5xi32, #tpu.memory_space<smem>>) -> (i32, i32) {
    %c0_i32 = arith.constant 0 : i32
    %c0_i32_0 = arith.constant 0 : i32
    %c0_i32_1 = arith.constant 0 : i32
    return %c0_i32, %c0_i32_0 : i32, i32
  }
  func.func @transform_7(%arg0: i32, %arg1: memref<5xi32, #tpu.memory_space<smem>>) -> (i32, i32) {
    %c0_i32 = arith.constant 0 : i32
    %c0_i32_0 = arith.constant 0 : i32
    %c0_i32_1 = arith.constant 0 : i32
    return %c0_i32, %c0_i32_0 : i32, i32
  }
  func.func @transform_8(%arg0: i32, %arg1: memref<5xi32, #tpu.memory_space<smem>>) -> (i32, i32) {
    %c0_i32 = arith.constant 0 : i32
    %c0_i32_0 = arith.constant 0 : i32
    %c0_i32_1 = arith.constant 0 : i32
    return %c0_i32, %c0_i32_0 : i32, i32
  }
  func.func @transform_9(%arg0: i32, %arg1: memref<5xi32, #tpu.memory_space<smem>>) -> (i32, i32) {
    %c0_i32 = arith.constant 0 : i32
    %c0_i32_0 = arith.constant 0 : i32
    %c0_i32_1 = arith.constant 0 : i32
    return %c0_i32, %c0_i32_0 : i32, i32
  }
  func.func @transform_10(%arg0: i32, %arg1: memref<5xi32, #tpu.memory_space<smem>>) -> (i32, i32) {
    %c0_i32 = arith.constant 0 : i32
    %c0_i32_0 = arith.constant 0 : i32
    %c0_i32_1 = arith.constant 0 : i32
    return %c0_i32, %c0_i32_0 : i32, i32
  }
  func.func @transform_11(%arg0: i32, %arg1: memref<5xi32, #tpu.memory_space<smem>>) -> (i32, i32) {
    %c0_i32 = arith.constant 0 : i32
    %c0_i32_0 = arith.constant 0 : i32
    %c0_i32_1 = arith.constant 0 : i32
    return %c0_i32, %c0_i32_0 : i32, i32
  }
  func.func @transform_12(%arg0: i32, %arg1: memref<5xi32, #tpu.memory_space<smem>>) -> (i32, i32) {
    %c0_i32 = arith.constant 0 : i32
    %c0_i32_0 = arith.constant 0 : i32
    %c0_i32_1 = arith.constant 0 : i32
    return %c0_i32, %c0_i32_0 : i32, i32
  }
  func.func @transform_13(%arg0: i32, %arg1: memref<5xi32, #tpu.memory_space<smem>>) -> (i32, i32) {
    %c0_i32 = arith.constant 0 : i32
    %c0_i32_0 = arith.constant 0 : i32
    %c0_i32_1 = arith.constant 0 : i32
    return %c0_i32, %c0_i32_0 : i32, i32
  }
  func.func @transform_14(%arg0: i32, %arg1: memref<5xi32, #tpu.memory_space<smem>>) -> (i32, i32) {
    %c0_i32 = arith.constant 0 : i32
    %c0_i32_0 = arith.constant 0 : i32
    %c0_i32_1 = arith.constant 0 : i32
    return %c0_i32, %c0_i32_0 : i32, i32
  }
  func.func @transform_15(%arg0: i32, %arg1: memref<5xi32, #tpu.memory_space<smem>>) -> (i32, i32) {
    %c0_i32 = arith.constant 0 : i32
    %c0_i32_0 = arith.constant 0 : i32
    %c0_i32_1 = arith.constant 0 : i32
    return %c0_i32, %c0_i32_0 : i32, i32
  }
  func.func @transform_16(%arg0: i32, %arg1: memref<5xi32, #tpu.memory_space<smem>>) -> (i32, i32) {
    %c0_i32 = arith.constant 0 : i32
    %c0_i32_0 = arith.constant 0 : i32
    %c0_i32_1 = arith.constant 0 : i32
    return %c0_i32, %c0_i32_0 : i32, i32
  }
  func.func @transform_17(%arg0: i32, %arg1: memref<5xi32, #tpu.memory_space<smem>>) -> (i32, i32) {
    %c0_i32 = arith.constant 0 : i32
    %c0_i32_0 = arith.constant 0 : i32
    %c0_i32_1 = arith.constant 0 : i32
    return %c0_i32, %c0_i32_0 : i32, i32
  }
  func.func @transform_18(%arg0: i32, %arg1: memref<5xi32, #tpu.memory_space<smem>>) -> (i32, i32) {
    %c0_i32 = arith.constant 0 : i32
    %c0_i32_0 = arith.constant 0 : i32
    %c0_i32_1 = arith.constant 0 : i32
    return %c0_i32, %c0_i32_0 : i32, i32
  }
  func.func @transform_19(%arg0: i32, %arg1: memref<5xi32, #tpu.memory_space<smem>>) -> (i32, i32) {
    %c0_i32 = arith.constant 0 : i32
    %c0_i32_0 = arith.constant 0 : i32
    %c0_i32_1 = arith.constant 0 : i32
    return %c0_i32, %c0_i32_0 : i32, i32
  }
  func.func @transform_20(%arg0: i32, %arg1: memref<5xi32, #tpu.memory_space<smem>>) -> (i32, i32) {
    %c0_i32 = arith.constant 0 : i32
    %c0_i32_0 = arith.constant 0 : i32
    %c0_i32_1 = arith.constant 0 : i32
    return %c0_i32, %c0_i32_0 : i32, i32
  }
  func.func @transform_21(%arg0: i32, %arg1: memref<5xi32, #tpu.memory_space<smem>>) -> (i32, i32) {
    %c0_i32 = arith.constant 0 : i32
    %c0_i32_0 = arith.constant 0 : i32
    %c0_i32_1 = arith.constant 0 : i32
    return %c0_i32, %c0_i32_0 : i32, i32
  }
  func.func @transform_22(%arg0: i32, %arg1: memref<5xi32, #tpu.memory_space<smem>>) -> (i32, i32) {
    %c0_i32 = arith.constant 0 : i32
    %c0_i32_0 = arith.constant 0 : i32
    %c0_i32_1 = arith.constant 0 : i32
    return %c0_i32, %c0_i32_0 : i32, i32
  }
  func.func @transform_23(%arg0: i32, %arg1: memref<5xi32, #tpu.memory_space<smem>>) -> (i32, i32) {
    %c0_i32 = arith.constant 0 : i32
    %c0_i32_0 = arith.constant 0 : i32
    %c0_i32_1 = arith.constant 0 : i32
    return %c0_i32, %c0_i32_0 : i32, i32
  }
  func.func @transform_24(%arg0: i32, %arg1: memref<5xi32, #tpu.memory_space<smem>>) -> (i32, i32, i32) {
    %c0_i32 = arith.constant 0 : i32
    %c0_i32_0 = arith.constant 0 : i32
    %c0_i32_1 = arith.constant 0 : i32
    return %arg0, %c0_i32, %c0_i32_0 : i32, i32, i32
  }
}

</mosaic_0001>

<bundles_post_ra>
// kernel: tpu_custom_call.1
= control target key start
LH: loop header
LB: loop body
LE: loop exit
PB: predicated region body
PF: predicated region fallthrough
CT: control target
= control target key end

     0   :  { %s5650_s0 = inlined_call_operand.hbm [shape: s32[5], index: 0, kind: input, shape index: {}]   ;;  %s5651_s1 = inlined_call_operand.hbm [shape: f32[6,32,32], index: 1, kind: input, shape index: {}]   ;;  %s5652_s2 = inlined_call_operand.vmem [shape: f32[6,32,32], index: 2, kind: input, shape index: {}]   ;;  %s5653_s3 = inlined_call_operand.hbm [shape: f32[22,32], index: 3, kind: input, shape index: {}]   ;;  %s5654_s4 = inlined_call_operand.hbm [shape: f32[6,16], index: 4, kind: input, shape index: {}]   ;;  %s5655_s5 = inlined_call_operand.hbm [shape: f32[1,8], index: 5, kind: input, shape index: {}]   ;;  %s5656_s6 = inlined_call_operand.hbm [shape: f32[1,4], index: 6, kind: input, shape index: {}]   ;;  %s5657_s7 = inlined_call_operand.hbm [shape: f32[1,2], index: 7, kind: input, shape index: {}]   ;;  %s5658_s8 = inlined_call_operand.vmem [shape: f32[32,22], index: 8, kind: input, shape index: {}]   ;;  %s5659_s9 = inlined_call_operand.vmem [shape: f32[16,6], index: 9, kind: input, shape index: {}]   ;;  %s5660_s10 = inlined_call_operand.vmem [shape: f32[8,1], index: 10, kind: input, shape index: {}]   ;;  %s5661_s11 = inlined_call_operand.vmem [shape: f32[4,1], index: 11, kind: input, shape index: {}]   ;;  %s5662_s12 = inlined_call_operand.vmem [shape: f32[2,1], index: 12, kind: input, shape index: {}]   ;;  %s5663_s13 = inlined_call_operand.hbm [shape: f32[16,32], index: 13, kind: input, shape index: {}]   ;;  %s5664_s14 = inlined_call_operand.hbm [shape: f32[8,16], index: 14, kind: input, shape index: {}]   ;;  %s5665_s15 = inlined_call_operand.hbm [shape: f32[4,8], index: 15, kind: input, shape index: {}]   ;;  %s5666_s16 = inlined_call_operand.hbm [shape: f32[2,4], index: 16, kind: input, shape index: {}]   ;;  %s5667_s17 = inlined_call_operand.vmem [shape: f32[32,16], index: 17, kind: input, shape index: {}]   ;;  %s5668_s18 = inlined_call_operand.vmem [shape: f32[16,8], index: 18, kind: input, shape index: {}]   ;;  %s5669_s19 = inlined_call_operand.vmem [shape: f32[8,4], index: 19, kind: input, shape index: {}]   ;;  %s5670_s20 = inlined_call_operand.vmem [shape: f32[4,2], index: 20, kind: input, shape index: {}]   ;;  %s5671_s21 = inlined_call_operand.vmem [shape: f32[8,128], index: 21, kind: input, shape index: {}]   ;;  %s5672_s22 = inlined_call_operand.vmem [shape: f32[8,128], index: 22, kind: input, shape index: {}]   ;;  %s5673_s23 = inlined_call_operand.vmem [shape: f32[8,128], index: 23, kind: input, shape index: {}]   ;;  %s5674_s24 = inlined_call_operand.vmem [shape: f32[8,128], index: 24, kind: input, shape index: {}]   ;;  %s5675_s25 = inlined_call_operand.hbm [shape: f32[6,8,128], index: 25, kind: output, shape index: {}]  }
   0x1   :  { %5696 = sst [smem:[#allocation30_spill]] %s5650_s0 }
   0x2   :  { %5697 = sst [smem:[#allocation31_spill]] %s5651_s1 }
   0x3   :  { %5698 = sst [smem:[#allocation32_spill]] %s5652_s2 }
   0x4   :  { %5699 = sst [smem:[#allocation33_spill]] %s5653_s3 }
   0x5   :  { %5700 = sst [smem:[#allocation34_spill]] %s5654_s4 }
   0x6   :  { %5701 = sst [smem:[#allocation35_spill]] %s5655_s5 }
   0x7   :  { %5702 = sst [smem:[#allocation36_spill]] %s5656_s6  ;;  %s5718_s6 = sld [smem:[#allocation30_spill]] }
   0x8   :  { %5703 = sst [smem:[#allocation37_spill]] %s5657_s7 }
   0x9   :  { %5704 = sst [smem:[#allocation38_spill]] %s5658_s8 }
   0xa   :  { %5705 = sst [smem:[#allocation39_spill]] %s5659_s9 }
   0xb   :  { %5706 = sst [smem:[#allocation40_spill]] %s5661_s11 }
   0xc   :  { %5707 = sst [smem:[#allocation41_spill]] %s5662_s12 }
   0xd   :  { %5708 = sst [smem:[#allocation42_spill]] %s5663_s13  ;;  %s4153_s12 = scalar_lea.hbm %s5718_s6, 16 }
   0xe   :  { %5709 = sst [smem:[#allocation43_spill]] %s5664_s14  ;;  %p4154_p0 = scmp.ne.s32.totalorder %s5718_s6, %s4153_s12 }
   0xf   :  { %5710 = sst [smem:[#allocation44_spill]] %s5665_s15  ;;  %p4157_p1 = scmp.lt.u32.totalorder %s4153_s12, %s5718_s6 }
  0x10   :  { %5711 = sst [smem:[#allocation45_spill]] %s5669_s19 }
  0x11   :  { %5712 = sst [smem:[#allocation46_spill]] %s5670_s20  ;;  %p4159_p2 = pnand %p4157_p1, %p4154_p0 }
  0x12   :  { %5713 = sst [smem:[#allocation47_spill]] %s5671_s21 }
  0x13   :  { %5714 = sst [smem:[#allocation48_spill]] %s5672_s22 }
  0x14   :  { %5715 = sst [smem:[#allocation49_spill]] %s5673_s23 }
  0x15   :  { %5716 = sst [smem:[#allocation50_spill]] %s5674_s24 }
  0x16   :  { %5717 = sst [smem:[#allocation51_spill]] %s5675_s25 }
  0x17   :  { %4162 = shalt.err (!%p4159_p2)  }
  0x18   :  { %s4535_s1 = smov [#allocation3]  }
  0x19   :  { %31 = dma.hbm_to_smem %s5718_s6, 16, %s4535_s1, [#allocation2] }
  0x1a   :  { %4489 = dma.done.wait [#allocation2], 16 }
  0x1b   :  { %4490 = vsyncadd [#allocation2], 4294967280 }
  0x1c   :  { %33 = sfence }
  0x1d   :  { %34 = vsyncpa [#allocation5], 0 }
  0x1e   :  { %36 = vsyncpa [#allocation5 + $0x1], 0 }
  0x1f   :  { %37 = vsyncpa [#allocation8], 0 }
  0x20   :  { %38 = vsyncpa [#allocation11], 0 }
  0x21   :  { %39 = vsyncpa [#allocation14], 0 }
  0x22   :  { %40 = vsyncpa [#allocation17], 0 }
  0x23   :  { %41 = vsyncpa [#allocation20], 0 }
  0x24   :  { %42 = vsyncpa [#allocation6], 0 }
  0x25   :  { %44 = vsyncpa [#allocation6 + $0x1], 0  ;;  %s4713_s12 = smov 0   ;;  %s4715_s4 = smov 0  }
  0x26   :  { %s4717_s28 = smov 0   ;;  %s4719_s9 = smov 0  }
  0x27 LB: > { %s4536_s5 = smov [#allocation7]   ;;  %s4734_s29 = sadd.s32 4294967295, %s4533_s9   ;;  %s4533_s9 = sphi %s4719_s9, %s5767_s9   ;;  %s4529_s28 = sphi %s4717_s28, %s5766_s28   ;;  %s4525_s4 = sphi %s4715_s4, %s5765_s4   ;;  %s4521_s12 = sphi %s4713_s12, %s5764_s12  }
  0x28   : > { %s607_s0 = sshll.u32 %s4536_s5, 4  ;;  %p3537_p3 = scmp.ge.s32.totalorder %s4533_s9, 1  ;;  %s4739_s0 = int_to_ptr.vmem [resolvable:$true] %s607_s0 }
  0x29   : > { %p5690_p4 = scmp.eq.s32.totalorder %s4734_s29, 0  ;;  %p595_p5 = scmp.lt.s32.totalorder %s4533_s9, 7 }
  0x2a   : > { %s4537_s6 = smov [#allocation10]   ;;  %s4538_s3 = smov [#allocation13]  }
  0x2b   : > { %p4741_p6 = pnand %p3537_p3, %p595_p5  ;;  %s632_s30 = sshll.u32 %s4537_s6, 4  ;;  %s4753_s30 = int_to_ptr.vmem [resolvable:$true] %s632_s30 }
  0x2c   : > { %s654_s26 = sshll.u32 %s4538_s3, 4  ;;  %s5721_s27 = sld [smem:[#allocation33_spill]]  ;;  %s4755_s26 = int_to_ptr.vmem [resolvable:$true] %s654_s26 }
  0x2d   : > { %s5719_s2 = scalar_select %p4741_p6, 1, 0 }
  0x2e   : > { %p3941_p7 = pneg %p4741_p6 }
  0x30   : > { %p4749_p8 = pnand %p3941_p7, %p5690_p4 }
  0x32   : > { %s4163_s5 = scalar_lea.hbm %s5721_s27, 384  ;;  %p4765_p10 = pneg %p4749_p8 }
  0x33   : > { %p4164_p9 = scmp.ne.s32.totalorder %s5721_s27, %s4163_s5  ;;  %p4170_p13 = scmp.lt.u32.totalorder %s4163_s5, %s5721_s27 }
  0x35   : > { %p4166_p11 = pnand %p4765_p10, %p4164_p9 }
  0x37   : > { %p4167_p12 = pneg %p4166_p11 }
  0x39   : > { %p4172_p0 = pnand %p4170_p13, %p4167_p12 }
  0x3b   : > { %4175 = shalt.err (!%p4172_p0)
}
  0x3c   : > { %s4176_s24 = scalar_lea.vmem %s4739_s0, 384  ;;  %p4184_p5 = scmp.lt.s32.totalorder %s4739_s0, %s4739_s0 }
  0x3d   : > { %p4177_p1 = scmp.ne.s32.totalorder %s4739_s0, %s4176_s24  ;;  %p4185_p7 = scmp.lt.s32.totalorder %s4176_s24, %s4176_s24 }
  0x3f   : > { %p4179_p2 = pnand %p4177_p1, %p4765_p10  ;;  %p4186_p9 = por %p4185_p7, %p4184_p5 }
  0x41   : > { %p4180_p3 = pneg %p4179_p2 }
  0x43   : > { %p4187_p11 = pnand %p4186_p9, %p4180_p3 }
  0x45   : > { %4190 = shalt.err (!%p4187_p11)
}
  0x46   : > { %s5686_s25 = smov 128   ;;  %s5688_s23 = smov 8  }
  0x47   : > { %3944 = dma.hbm_to_vmem [thread:$0]  (!%p4749_p8), %s5721_s27, 384, %s4739_s0, [#allocation8], %s5686_s25, %s5686_s25, %s5688_s23  }
  0x48   : > { %s5723_s22 = sld [smem:[#allocation35_spill]] }
  0x4e   : > { %s4191_s24 = scalar_lea.hbm %s5723_s22, 16 }
  0x4f   : > { %p4192_p12 = scmp.ne.s32.totalorder %s5723_s22, %s4191_s24  ;;  %p4198_p1 = scmp.lt.u32.totalorder %s4191_s24, %s5723_s22 }
  0x51   : > { %p4194_p13 = pnand %p4192_p12, %p4765_p10 }
  0x53   : > { %p4195_p0 = pneg %p4194_p13 }
  0x55   : > { %p4200_p2 = pnand %p4198_p1, %p4195_p0 }
  0x57   : > { %4203 = shalt.err (!%p4200_p2)
}
  0x58   : > { %s4204_s0 = scalar_lea.vmem %s4753_s30, 16  ;;  %s4211_s20 = scalar_lea.vmem %s4753_s30, 32 }
  0x59   : > { %p4205_p3 = scmp.ne.s32.totalorder %s4753_s30, %s4204_s0  ;;  %p4212_p9 = scmp.lt.s32.totalorder %s4753_s30, %s4753_s30 }
  0x5a   : > { %p4213_p11 = scmp.lt.s32.totalorder %s4211_s20, %s4204_s0 }
  0x5b   : > { %p4207_p5 = pnand %p4205_p3, %p4765_p10 }
  0x5c   : > { %p4214_p12 = por %p4213_p11, %p4212_p9 }
  0x5d   : > { %p4208_p7 = pneg %p4207_p5 }
  0x5f   : > { %p4215_p13 = pnand %p4214_p12, %p4208_p7 }
  0x61   : > { %4218 = shalt.err (!%p4215_p13)
}
  0x62   : > { %3950 = dma.hbm_to_vmem [thread:$0]  (!%p4749_p8), %s5723_s22, 16, %s4753_s30, [#allocation11]  }
  0x63   : > { %s5724_s8 = sld [smem:[#allocation37_spill]] }
  0x69   : > { %s4219_s5 = scalar_lea.hbm %s5724_s8, 16 }
  0x6a   : > { %p4220_p0 = scmp.ne.s32.totalorder %s5724_s8, %s4219_s5  ;;  %p4226_p3 = scmp.lt.u32.totalorder %s4219_s5, %s5724_s8 }
  0x6c   : > { %p4222_p1 = pnand %p4220_p0, %p4765_p10 }
  0x6e   : > { %p4223_p2 = pneg %p4222_p1 }
  0x70   : > { %p4228_p5 = pnand %p4226_p3, %p4223_p2 }
  0x72   : > { %4231 = shalt.err (!%p4228_p5)
}
  0x73   : > { %s4232_s30 = scalar_lea.vmem %s4755_s26, 16  ;;  %s4239_s11 = scalar_lea.vmem %s4755_s26, 32 }
  0x74   : > { %p4233_p7 = scmp.ne.s32.totalorder %s4755_s26, %s4232_s30  ;;  %p4240_p12 = scmp.lt.s32.totalorder %s4755_s26, %s4755_s26 }
  0x75   : > { %p4241_p13 = scmp.lt.s32.totalorder %s4239_s11, %s4232_s30 }
  0x76   : > { %p4235_p9 = pnand %p4233_p7, %p4765_p10 }
  0x77   : > { %p4242_p0 = por %p4241_p13, %p4240_p12 }
  0x78   : > { %p4236_p11 = pneg %p4235_p9 }
  0x7a   : > { %p4243_p1 = pnand %p4242_p0, %p4236_p11 }
  0x7c   : > { %4246 = shalt.err (!%p4243_p1)
}
  0x7d   : > { %3956 = dma.hbm_to_vmem [thread:$0]  (!%p4749_p8), %s5724_s8, 16, %s4755_s26, [#allocation14]  }
  0x7e   : > { %s4541_s1 = smov [#allocation16]   ;;  %s4542_s3 = smov [#allocation9]  }
  0x7f   : > { %s693_s5 = sshll.u32 %s4541_s1, 4  ;;  %s621_s24 = sshll.u32 %s4542_s3, 4  ;;  %s694_s5 = int_to_ptr.vmem [resolvable:$true] %s693_s5  ;;  %s622_s24 = int_to_ptr.vmem [resolvable:$true] %s621_s24 }
  0x80   : > { %s5725_s14 = sld [smem:[#allocation43_spill]] }
  0x86   : > { %s4247_s30 = scalar_lea.hbm %s5725_s14, 128 }
  0x87   : > { %p4248_p2 = scmp.ne.s32.totalorder %s5725_s14, %s4247_s30  ;;  %p4254_p7 = scmp.lt.u32.totalorder %s4247_s30, %s5725_s14 }
  0x89   : > { %p4250_p3 = pnand %p4248_p2, %p4765_p10 }
  0x8b   : > { %p4251_p5 = pneg %p4250_p3 }
  0x8d   : > { %p4256_p9 = pnand %p4254_p7, %p4251_p5 }
  0x8f   : > { %4259 = shalt.err (!%p4256_p9)
}
  0x90   : > { %s4260_s26 = scalar_lea.vmem %s694_s5, 128  ;;  %p4268_p0 = scmp.lt.s32.totalorder %s694_s5, %s694_s5 }
  0x91   : > { %p4261_p11 = scmp.ne.s32.totalorder %s694_s5, %s4260_s26  ;;  %p4269_p1 = scmp.lt.s32.totalorder %s4260_s26, %s4260_s26 }
  0x93   : > { %p4263_p12 = pnand %p4261_p11, %p4765_p10  ;;  %p4270_p4 = por %p4269_p1, %p4268_p0 }
  0x95   : > { %p4264_p13 = pneg %p4263_p12 }
  0x97   : > { %p4271_p6 = pnand %p4270_p4, %p4264_p13 }
  0x99   : > { %4274 = shalt.err (!%p4271_p6)
}
  0x9a   : > { %3962 = dma.hbm_to_vmem [thread:$0]  (!%p4749_p8), %s5725_s14, 128, %s694_s5, [#allocation17]  }
  0x9b   : > { %s5726_s3 = sld [smem:[#allocation34_spill]] }
  0xa1   : > { %s4275_s0 = scalar_lea.hbm %s5726_s3, 128 }
  0xa2   : > { %p4276_p2 = scmp.ne.s32.totalorder %s5726_s3, %s4275_s0  ;;  %p4282_p6 = scmp.lt.u32.totalorder %s4275_s0, %s5726_s3 }
  0xa4   : > { %p4278_p3 = pnand %p4276_p2, %p4765_p10 }
  0xa6   : > { %p4279_p4 = pneg %p4278_p3 }
  0xa8   : > { %p4284_p5 = pnand %p4282_p6, %p4279_p4 }
  0xaa   : > { %4287 = shalt.err (!%p4284_p5)
}
  0xab   : > { %s4288_s26 = scalar_lea.vmem %s622_s24, 128  ;;  %p4296_p12 = scmp.lt.s32.totalorder %s622_s24, %s622_s24 }
  0xac   : > { %p4289_p7 = scmp.ne.s32.totalorder %s622_s24, %s4288_s26  ;;  %p4297_p13 = scmp.lt.s32.totalorder %s4288_s26, %s4288_s26 }
  0xae   : > { %p4291_p9 = pnand %p4289_p7, %p4765_p10  ;;  %p4298_p0 = por %p4297_p13, %p4296_p12 }
  0xb0   : > { %p4292_p11 = pneg %p4291_p9 }
  0xb2   : > { %p4299_p1 = pnand %p4298_p0, %p4292_p11 }
  0xb4   : > { %4302 = shalt.err (!%p4299_p1)
}
  0xb5   : > { %3947 = dma.hbm_to_vmem [thread:$0]  (!%p4749_p8), %s5726_s3, 128, %s622_s24, [#allocation8]  }
  0xb6   : > { %s4543_s21 = smov [#allocation12]   ;;  %s4544_s1 = smov [#allocation15]  }
  0xb7   : > { %s643_s23 = sshll.u32 %s4543_s21, 4  ;;  %s679_s0 = sshll.u32 %s4544_s1, 4  ;;  %s644_s23 = int_to_ptr.vmem [resolvable:$true] %s643_s23  ;;  %s680_s0 = int_to_ptr.vmem [resolvable:$true] %s679_s0 }
  0xb8   : > { %s5727_s11 = sld [smem:[#allocation36_spill]] }
  0xbe   : > { %s4303_s19 = scalar_lea.hbm %s5727_s11, 16 }
  0xbf   : > { %p4304_p2 = scmp.ne.s32.totalorder %s5727_s11, %s4303_s19  ;;  %p4310_p6 = scmp.lt.u32.totalorder %s4303_s19, %s5727_s11 }
  0xc1   : > { %p4306_p3 = pnand %p4304_p2, %p4765_p10 }
  0xc3   : > { %p4307_p4 = pneg %p4306_p3 }
  0xc5   : > { %p4312_p5 = pnand %p4310_p6, %p4307_p4 }
  0xc7   : > { %4315 = shalt.err (!%p4312_p5)
}
  0xc8   : > { %s4316_s24 = scalar_lea.vmem %s644_s23, 16  ;;  %s4323_s25 = scalar_lea.vmem %s644_s23, 32 }
  0xc9   : > { %p4317_p7 = scmp.ne.s32.totalorder %s644_s23, %s4316_s24  ;;  %p4324_p12 = scmp.lt.s32.totalorder %s644_s23, %s644_s23 }
  0xca   : > { %p4325_p13 = scmp.lt.s32.totalorder %s4323_s25, %s4316_s24 }
  0xcb   : > { %p4319_p9 = pnand %p4317_p7, %p4765_p10 }
  0xcc   : > { %p4326_p0 = por %p4325_p13, %p4324_p12 }
  0xcd   : > { %p4320_p11 = pneg %p4319_p9 }
  0xcf   : > { %p4327_p1 = pnand %p4326_p0, %p4320_p11 }
  0xd1   : > { %4330 = shalt.err (!%p4327_p1)
}
  0xd2   : > { %3953 = dma.hbm_to_vmem [thread:$0]  (!%p4749_p8), %s5727_s11, 16, %s644_s23, [#allocation11]  }
  0xd3   : > { %s5728_s13 = sld [smem:[#allocation42_spill]] }
  0xd9   : > { %s4331_s20 = scalar_lea.hbm %s5728_s13, 256 }
  0xda   : > { %p4332_p2 = scmp.ne.s32.totalorder %s5728_s13, %s4331_s20  ;;  %p4338_p6 = scmp.lt.u32.totalorder %s4331_s20, %s5728_s13 }
  0xdc   : > { %p4334_p3 = pnand %p4332_p2, %p4765_p10 }
  0xde   : > { %p4335_p4 = pneg %p4334_p3 }
  0xe0   : > { %p4340_p5 = pnand %p4338_p6, %p4335_p4 }
  0xe2   : > { %4343 = shalt.err (!%p4340_p5)
}
  0xe3   : > { %s4344_s24 = scalar_lea.vmem %s680_s0, 256  ;;  %p4352_p12 = scmp.lt.s32.totalorder %s680_s0, %s680_s0 }
  0xe4   : > { %p4345_p7 = scmp.ne.s32.totalorder %s680_s0, %s4344_s24  ;;  %p4353_p13 = scmp.lt.s32.totalorder %s4344_s24, %s4344_s24 }
  0xe6   : > { %p4347_p9 = pnand %p4345_p7, %p4765_p10  ;;  %p4354_p0 = por %p4353_p13, %p4352_p12 }
  0xe8   : > { %p4348_p11 = pneg %p4347_p9 }
  0xea   : > { %p4355_p1 = pnand %p4354_p0, %p4348_p11 }
  0xec   : > { %4358 = shalt.err (!%p4355_p1)
}
  0xed   : > { %s5729_s23 = smov 8   ;;  %s5730_s25 = smov 128  }
  0xee   : > { %3959 = dma.hbm_to_vmem [thread:$0]  (!%p4749_p8), %s5728_s13, 256, %s680_s0, [#allocation14], %s5730_s25, %s5730_s25, %s5729_s23  }
  0xef   : > { %s4545_s14 = smov [#allocation18]   ;;  %s4546_s20 = smov [#allocation19]  }
  0xf0   : > { %s704_s1 = sshll.u32 %s4545_s14, 4  ;;  %s715_s30 = sshll.u32 %s4546_s20, 4  ;;  %s705_s1 = int_to_ptr.vmem [resolvable:$true] %s704_s1  ;;  %s716_s30 = int_to_ptr.vmem [resolvable:$true] %s715_s30 }
  0xf1   : > { %s5731_s15 = sld [smem:[#allocation44_spill]] }
  0xf7   : > { %s4359_s5 = scalar_lea.hbm %s5731_s15, 64 }
  0xf8   : > { %p4360_p2 = scmp.ne.s32.totalorder %s5731_s15, %s4359_s5  ;;  %p4366_p6 = scmp.lt.u32.totalorder %s4359_s5, %s5731_s15 }
  0xfa   : > { %p4362_p3 = pnand %p4360_p2, %p4765_p10 }
  0xfc   : > { %p4363_p4 = pneg %p4362_p3 }
  0xfe   : > { %p4368_p5 = pnand %p4366_p6, %p4363_p4 }
 0x100   : > { %4371 = shalt.err (!%p4368_p5)
}
 0x101   : > { %s4372_s0 = scalar_lea.vmem %s705_s1, 64  ;;  %p4380_p12 = scmp.lt.s32.totalorder %s705_s1, %s705_s1 }
 0x102   : > { %p4373_p7 = scmp.ne.s32.totalorder %s705_s1, %s4372_s0  ;;  %p4381_p13 = scmp.lt.s32.totalorder %s4372_s0, %s4372_s0 }
 0x104   : > { %p4375_p9 = pnand %p4373_p7, %p4765_p10  ;;  %p4382_p0 = por %p4381_p13, %p4380_p12 }
 0x106   : > { %p4376_p11 = pneg %p4375_p9 }
 0x108   : > { %p4383_p1 = pnand %p4382_p0, %p4376_p11 }
 0x10a   : > { %4386 = shalt.err (!%p4383_p1)
}
 0x10b   : > { %3965 = dma.hbm_to_vmem [thread:$0]  (!%p4749_p8), %s5731_s15, 64, %s705_s1, [#allocation17]  }
 0x10c   : > { %s4387_s20 = scalar_lea.hbm %s5666_s16, 32 }
 0x10d   : > { %p4388_p2 = scmp.ne.s32.totalorder %s5666_s16, %s4387_s20  ;;  %p4394_p6 = scmp.lt.u32.totalorder %s4387_s20, %s5666_s16 }
 0x10f   : > { %p4390_p3 = pnand %p4388_p2, %p4765_p10 }
 0x111   : > { %p4391_p4 = pneg %p4390_p3 }
 0x113   : > { %p4396_p5 = pnand %p4394_p6, %p4391_p4 }
 0x115   : > { %4399 = shalt.err (!%p4396_p5)
}
 0x116   : > { %s4400_s8 = scalar_lea.vmem %s716_s30, 32  ;;  %p4408_p12 = scmp.lt.s32.totalorder %s716_s30, %s716_s30 }
 0x117   : > { %p4401_p7 = scmp.ne.s32.totalorder %s716_s30, %s4400_s8  ;;  %p4409_p13 = scmp.lt.s32.totalorder %s4400_s8, %s4400_s8 }
 0x119   : > { %p4403_p9 = pnand %p4401_p7, %p4765_p10  ;;  %p4410_p0 = por %p4409_p13, %p4408_p12 }
 0x11b   : > { %p4404_p11 = pneg %p4403_p9 }
 0x11d   : > { %p4411_p1 = pnand %p4410_p0, %p4404_p11 }
 0x11f   : > { %4414 = shalt.err (!%p4411_p1)
}
 0x120   : > { %3968 = dma.hbm_to_vmem [thread:$0]  (!%p4749_p8), %s5666_s16, 32, %s716_s30, [#allocation20]  }
 0x121   : > { %s3536_s6 = sadd.s32 4294967294, %s4533_s9   ;;  %s4950_s7 = sadd.s32 1, %s4533_s9  }
 0x122   : > { %s57_s3 = sadd.s32 1, %s4529_s28  ;;  %s54_s21 = ssub.s32 %s4533_s9, %s4950_s7 }
 0x123   : > { %p64_p10 = scmp.ne.s32.totalorder %s4529_s28, %s4525_s4  ;;  %p55_p2 = scmp.eq.s32.totalorder %s54_s21, 0 }
 0x124   : > { %p65_p3 = scmp.eq.s32.totalorder %s4533_s9, 0  ;;  %p70_p4 = scmp.ne.s32.totalorder %s4525_s4, %s4521_s12 }
 0x125   : > { %p582_p6 = scmp.eq.s32.totalorder %s4734_s29, 5  ;;  %p5732_p7 = scmp.eq.s32.totalorder %s4734_s29, 0 }
 0x126   : > { %s4962_s11 = scalar_select %p55_p2, %s4529_s28, %s57_s3  }
 0x127   : > { %p66_p5 = por %p65_p3, %p64_p10  ;;  %p4966_p9 = por %p5732_p7, %p70_p4 }
 0x128   : > { %p4970_p8 = por %p582_p6, %p64_p10  ;;  %p588_p11 = scmp.eq.s32.totalorder %s3536_s6, 5 }
 0x129   : > { %p3986_p12 = scmp.lt.s32.totalorder %s4533_s9, 6  ;;  %s750_s20 = sand.u32 1, %s4529_s28  }
 0x12a   : > { %s5734_s30 = scalar_select %p4970_p8, 1, 0 }
 0x12b   : > { %p4976_p13 = por %p588_p11, %p70_p4  ;;  %s3548_s26 = sshll.u32 %s750_s20, 5 }
 0x12c   : > { %s3620_s5 = sshll.u32 %s4533_s9, 9  ;;  %s5736_s1 = sld [smem:[#allocation31_spill]] }
 0x12d   : > { %s5735_s19 = scalar_select %p4976_p13, 1, 0 }
 0x12e   : > { %s754_s3 = scalar_lea.vmem [#allocation4], %s3548_s26  ;;  %p4986_p0 = pnand %p3986_p12, %p66_p5 }
 0x12f   : > { %s761_s21 = sshll.u32 %s754_s3, 4  ;;  %s4992_s13 = scalar_lea.sflag [#allocation5], %s750_s20  ;;  %s4990_s21 = int_to_ptr.vmem [resolvable:$true] %s761_s21 }
 0x130   : > { %p4417_p10 = pneg %p4986_p0 }
 0x132   : > { %s4984_s0 = scalar_lea.hbm %s5736_s1, %s3620_s5  ;;  %s4420_s24 = scalar_lea.hbm %s5736_s1, 3072 }
 0x133   : > { %s4415_s15 = scalar_lea.hbm %s4984_s0, 512  ;;  %p4421_p4 = scmp.lt.u32.totalorder %s4984_s0, %s5736_s1 }
 0x134   : > { %p4416_p1 = scmp.ne.s32.totalorder %s4984_s0, %s4415_s15  ;;  %p4422_p6 = scmp.lt.u32.totalorder %s4420_s24, %s4415_s15 }
 0x135   : > { %p4424_p7 = scmp.lt.u32.totalorder %s4415_s15, %s4984_s0 }
 0x136   : > { %p4418_p2 = pnand %p4417_p10, %p4416_p1  ;;  %p4423_p5 = por %p4422_p6, %p4421_p4 }
 0x138   : > { %p4419_p3 = pneg %p4418_p2  ;;  %p4425_p11 = por %p4424_p7, %p4423_p5 }
 0x13a   : > { %p4426_p12 = pnand %p4425_p11, %p4419_p3 }
 0x13c   : > { %4429 = shalt.err (!%p4426_p12)
}
 0x13d   : > { %s4430_s20 = scalar_lea.vmem %s4990_s21, 512  ;;  %s4547_s26 = smov [#allocation4]  }
 0x13e   : > { %p4431_p1 = scmp.ne.s32.totalorder %s4990_s21, %s4430_s20  ;;  %s4435_s5 = sshll.u32 %s4547_s26, 4  ;;  %s4436_s5 = int_to_ptr.vmem [resolvable:$false] %s4435_s5 }
 0x13f   : > { %s4437_s8 = scalar_lea.vmem %s4436_s5, 1024  ;;  %p4438_p8 = scmp.lt.s32.totalorder %s4990_s21, %s4436_s5 }
 0x140   : > { %p4433_p2 = pnand %p4431_p1, %p4417_p10  ;;  %p4439_p4 = scmp.lt.s32.totalorder %s4437_s8, %s4430_s20 }
 0x142   : > { %p4434_p13 = pneg %p4433_p2  ;;  %p4440_p6 = por %p4439_p4, %p4438_p8 }
 0x144   : > { %p4441_p5 = pnand %p4440_p6, %p4434_p13 }
 0x146   : > { %4444 = shalt.err (!%p4441_p5)
}
 0x147   : > { %3972 = dma.hbm_to_vmem [thread:$0]  (!%p4986_p0), %s4984_s0, 512, %s4990_s21, %s4992_s13, %s5730_s25, %s5730_s25, %s5729_s23  }
 0x148   : > { %p5738_p10 = scmp.ne.s32.totalorder %s5719_s2, 0 }
 0x149   : > { %s5026_s15 = sand.u32 (!%p5738_p10), 1, %s4525_s4  }
 0x14a   : > { %781 = sbr.rel (%p5738_p10) target bundleno = 3854 (0xf0e), region = 116  ;;  %s3552_s24 = sshll.u32 (!%p5738_p10), %s5026_s15, 5 }
 0x14b   : > { %s784_s3 = scalar_lea.sflag (!%p5738_p10), [#allocation5], %s5026_s15  ;;  %s5030_s20 = scalar_lea.vmem (!%p5738_p10), [#allocation4], %s3552_s24 }
 0x151   : > { %4492 = dma.done.wait (%p4966_p9), %s784_s3, 512  }
 0x152   : > { %4494 = vsyncadd (%p4966_p9), %s784_s3, 4294966784  ;;  %p5739_p8 = scmp.eq.s32.totalorder %s4734_s29, 0 }
 0x154   : > { %4496 = dma.done.wait (%p5739_p8), [#allocation8], 512   ;;  %p5740_p13 = pmov %p5739_p8 }
 0x155   : > { %p5741_p0 = pmov %p5739_p8 }
 0x156   : > { %4498 = vsyncadd (%p5740_p13), [#allocation8], 4294966784 }
 0x157   : > { %4500 = dma.done.wait (%p5741_p0), [#allocation11], 32   ;;  %p5742_p3 = pmov %p5741_p0 }
 0x158   : > { %p5743_p7 = pmov %p5741_p0 }
 0x159   : > { %4502 = vsyncadd (%p5742_p3), [#allocation11], 4294967264 }
 0x15a   : > { %4504 = dma.done.wait (%p5743_p7), [#allocation14], 272   ;;  %p5744_p11 = pmov %p5741_p0 }
 0x15b   : > { %p5745_p9 = pmov %p5741_p0 }
 0x15c   : > { %4506 = vsyncadd (%p5744_p11), [#allocation14], 4294967024 }
 0x15d   : > { %4508 = dma.done.wait (%p5745_p9), [#allocation17], 192   ;;  %p5746_p12 = pmov %p5741_p0 }
 0x15e   : > { %p5747_p1 = pmov %p5741_p0 }
 0x15f   : > { %4510 = vsyncadd (%p5746_p12), [#allocation17], 4294967104 }
 0x160   : > { %4512 = dma.done.wait (%p5747_p1), [#allocation20], 32   ;;  %p5748_p2 = pmov %p5741_p0 }
 0x161   : > { %p893_p4 = scmp.lt.s32.totalorder %s4734_s29, 5  ;;  %s5749_s14 = sld [smem:[#allocation32_spill]]  ;;  %v898_v5 = vld [vmem:[%s5030_s20] sm:$0xff]  ;;  %v899_v6 = vld [vmem:[%s5030_s20 + $0x8] sm:$0xff]  ;;  %v900_v12 = vld [vmem:[%s5030_s20 + $0x10] sm:$0xff]  ;;  %v4549_v23 = vmov 0.0  }
 0x162   : > { %4514 = vsyncadd (%p5748_p2), [#allocation20], 4294967264  ;;  %v944_v10 = vmul.f32 %v898_v5, %v898_v5  ;;  %v945_v11 = vmul.f32 %v899_v6, %v899_v6  ;;  %v901_v13 = vld [vmem:[%s5030_s20 + $0x18] sm:$0xff]  ;;  %s4548_s21 = smov 32   ;;  %v946_v14 = vmul.f32 %v900_v12, %v900_v12  ;;  %1091 = vmatprep.mubr.f32.mxu0 %v4549_v23  ;;  %s4550_s6 = smov 64   ;;  %vm914_vm0 = vcmask 261120  }
 0x163   : > { %s894_s13 = scalar_select %p893_p4, %s4734_s29, 5  ;;  %v947_v15 = vmul.f32 %v901_v13, %v901_v13  ;;  %vm1008_vm1 = vcmask 523264   ;;  %vm1013_vm2 = vcmask 785408   ;;  %vm1145_vm3 = vcmask 1041408  }
 0x164   : > { %v4073_v18 = vpack.i.bf16 %v945_v11, %v944_v10  ;;  %s4551_s26 = smov 96   ;;  %s5750_s24 = sld [smem:[#allocation38_spill]]  ;;  %v1498_v10 = vld [vmem:[%s5667_s17] sm:$0xff]  ;;  %v1499_v11 = vld [vmem:[%s5667_s17 + $0x8] sm:$0xff]  ;;  %vm1129_vm4 = vcmask 1043456   ;;  %vm4553_vm5 = vmmov 0  }
 0x165   : > { %s3621_s2 = sshll.u32 %s894_s13, 5  ;;  %v4083_v24 = vpack.i.bf16 %v947_v15, %v946_v14  ;;  %v1501_v14 = vld [vmem:[%s5667_s17 + $0x18] sm:$0xff]  ;;  %s4554_s5 = smov 16   ;;  %vm1113_vm6 = vcmask 1045504   ;;  %vm1729_vm7 = vcmask 130048   ;;  %vm1734_vm8 = vcmask 392192  }
 0x166   : > { %s4555_s8 = smov 48   ;;  %s4556_s25 = smov 112   ;;  %vm1466_vm9 = vcmask 179200   ;;  %vm1470_vm10 = vcmask 177152   ;;  %vm2182_vm11 = vcmask 64512   ;;  %vm2185_vm12 = vcmask 195584  }
 0x167   : > { %s5061_s0 = scalar_lea.vmem %s5749_s14, %s3621_s2  ;;  %s5751_s3 = sld [smem:[#allocation39_spill]]  ;;  %vm2278_vm13 = vcmask 1040384   ;;  %vm2281_vm14 = vcmask 1042432   ;;  %vm2588_vm15 = vcmask 31744  }
 0x168   : > { %v902_v0 = vld [vmem:[%s5061_s0] sm:$0xff]  ;;  %v903_v1 = vld [vmem:[%s5061_s0 + $0x8] sm:$0xff]  ;;  %v904_v2 = vld [vmem:[%s5061_s0 + $0x10] sm:$0xff]  ;;  %s4557_s23 = smov 80   ;;  %s4559_s2 = smov 24  }
 0x169   : > { %v4063_v3 = vpack.i.bf16 %v903_v1, %v902_v0  ;;  %v905_v4 = vld [vmem:[%s5061_s0 + $0x18] sm:$0xff]  ;;  %v948_v7 = vmul.f32 %v902_v0, %v902_v0  ;;  %v949_v8 = vmul.f32 %v903_v1, %v903_v1  ;;  %v950_v16 = vmul.f32 %v904_v2, %v904_v2  ;;  %p5760_p6 = pmov %p5741_p0  ;;  %p5762_p10 = scmp.ne.s32.totalorder %s5734_s30, 0 }
 0x16a   : > { %v4068_v9 = vpack.i.bf16 %v905_v4, %v904_v2  ;;  %v952_v17 = vmul.f32 %v902_v0, %v898_v5  ;;  %v951_v20 = vmul.f32 %v905_v4, %v905_v4  ;;  %v953_v21 = vmul.f32 %v903_v1, %v899_v6  ;;  %v934_v26 = vld [vmem:[%s5750_s24] sm:$0xff]  ;;  %v935_v27 = vld [vmem:[%s5750_s24 + $0x8] sm:$0xff] }
 0x16b   : > { %4064 = vrot.lane.b32.xlu0 %v4063_v3, %s4548_s21  ;;  %v4078_v19 = vpack.i.bf16 %v949_v8, %v948_v7  ;;  %v3833_v28 = vpack.c.bf16 %v935_v27, %v934_v26  ;;  %v954_v34 = vmul.f32 %v904_v2, %v900_v12  ;;  %v955_v35 = vmul.f32 %v905_v4, %v901_v13  ;;  %v931_v1 = vld [vmem:[#allocation7] sm:$0xff]  ;;  %v932_v3 = vld [vmem:[#allocation7 + $0x8] sm:$0xff]  ;;  %v933_v4 = vld [vmem:[#allocation7 + $0x10] sm:$0x3f] }
 0x16c   : > { %4069 = vrot.lane.b32.xlu1 %v4068_v9, %s4548_s21  ;;  %v3825_v22 = vpack.c.bf16 %v953_v21, %v952_v17  ;;  %v4088_v25 = vpack.i.bf16 %v951_v20, %v950_v16  ;;  %v936_v7 = vld [vmem:[%s5750_s24 + $0x10] sm:$0xff]  ;;  %v937_v8 = vld [vmem:[%s5750_s24 + $0x18] sm:$0xff] }
 0x16d   : > { %3834 = vmatprep.subr.bf16.mxu1 %v3833_v28  ;;  %v3829_v50 = vpack.c.bf16 %v955_v35, %v954_v34  ;;  %v3837_v9 = vpack.c.bf16 %v937_v8, %v936_v7 }
 0x16e   : > { %3826 = vmatprep.subr.bf16.mxu0 %v3825_v22  ;;  %3836 = vmatpush3.bf16.msra.mxu1 %v3833_v28 }
 0x16f   : > { %4074 = vrot.lane.b32.xlu0 %v4073_v18, %s4550_s6  ;;  %3838 = vmatprep.subr.bf16.mxu1 %v3837_v9 }
 0x170   : > { %4079 = vrot.lane.b32.xlu1 %v4078_v19, %s4551_s26 }
 0x172   : > { %3840 = vmatpush3.bf16.msra.mxu1 %v3837_v9 }
 0x173   : > { %4084 = vrot.lane.b32.xlu0 %v4083_v24, %s4550_s6 }
 0x174   : > { %4089 = vrot.lane.b32.xlu1 %v4088_v25, %s4551_s26 }
 0x1dd   : > { %v4065_v29 = vpop.permute.xlu0 %4064 }
 0x1de   : > { %v4070_v30 = vpop.permute.xlu1 %4069  ;;  %v4067_v31 = vunpack.i.h.bf16 %v4065_v29  ;;  %v4066_v32 = vunpack.i.l.bf16 %v4065_v29 }
 0x1df   : > { %v4072_v36 = vunpack.i.h.bf16 %v4070_v30  ;;  %v4071_v37 = vunpack.i.l.bf16 %v4070_v30 }
 0x1e0   : > { %v1004_v41 = vsel %vm914_vm0, %v898_v5, %v4066_v32  ;;  %v1005_v42 = vsel %vm914_vm0, %v899_v6, %v4067_v31  ;;  %v1496_v5 = vld [vmem:[#allocation15] sm:$0xff]  ;;  %v1497_v6 = vld [vmem:[#allocation15 + $0x8] sm:$0xff] }
 0x1e1   : > { %v4075_v33 = vpop.permute.xlu0 %4074  ;;  %v1006_v55 = vsel %vm914_vm0, %v900_v12, %v4071_v37  ;;  %v1007_v56 = vsel %vm914_vm0, %v901_v13, %v4072_v36  ;;  %v3841_v0 = vpack.c.bf16 %v1005_v42, %v1004_v41  ;;  %v3849_v12 = vpack.c.bf16 %v1499_v11, %v1498_v10  ;;  %v1500_v13 = vld [vmem:[%s5667_s17 + $0x10] sm:$0xff] }
 0x1e2   : > { %v4077_v38 = vunpack.i.h.bf16 %v4075_v33  ;;  %v4076_v39 = vunpack.i.l.bf16 %v4075_v33  ;;  %v4080_v40 = vpop.permute.xlu1 %4079  ;;  %v3845_v2 = vpack.c.bf16 %v1007_v56, %v1006_v55  ;;  %v3853_v15 = vpack.c.bf16 %v1501_v14, %v1500_v13 }
 0x1e3   : > { %v4082_v43 = vunpack.i.h.bf16 %v4080_v40  ;;  %v4081_v44 = vunpack.i.l.bf16 %v4080_v40 }
 0x1e4   : > { %v1009_v45 = vsel %vm1008_vm1, %v1004_v41, %v4076_v39  ;;  %v1010_v46 = vsel %vm1008_vm1, %v1005_v42, %v4077_v38  ;;  %v4552_v42 = vmov 0.0|0.0  }
 0x1e5   : > { %v4085_v47 = vpop.permute.xlu0 %4084  ;;  %v1014_v48 = vsel %vm1013_vm2, %v1009_v45, %v4081_v44  ;;  %v1015_v49 = vsel %vm1013_vm2, %v1010_v46, %v4082_v43 }
 0x1e6   : > { %v4087_v51 = vunpack.i.h.bf16 %v4085_v47  ;;  %v4086_v52 = vunpack.i.l.bf16 %v4085_v47  ;;  %v4090_v53 = vpop.permute.xlu1 %4089  ;;  %v3827_v54 = vpack.c.bf16 %v1015_v49, %v1014_v48 }
 0x1e7   : > { %v4092_v57 = vunpack.i.h.bf16 %v4090_v53  ;;  %v4091_v58 = vunpack.i.l.bf16 %v4090_v53 }
 0x1e8   : > { %v1012_v59 = vsel %vm1008_vm1, %v1007_v56, %v4087_v51  ;;  %v1011_v60 = vsel %vm1008_vm1, %v1006_v55, %v4086_v52  ;;  %3828 = vmatpush1.bf16.msra.mxu0 %v3827_v54 }
 0x1e9   : > { %3830 = vmatprep.subr.bf16.mxu0 %v3829_v50  ;;  %v1016_v61 = vsel %vm1013_vm2, %v1011_v60, %v4091_v58  ;;  %v1017_v62 = vsel %vm1013_vm2, %v1012_v59, %v4092_v57  ;;  %vm3004_vm2 = vcmask 15360  }
 0x1ea   : > { %v3831_v63 = vpack.c.bf16 %v1017_v62, %v1016_v61 }
 0x1ec   : > { %3832 = vmatpush1.bf16.msra.mxu0 %v3831_v63 }
 0x1ed   : > { %3842 = vmatprep.subr.bf16.mxu0 %v3841_v0 }
 0x1ef   : > { %3565 = vmatmul.mubr.msk.f32.vlgmr.msra.gmra.mrb[0].mxu0 %vm914_vm0, %v931_v1 }
 0x1f0   : > { %3844 = vmatpush3.bf16.msra.mxu0 %v3841_v0  ;;  %1097 = vmatprep.mubr.f32.mxu0 %v4549_v23 }
 0x1f1   : > { %3846 = vmatprep.subr.bf16.mxu0 %v3845_v2 }
 0x1f3   : > { %3566 = vmatmul.mubr.msk.f32.gmra.mrb[2].mxu0 %vm914_vm0, %v932_v3 }
 0x1f4   : > { %3848 = vmatpush3.bf16.msra.mxu0 %v3845_v2  ;;  %1103 = vmatprep.mubr.f32.mxu0 %v4549_v23 }
 0x1f5   : > { %3850 = vmatprep.subr.bf16.mxu0 %v3849_v12 }
 0x1f7   : > { %3567 = vmatmul.mubr.msk.f32.gmra.mrb[4].mxu0 %vm914_vm0, %v933_v4 }
 0x1f8   : > { %3727 = vmatprep.mubr.msk.f32.mxu0 %vm914_vm0, %v1496_v5 }
 0x1fb   : > { %3728 = vmatmul.mubr.msk.f32.vlgmr.msra.gmra.mrb[6].mxu0 %vm914_vm0, %v1497_v6 }
 0x1fc   : > { %3852 = vmatpush3.bf16.msra.mxu0 %v3849_v12 }
 0x1fd   : > { %3854 = vmatprep.subr.bf16.mxu0 %v3853_v15 }
 0x200   : > { %3856 = vmatpush3.bf16.msra.mxu0 %v3853_v15 }
 0x201   : > { %3857 = vmatprep.subr.bf16.mxu0 %v4552_v42 }
 0x2c2   : > { %v5121_v16 = vpop.f32.mrb[0].mxu0 }
 0x2c3   : > { %v5123_v17 = vpop.f32.mrb[1].mxu0  ;;  %3698 = vmatprep.mubr.msk.f32.mxu1 %vm914_vm0, %v5121_v16  ;;  %v1114_v52 = vrot.slane %v5121_v16, 2  ;;  %v1130_v56 = vrot.slane %v5121_v16, 4  ;;  %v1146_v60 = vrot.slane %v5121_v16, 6 }
 0x2c6   : > { %v5127_v18 = vpop.f32.mrb[2].mxu0 }
 0x2c7   : > { %v5129_v19 = vpop.f32.mrb[3].mxu0  ;;  %3699 = vmatmul.mubr.msk.f32.vlgmr.msra.gmra.mrb[0].mxu1 %vm914_vm0, %v5127_v18  ;;  %v1147_v21 = vrot.slane %v5127_v18, 6  ;;  %v1115_v54 = vrot.slane %v5127_v18, 2  ;;  %v1131_v58 = vrot.slane %v5127_v18, 4 }
 0x2ca   : > { %v5133_v20 = vpop.f32.mrb[4].mxu0 }
 0x2cb   : > { %v1149_v22 = vrot.slane %v5133_v20, 6  ;;  %v5137_v24 = vpop.f32.mrb[5].mxu0  ;;  %v1117_v53 = vrot.slane %v5133_v20, 2  ;;  %v1133_v57 = vrot.slane %v5133_v20, 4 }
 0x2cd   : > { %v1150_v25 = vsel %vm1145_vm3, %v1147_v21, %v1149_v22  ;;  %v1118_v55 = vsel %vm1113_vm6, %v1115_v54, %v1117_v53  ;;  %v1134_v59 = vsel %vm1129_vm4, %v1131_v58, %v1133_v57 }
 0x2ce   : > { %v3729_v26 = vpop.f32.mrb[6].mxu0 }
 0x2cf   : > { %1587 = vrot.lane.b32.xlu1 %v3729_v26, %s4551_s26  ;;  %v1574_v27 = vpop.f32.mrb[7].mxu0 }
 0x2d0   : > { %1585 = vrot.lane.b32.xlu0 %v1574_v27, %s4551_s26  ;;  %3738 = vmatprep.mubr.msk.f32.mxu0 %vm914_vm0, %v1574_v27 }
 0x2d1   : > { %3739 = vmatmul.mubr.msk.f32.vlgmr.msra.gmra.mrb[8].mxu0 %vm914_vm0, %v3729_v26 }
 0x341   : > { %v1588_v29 = vpop.permute.xlu1 %1587 }
 0x342   : > { %v1586_v28 = vpop.permute.xlu0 %1585 }
 0x343   : > { %3741 = vmatprep.mubr.msk.f32.mxu0 %vm914_vm0, %v1586_v28 }
 0x344   : > { %3742 = vmatmul.mubr.msk.f32.gmra.mrb[10].mxu0 %vm914_vm0, %v1588_v29  ;;  %v1682_v29 = vld [vmem:[#allocation9] sm:$0x3f] }
 0x345   : > { %3748 = vmatprep.mubr.msk.f32.mxu0 %vm4553_vm5, %v4549_v23 }
 0x39a   : > { %v5148_v30 = vpop.f32.mrb[0].mxu1 }
 0x39b   : > { %v5152_v31 = vmul.f32 %v5148_v30, %v5148_v30  ;;  %v5154_v32 = vpop.f32.mrb[1].mxu1 }
 0x39c   : > { %v5158_v33 = vmul.f32 %v5154_v32, %v5154_v32 }
 0x39d   : > { %v1357_v34 = vrot.slane %v5152_v31, 4 }
 0x39e   : > { %v1356_v35 = vrot.slane %v5158_v33, 4 }
 0x3a0   : > { %v5167_v36 = vsel %vm1129_vm4, %v1356_v35, %v1357_v34 }
 0x3a4   : > { %v3740_v37 = vpop.f32.mrb[8].mxu0 }
 0x3a5   : > { %v1692_v38 = vmul.f32 %v3740_v37, %v3740_v37  ;;  %v1663_v39 = vpop.f32.mrb[9].mxu0 }
 0x3a6   : > { %v1691_v40 = vmul.f32 %v1663_v39, %v1663_v39 }
 0x3a8   : > { %v4093_v41 = vpack.i.bf16 %v1692_v38, %v1691_v40  ;;  %v1998_v38 = vld [vmem:[%s5668_s18] sm:$0xff] }
 0x3aa   : > { %4094 = vrot.lane.b32.xlu1 %v4093_v41, %s4548_s21 }
 0x417   : > { %v3743_v43 = vpop.f32.mrb[10].mxu0 }
 0x418   : > { %v1694_v44 = vmul.f32 %v3743_v43, %v3743_v43  ;;  %v1696_v45 = vmul.f32 %v3743_v43, %v3740_v37  ;;  %v1673_v46 = vpop.f32.mrb[11].mxu0 }
 0x419   : > { %v4098_v47 = vpack.i.bf16 %v3743_v43, %v1673_v46  ;;  %v1693_v48 = vmul.f32 %v1673_v46, %v1673_v46  ;;  %v1695_v49 = vmul.f32 %v1673_v46, %v1663_v39  ;;  %v1116_v46 = vsel %vm1113_vm6, %v1114_v52, %v1115_v54 }
 0x41b   : > { %4099 = vrot.lane.b32.xlu0 %v4098_v47, %s4554_s5  ;;  %v4108_v50 = vpack.i.bf16 %v1696_v45, %v1695_v49  ;;  %v4103_v51 = vpack.i.bf16 %v1694_v44, %v1693_v48  ;;  %v1132_v47 = vsel %vm1129_vm4, %v1130_v56, %v1131_v58  ;;  %v1683_v48 = vld [vmem:[%s5751_s3] sm:$0xff]  ;;  %v1684_v49 = vld [vmem:[%s5751_s3 + $0x8] sm:$0xff] }
 0x41c   : > { %v4095_v61 = vpop.permute.xlu1 %4094 }
 0x41d   : > { %4109 = vrot.lane.b32.xlu1 %v4108_v50, %s4550_s6  ;;  %v4097_v4 = vunpack.i.h.bf16 %v4095_v61  ;;  %v4096_v5 = vunpack.i.l.bf16 %v4095_v61  ;;  %v3860_v50 = vpack.c.bf16 %v1684_v49, %v1683_v48 }
 0x41f   : > { %4104 = vrot.lane.b32.xlu0 %v4103_v51, %s4555_s8  ;;  %3861 = vmatprep.subr.bf16.mxu1 %v3860_v50  ;;  %v1148_v51 = vsel %vm1145_vm3, %v1146_v60, %v1147_v21  ;;  %s4558_s8 = smov 8  }
 0x420   : > { %3863 = vmatpush3.bf16.msra.mxu1 %v3860_v50 }
 0x421   : > { %1119 = vrot.lane.b32.xlu1 %v1114_v52, %s4551_s26  ;;  %3775 = vmatprep.subr.mxu1 %v4549_v23 }
 0x425   : > { %1123 = vrot.lane.b32.xlu1 %v1118_v55, %s4551_s26 }
 0x429   : > { %1135 = vrot.lane.b32.xlu1 %v1130_v56, %s4550_s6 }
 0x42d   : > { %1139 = vrot.lane.b32.xlu1 %v1134_v59, %s4550_s6 }
 0x431   : > { %1151 = vrot.lane.b32.xlu1 %v1146_v60, %s4548_s21 }
 0x435   : > { %1155 = vrot.lane.b32.xlu1 %v1150_v25, %s4548_s21 }
 0x48d   : > { %v4100_v62 = vpop.permute.xlu0 %4099 }
 0x48e   : > { %v4102_v63 = vunpack.i.h.bf16 %v4100_v62  ;;  %v4101_v0 = vunpack.i.l.bf16 %v4100_v62 }
 0x48f   : > { %v4110_v1 = vpop.permute.xlu1 %4109 }
 0x490   : > { %v1731_v2 = vsel %vm1729_vm7, %v3740_v37, %v4102_v63  ;;  %v1730_v3 = vsel %vm1729_vm7, %v1663_v39, %v4101_v0  ;;  %v4112_v10 = vunpack.i.h.bf16 %v4110_v1  ;;  %v4111_v11 = vunpack.i.l.bf16 %v4110_v1  ;;  %v1997_v37 = vld [vmem:[#allocation16] sm:$0xff]  ;;  %v1999_v39 = vld [vmem:[%s5668_s18 + $0x8] sm:$0xff] }
 0x491   : > { %v3865_v6 = vpack.c.bf16 %v1731_v2, %v1730_v3  ;;  %v4105_v7 = vpop.permute.xlu0 %4104  ;;  %v1732_v12 = vsel %vm914_vm0, %v1730_v3, %v4096_v5  ;;  %v1733_v13 = vsel %vm914_vm0, %v1731_v2, %v4097_v4  ;;  %v3867_v40 = vpack.c.bf16 %v1999_v39, %v1998_v38 }
 0x492   : > { %v4107_v8 = vunpack.i.h.bf16 %v4105_v7  ;;  %v4106_v9 = vunpack.i.l.bf16 %v4105_v7 }
 0x493   : > { %v1120_v14 = vpop.permute.xlu1 %1119 }
 0x494   : > { %v1736_v15 = vsel %vm1734_vm8, %v1733_v13, %v4107_v8  ;;  %v1735_v22 = vsel %vm1734_vm8, %v1732_v12, %v4106_v9  ;;  %v1158_v25 = vsel %vm1113_vm6, %v5133_v20, %v1120_v14 }
 0x495   : > { %3701 = vmatprep.mubr.msk.f32.mxu1 %vm914_vm0, %v1158_v25  ;;  %v1737_v26 = vsel %vm1008_vm1, %v1735_v22, %v4111_v11  ;;  %v1738_v27 = vsel %vm1008_vm1, %v1736_v15, %v4112_v10  ;;  %vm2591_vm1 = vcmask 97280  }
 0x496   : > { %v3858_v28 = vpack.c.bf16 %v1738_v27, %v1737_v26 }
 0x497   : > { %v1124_v20 = vpop.permute.xlu1 %1123 }
 0x498   : > { %3859 = vmatpush3.bf16.msra.mxu0 %v3858_v28 }
 0x499   : > { %3864 = vmatprep.subr.bf16.mxu0 %v4552_v42 }
 0x49b   : > { %3749 = vmatmul.mubr.msk.f32.vlgmr.msra.gmra.mrb[12].mxu0 %vm1729_vm7, %v1682_v29  ;;  %v1136_v16 = vpop.permute.xlu1 %1135 }
 0x49c   : > { %3866 = vmatpush3.bf16.msra.mxu0 %v3865_v6  ;;  %3765 = vmatprep.mubr.msk.f32.mxu0 %vm4553_vm5, %v4549_v23 }
 0x49d   : > { %3868 = vmatprep.subr.bf16.mxu0 %v3867_v40 }
 0x49f   : > { %3766 = vmatmul.mubr.msk.f32.vlgmr.msra.gmra.mrb[14].mxu0 %vm1729_vm7, %v1997_v37  ;;  %v1140_v55 = vpop.permute.xlu1 %1139 }
 0x4a0   : > { %3870 = vmatpush3.bf16.msra.mxu0 %v3867_v40 }
 0x4a1   : > { %3780 = vmatprep.subr.mxu0 %v4549_v23 }
 0x4a3   : > { %v1152_v58 = vpop.permute.xlu1 %1151 }
 0x4a7   : > { %v1156_v62 = vpop.permute.xlu1 %1155 }
 0x56e   : > { %v1808_v41 = vpop.f32.mrb[12].mxu0 }
 0x56f   : > { %v3750_v42 = vpop.f32.mrb[13].mxu0  ;;  %v1817_v43 = vrot.slane %v1808_v41, 4  ;;  %v1813_v52 = vrot.slane %v1808_v41, 2 }
 0x571   : > { %1818 = vrot.lane.b32.xlu1 %v1817_v43, %s4551_s26 }
 0x572   : > { %v2069_v44 = vpop.f32.mrb[14].mxu0 }
 0x573   : > { %2074 = vrot.lane.b32.xlu0 %v2069_v44, %s4556_s25  ;;  %v3767_v45 = vpop.f32.mrb[15].mxu0  ;;  %3772 = vmatprep.mubr.msk.f32.mxu0 %vm1729_vm7, %v2069_v44 }
 0x577   : > { %1121 = vrot.lane.b32.xlu0 %v1116_v46, %s4551_s26 }
 0x57b   : > { %1125 = vrot.lane.b32.xlu0 %v1117_v53, %s4551_s26  ;;  %v1821_v53 = vrot.slane %v1808_v41, 6 }
 0x57f   : > { %1137 = vrot.lane.b32.xlu0 %v1132_v47, %s4550_s6 }
 0x583   : > { %1141 = vrot.lane.b32.xlu0 %v1133_v57, %s4550_s6 }
 0x587   : > { %1153 = vrot.lane.b32.xlu0 %v1148_v51, %s4548_s21 }
 0x58b   : > { %1814 = vrot.lane.b32.xlu0 %v1813_v52, %s4556_s25 }
 0x58f   : > { %1822 = vrot.lane.b32.xlu0 %v1821_v53, %s4557_s23 }
 0x593   : > { %1825 = vrot.lane.b32.xlu0 %v1808_v41, %s4550_s6  ;;  %s5283_s6 = sld [smem:[#allocation3]] }
 0x599   : > { %s939_s14 = scvt.s32.f32 %s5283_s6 }
 0x59b   : > { %s940_s13 = smul.f32 0.01, %s939_s14 }
 0x59d   : > { %s942_s23 = smul.f32 %s940_s13, %s940_s13  ;;  %s5335_s13 = sld [smem:[#allocation3 + $0x1]] }
 0x59f   : > { %v5298_v27 = vstv %s942_s23 }
 0x5a3   : > { %s1686_s6 = scvt.s32.f32 %s5335_s13  ;;  %s4562_s13 = smov 4  }
 0x5e3   : > { %v1819_v2 = vpop.permute.xlu1 %1818 }
 0x5e5   : > { %v2075_v54 = vpop.permute.xlu0 %2074 }
 0x5e6   : > { %3773 = vmatmul.mubr.msk.f32.vlgmr.msra.gmra.mrb[16].mxu0 %vm1729_vm7, %v2075_v54 }
 0x5e7   : > { %3782 = vmatprep.mubr.msk.f32.mxu0 %vm4553_vm5, %v4549_v23 }
 0x5e9   : > { %v1122_v18 = vpop.permute.xlu0 %1121 }
 0x5ea   : > { %3702 = vmatmul.mubr.msk.f32.gmra.mrb[2].mxu1 %vm914_vm0, %v1122_v18 }
 0x5eb   : > { %3704 = vmatprep.mubr.msk.f32.mxu1 %vm914_vm0, %v1124_v20 }
 0x5ed   : > { %v1126_v21 = vpop.permute.xlu0 %1125 }
 0x5ee   : > { %v1159_v56 = vsel %vm1129_vm4, %v1126_v21, %v1136_v16 }
 0x5ef   : > { %3705 = vmatmul.mubr.msk.f32.gmra.mrb[4].mxu1 %vm914_vm0, %v1159_v56 }
 0x5f1   : > { %v1138_v57 = vpop.permute.xlu0 %1137 }
 0x5f2   : > { %3707 = vmatprep.mubr.msk.f32.mxu1 %vm914_vm0, %v1138_v57 }
 0x5f3   : > { %3708 = vmatmul.mubr.msk.f32.gmra.mrb[6].mxu1 %vm914_vm0, %v1140_v55 }
 0x5f5   : > { %v1142_v59 = vpop.permute.xlu0 %1141 }
 0x5f6   : > { %v1160_v60 = vsel %vm1145_vm3, %v1142_v59, %v1152_v58 }
 0x5f7   : > { %3710 = vmatprep.mubr.msk.f32.mxu1 %vm914_vm0, %v1160_v60 }
 0x5f9   : > { %v1154_v61 = vpop.permute.xlu0 %1153 }
 0x5fa   : > { %3711 = vmatmul.mubr.msk.f32.gmra.mrb[8].mxu1 %vm914_vm0, %v1154_v61 }
 0x5fb   : > { %3713 = vmatprep.mubr.msk.f32.mxu1 %vm914_vm0, %v1156_v62 }
 0x5fd   : > { %v1815_v63 = vpop.permute.xlu0 %1814 }
 0x5fe   : > { %3714 = vmatmul.mubr.msk.f32.gmra.mrb[10].mxu1 %vm914_vm0, %v5123_v17  ;;  %v1827_v0 = vsel %vm1113_vm6, %v1808_v41, %v1815_v63  ;;  %v1828_v3 = vsel %vm1129_vm4, %v1815_v63, %v1819_v2  ;;  %vm1976_vm6 = vcmask 46080  }
 0x5ff   : > { %3716 = vmatprep.mubr.msk.f32.mxu1 %vm914_vm0, %v5129_v19 }
 0x601   : > { %v1823_v1 = vpop.permute.xlu0 %1822 }
 0x602   : > { %3717 = vmatmul.mubr.msk.f32.gmra.mrb[12].mxu1 %vm914_vm0, %v5137_v24  ;;  %v1829_v4 = vsel %vm1145_vm3, %v1819_v2, %v1823_v1 }
 0x603   : > { %3755 = vmatprep.mubr.msk.f32.mxu1 %vm1729_vm7, %v1827_v0 }
 0x605   : > { %v1826_v17 = vpop.permute.xlu0 %1825 }
 0x606   : > { %3756 = vmatmul.mubr.msk.f32.vlgmr.msra.gmra.mrb[14].mxu1 %vm1729_vm7, %v1828_v3 }
 0x607   : > { %3758 = vmatprep.mubr.msk.f32.mxu1 %vm1729_vm7, %v1829_v4 }
 0x60a   : > { %3759 = vmatmul.mubr.msk.f32.gmra.mrb[16].mxu1 %vm1729_vm7, %v1826_v17 }
 0x60b   : > { %3777 = vmatprep.mubr.msk.f32.mxu1 %vm4553_vm5, %v4549_v23 }
 0x6b9   : > { %v3774_v19 = vpop.f32.mrb[16].mxu0 }
 0x6ba   : > { %v2164_v24 = vmul.f32 %v3774_v19, %v3774_v19  ;;  %2167 = vrot.lane.b32.xlu1 %v3774_v19, %s4558_s8  ;;  %v5287_v5 = vpop.f32.mrb[17].mxu0 }
 0x6bb   : > { %v2163_v6 = vmul.f32 %v5287_v5, %v5287_v5  ;;  %v2165_v7 = vmul.f32 %v3774_v19, %v5287_v5 }
 0x6bc   : > { %2175 = vrot.lane.b32.xlu0 %v2164_v24, %s4559_s2 }
 0x6bd   : > { %v3703_v8 = vpop.f32.mrb[2].mxu1 }
 0x6be   : > { %v1333_v9 = vmul.f32 %v3703_v8, %v3703_v8  ;;  %v1341_v10 = vrot.slane %v3703_v8, 6  ;;  %v1271_v11 = vpop.f32.mrb[3].mxu1  ;;  %2171 = vrot.lane.b32.xlu1 %v2163_v6, %s4554_s5 }
 0x6bf   : > { %v1332_v12 = vmul.f32 %v1271_v11, %v1271_v11  ;;  %v1340_v13 = vrot.slane %v1271_v11, 6 }
 0x6c0   : > { %v1442_v14 = vrot.slane %v1333_v9, 6  ;;  %v1372_v15 = vrot.slane %v1333_v9, 4 }
 0x6c1   : > { %v1441_v22 = vrot.slane %v1332_v12, 6  ;;  %v5295_v25 = vrot.slane %v1332_v12, 4  ;;  %v1342_v26 = vsel %vm1145_vm3, %v1340_v13, %v1341_v10 }
 0x6c2   : > { %v3706_v28 = vpop.f32.mrb[4].mxu1  ;;  %2179 = vrot.lane.b32.xlu1 %v2165_v7, %s4548_s21  ;;  %v5302_v29 = vmul.f32 %v1342_v26, %v5154_v32  ;;  %s941_s21 = smul.f32 0.03, %s939_s14 }
 0x6c3   : > { %v1443_v37 = vsel %vm1145_vm3, %v1441_v22, %v1442_v14  ;;  %v1335_v38 = vmul.f32 %v3706_v28, %v3706_v28  ;;  %v1345_v39 = vrot.slane %v3706_v28, 6  ;;  %v1365_v40 = vsub.f32 %v3706_v28, %v1356_v35  ;;  %v1281_v41 = vpop.f32.mrb[5].mxu1  ;;  %s5358_s14 = smul.f32 0.01, %s1686_s6 }
 0x6c4   : > { %v1451_v42 = vadd.f32 %v1443_v37, %v5158_v33  ;;  %v1334_v43 = vmul.f32 %v1281_v41, %v1281_v41  ;;  %v1343_v44 = vrot.slane %v1281_v41, 6  ;;  %v5312_v45 = vsel %vm1129_vm4, %v1357_v34, %v5295_v25  ;;  %s943_s2 = smul.f32 %s941_s21, %s941_s21 }
 0x6c5   : > { %v1376_v32 = vrot.slane %v1335_v38, 4  ;;  %v1446_v46 = vrot.slane %v1335_v38, 6  ;;  %v1373_v47 = vsel %vm1129_vm4, %v5295_v25, %v1372_v15  ;;  %s1689_s23 = smul.f32 %s5358_s14, %s5358_s14  ;;  %s4560_s14 = smov 120  }
 0x6c6   : > { %v1454_v48 = vadd.f32 %v1451_v42, %v5298_v27  ;;  %v1374_v49 = vrot.slane %v1334_v43, 4  ;;  %v1444_v35 = vrot.slane %v1334_v43, 6  ;;  %v3709_v50 = vpop.f32.mrb[6].mxu1  ;;  %v1346_v33 = vsel %vm1145_vm3, %v1343_v44, %v1345_v39  ;;  %s1688_s21 = smul.f32 0.03, %s1686_s6  ;;  %s4563_s6 = smov 12  }
 0x6c7   : > { %v1367_v51 = vsub.f32 %v3709_v50, %v5312_v45  ;;  %v1291_v52 = vpop.f32.mrb[7].mxu1  ;;  %v5319_v53 = vmul.f32 %v1346_v33, %v1271_v11  ;;  %v1344_v34 = vsel %vm1145_vm3, %v1341_v10, %v1343_v44  ;;  %v5340_v4 = vstv %s943_s2 }
 0x6c8   : > { %4113 = vrcp.f32 %v1454_v48  ;;  %v1445_v20 = vsel %vm1145_vm3, %v1442_v14, %v1444_v35  ;;  %v1447_v54 = vsel %vm1145_vm3, %v1444_v35, %v1446_v46  ;;  %v1366_v16 = vsub.f32 %v1291_v52, %v5167_v36  ;;  %s1690_s2 = smul.f32 %s1688_s21, %s1688_s21  ;;  %s5753_s21 = sld [smem:[#allocation40_spill]] }
 0x6c9   : > { %v1452_v18 = vadd.f32 %v1445_v20, %v5152_v31  ;;  %v1453_v21 = vadd.f32 %v1447_v54, %v1332_v12  ;;  %v1375_v55 = vsel %vm1129_vm4, %v1372_v15, %v1374_v49  ;;  %v1377_v56 = vsel %vm1129_vm4, %v1374_v49, %v1376_v32 }
 0x6ca   : > { %v5331_v57 = vmul.f32 %v5148_v30, %v1344_v34  ;;  %v1434_v31 = vmul.f32 2.0, %v5302_v29  ;;  %v1436_v24 = vmul.f32 2.0, %v5319_v53 }
 0x6cb   : > { %v1455_v58 = vadd.f32 %v1452_v18, %v5298_v27  ;;  %v1456_v59 = vadd.f32 %v1453_v21, %v5298_v27 }
 0x6cc   : > { %v1438_v2 = vadd.f32 %v5298_v27, %v1434_v31  ;;  %v1435_v6 = vmul.f32 2.0, %v5331_v57 }
 0x6cd   : > { %4115 = vrcp.f32 %v1455_v58  ;;  %v3712_v36 = vpop.f32.mrb[8].mxu1  ;;  %v1965_v58 = vstv %s1689_s23  ;;  %s4561_s23 = smov 104  }
 0x6ce   : > { %4117 = vrcp.f32 %v1456_v59  ;;  %v1382_v60 = vsub.f32 %v3712_v36, %v1375_v55  ;;  %v1301_v61 = vpop.f32.mrb[9].mxu1  ;;  %v1439_v28 = vadd.f32 %v5298_v27, %v1435_v6 }
 0x6cf   : > { %v1368_v62 = vsub.f32 %v1301_v61, %v5295_v25  ;;  %v1381_v63 = vsub.f32 %v1301_v61, %v1373_v47  ;;  %v1440_v25 = vadd.f32 %v5298_v27, %v1436_v24 }
 0x6d0   : > { %v1398_v30 = vrot.slane %v1382_v60, 6 }
 0x6d1   : > { %v1397_v0 = vrot.slane %v1381_v63, 6  ;;  %v3715_v1 = vpop.f32.mrb[10].mxu1 }
 0x6d2   : > { %v4114_v3 = vpop.eup %4113  ;;  %v1384_v17 = vsub.f32 %v3715_v1, %v5302_v29  ;;  %v1311_v19 = vpop.f32.mrb[11].mxu1 }
 0x6d3   : > { %v1399_v7 = vsel %vm1145_vm3, %v1397_v0, %v1398_v30  ;;  %v1406_v8 = vadd.f32 %v1397_v0, %v1365_v40  ;;  %v1383_v9 = vsub.f32 %v1311_v19, %v1377_v56  ;;  %v5347_v10 = vmul.f32 %v4114_v3, %v1438_v2 }
 0x6d4   : > { %v1407_v11 = vadd.f32 %v1399_v7, %v1366_v16  ;;  %v1387_v56 = vmul.f32 2.0, %v1384_v17 }
 0x6d5   : > { %v1410_v12 = vadd.f32 %v1406_v8, %v5340_v4  ;;  %v1400_v13 = vrot.slane %v1383_v9, 6  ;;  %v3718_v14 = vpop.f32.mrb[12].mxu1  ;;  %v1947_v8 = vstv %s1690_s2  ;;  %s4564_s2 = smov 124  }
 0x6d6   : > { %v1411_v15 = vadd.f32 %v1407_v11, %v5340_v4  ;;  %v1386_v22 = vsub.f32 %v3718_v14, %v5319_v53  ;;  %v1321_v26 = vpop.f32.mrb[13].mxu1  ;;  %v1391_v1 = vadd.f32 %v5340_v4, %v1387_v56 }
 0x6d7   : > { %v4116_v29 = vpop.eup %4115  ;;  %v1418_v37 = vrot.slane %v1410_v12, 4  ;;  %v1401_v38 = vsel %vm1145_vm3, %v1398_v30, %v1400_v13  ;;  %v1409_v39 = vadd.f32 %v1400_v13, %v1368_v62  ;;  %v1385_v40 = vsub.f32 %v1321_v26, %v5331_v57 }
 0x6d8   : > { %v4118_v41 = vpop.eup %4117  ;;  %v1419_v42 = vrot.slane %v1411_v15, 4  ;;  %v1408_v43 = vadd.f32 %v1401_v38, %v1367_v51  ;;  %v5360_v44 = vmul.f32 %v4116_v29, %v1439_v28  ;;  %v1389_v19 = vmul.f32 2.0, %v1386_v22 }
 0x6d9   : > { %v1413_v45 = vadd.f32 %v1409_v39, %v5340_v4  ;;  %v3757_v32 = vpop.f32.mrb[14].mxu1  ;;  %v5363_v27 = vmul.f32 %v4118_v41, %v1440_v25  ;;  %v1388_v2 = vmul.f32 2.0, %v1385_v40 }
 0x6da   : > { %v1420_v46 = vsel %vm1129_vm4, %v1418_v37, %v1419_v42  ;;  %v1412_v47 = vadd.f32 %v1408_v43, %v5340_v4  ;;  %v1927_v48 = vmul.f32 %v3757_v32, %v3757_v32  ;;  %v1907_v49 = vpop.f32.mrb[15].mxu1  ;;  %v1931_v50 = vrot.slane %v3757_v32, 6 }
 0x6db   : > { %4119 = vrcp.f32 %v1420_v46  ;;  %v1423_v35 = vrot.slane %v1413_v45, 4  ;;  %v1926_v52 = vmul.f32 %v1907_v49, %v1907_v49  ;;  %v1930_v34 = vrot.slane %v1907_v49, 6 }
 0x6dc   : > { %v1421_v33 = vrot.slane %v1412_v47, 4  ;;  %v1968_v51 = vrot.slane %v1927_v48, 6  ;;  %v1941_v53 = vrot.slane %v1927_v48, 4  ;;  %v1392_v9 = vadd.f32 %v5340_v4, %v1388_v2 }
 0x6dd   : > { %v5369_v20 = vpop.f32.mrb[16].mxu1  ;;  %v1967_v18 = vrot.slane %v1926_v52, 6  ;;  %v1936_v55 = vrot.slane %v1926_v52, 4  ;;  %v1932_v57 = vsel %vm1145_vm3, %v1930_v34, %v1931_v50  ;;  %v1393_v15 = vadd.f32 %v5340_v4, %v1389_v19 }
 0x6de   : > { %v1422_v54 = vsel %vm1129_vm4, %v1419_v42, %v1421_v33  ;;  %v1424_v16 = vsel %vm1129_vm4, %v1421_v33, %v1423_v35  ;;  %v1917_v21 = vpop.f32.mrb[17].mxu1  ;;  %v1934_v36 = vmul.f32 %v1932_v57, %v1907_v49  ;;  %v2156_v57 = vld [vmem:[%s5660_s10] sm:$0xff] }
 0x6df   : > { %4121 = vrcp.f32 %v1422_v54  ;;  %v1969_v59 = vsel %vm1145_vm3, %v1967_v18, %v1968_v51  ;;  %v1938_v31 = vsub.f32 %v3757_v32, %v1936_v55  ;;  %v1939_v61 = vsub.f32 %v1917_v21, %v1936_v55  ;;  %3781 = vmatpush3.msra.mxu0 %v2156_v57 }
 0x6e0   : > { %4123 = vrcp.f32 %v1424_v16  ;;  %v1971_v60 = vadd.f32 %v1969_v59, %v1926_v52  ;;  %v1942_v62 = vsel %vm1129_vm4, %v1936_v55, %v1941_v53  ;;  %v1945_v63 = vsub.f32 %v5369_v20, %v1934_v36  ;;  %v2155_v55 = vld [vmem:[#allocation10] sm:$0x1]  ;;  %3790 = vmatprep.subr.mxu0 %v4549_v23 }
 0x6e1   : > { %v1944_v30 = vsub.f32 %v1917_v21, %v1942_v62  ;;  %v1964_v28 = vmul.f32 2.0, %v1934_v36 }
 0x6e2   : > { %v1972_v0 = vadd.f32 %v1971_v60, %v1965_v58  ;;  %v1946_v33 = vmul.f32 2.0, %v1945_v63 }
 0x6e3   : > { %v1950_v3 = vrot.slane %v1944_v30, 6  ;;  %v1966_v32 = vadd.f32 %v1965_v58, %v1964_v28 }
 0x6e4   : > { %4125 = vrcp.f32 %v1972_v0 }
 0x6e5   : > { %v4120_v17 = vpop.eup %4119  ;;  %v1952_v6 = vadd.f32 %v1950_v3, %v1938_v31  ;;  %v1953_v7 = vadd.f32 %v1950_v3, %v1939_v61 }
 0x6e6   : > { %v1429_v24 = vmul.f32 %v4120_v17, %v1391_v1 }
 0x6e7   : > { %v1954_v11 = vadd.f32 %v1952_v6, %v1947_v8  ;;  %v1955_v12 = vadd.f32 %v1953_v7, %v1947_v8 }
 0x6e8   : > { %v1463_v13 = vmul.f32 %v5347_v10, %v1429_v24  ;;  %v1482_v39 = vsel %vm1466_vm9, %v1429_v24, 0.0 }
 0x6e9   : > { %v4122_v14 = vpop.eup %4121  ;;  %v1958_v29 = vrot.slane %v1954_v11, 4  ;;  %v1959_v22 = vrot.slane %v1955_v12, 4 }
 0x6ea   : > { %v4124_v25 = vpop.eup %4123  ;;  %v1431_v26 = vmul.f32 %v4122_v14, %v1392_v9  ;;  %v1467_v43 = vsel %vm1466_vm9, %v1463_v13, 0.0 }
 0x6eb   : > { %v1433_v37 = vmul.f32 %v4124_v25, %v1393_v15  ;;  %v1960_v38 = vsel %vm1129_vm4, %v1958_v29, %v1959_v22 }
 0x6ec   : > { %v1483_v40 = vsel %vm1466_vm9, %v1431_v26, 0.0  ;;  %v1464_v41 = vmul.f32 %v5360_v44, %v1431_v26  ;;  %4127 = vrcp.f32 %v1960_v38  ;;  %v1948_v44 = vadd.f32 %v1947_v8, %v1946_v33 }
 0x6ed   : > { %v1484_v10 = vadd.f32 %v1483_v40, %v1482_v39  ;;  %v1465_v4 = vmul.f32 %v5363_v27, %v1433_v37  ;;  %v1485_v42 = vsel %vm1470_vm10, %v1433_v37, 0.0 }
 0x6ee   : > { %v1468_v45 = vsel %vm1466_vm9, %v1464_v41, 0.0  ;;  %v4126_v46 = vpop.eup %4125 }
 0x6ef   : > { %v5390_v47 = vadd.f32 %v1485_v42, %v1484_v10  ;;  %v1469_v48 = vadd.f32 %v1468_v45, %v1467_v43  ;;  %v1471_v49 = vsel %vm1470_vm10, %v1465_v4, 0.0  ;;  %v1974_v35 = vmul.f32 %v4126_v46, %v1966_v32  ;;  %v2560_v10 = vld [vmem:[#allocation12] sm:$0x1] }
 0x6f0   : > { %v2816_v42 = vld [vmem:[#allocation19] sm:$0x3] }
 0x6f1   : > { %v5392_v50 = vadd.f32 %v1471_v49, %v1469_v48  ;;  %v2561_v43 = vld [vmem:[%s5753_s21] sm:$0xf]  ;;  %s4567_s21 = smov 6  }
 0x6f6   : > { %v4128_v51 = vpop.eup %4127 }
 0x6f7   : > { %v5394_v52 = vmul.f32 %v4128_v51, %v1948_v44 }
 0x6f9   : > { %v5397_v27 = vmul.f32 %v1974_v35, %v5394_v52 }
 0x72c   : > { %v2168_v53 = vpop.permute.xlu1 %2167 }
 0x72d   : > { %v2183_v34 = vsel %vm2182_vm11, %v5287_v5, %v2168_v53  ;;  %v2406_v5 = vld [vmem:[#allocation18] sm:$0xf] }
 0x72e   : > { %v2176_v16 = vpop.permute.xlu0 %2175 }
 0x730   : > { %v2172_v20 = vpop.permute.xlu1 %2171 }
 0x731   : > { %v2184_v54 = vsel %vm1729_vm7, %v2183_v34, %v2172_v20 }
 0x732   : > { %v2186_v18 = vsel %vm2185_vm12, %v2184_v54, %v2176_v16 }
 0x734   : > { %v2180_v21 = vpop.permute.xlu1 %2179 }
 0x735   : > { %v2187_v56 = vsel %vm914_vm0, %v2186_v18, %v2180_v21 }
 0x736   : > { %3776 = vmatpush3.msra.mxu1 %v2187_v56 }
 0x737   : > { %3778 = vmatmul.mubr.msk.f32.vlgmr.msra.gmra.mrb[18].mxu1 %vm2182_vm11, %v2155_v55  ;;  %3785 = vmatprep.subr.mxu1 %v4549_v23 }
 0x738   : > { %3786 = vmatpush3.msra.mxu1 %v2183_v34  ;;  %3787 = vmatprep.mubr.msk.f32.mxu1 %vm4553_vm5, %v4549_v23 }
 0x739   : > { %3795 = vmatprep.subr.mxu1 %v4549_v23 }
 0x73b   : > { %3788 = vmatmul.mubr.msk.f32.vlgmr.msra.gmra.mrb[20].mxu1 %vm2182_vm11, %v2406_v5 }
 0x73c   : > { %3797 = vmatprep.mubr.msk.f32.mxu1 %vm4553_vm5, %v4549_v23 }
 0x80a   : > { %v2257_v58 = vpop.f32.mrb[18].mxu1 }
 0x80b   : > { %v2266_v59 = vrot.slane %v2257_v58, 6  ;;  %v2262_v36 = vrot.slane %v2257_v58, 7  ;;  %v3779_v31 = vpop.f32.mrb[19].mxu1  ;;  %v2274_v61 = vrot.slane %v2257_v58, 4  ;;  %v2270_v62 = vrot.slane %v2257_v58, 5 }
 0x80d   : > { %2267 = vrot.lane.b32.xlu1 %v2266_v59, %s4556_s25  ;;  %2263 = vrot.lane.b32.xlu0 %v2262_v36, %s4560_s14 }
 0x80e   : > { %v2477_v60 = vpop.f32.mrb[20].mxu1 }
 0x80f   : > { %v3789_v63 = vpop.f32.mrb[21].mxu1  ;;  %v2482_v30 = vrot.slane %v2477_v60, 4 }
 0x811   : > { %2275 = vrot.lane.b32.xlu1 %v2274_v61, %s4551_s26  ;;  %2271 = vrot.lane.b32.xlu0 %v2270_v62, %s4561_s23  ;;  %s5752_s26 = sld [smem:[#allocation45_spill]]  ;;  %s5754_s23 = sld [smem:[#allocation46_spill]] }
 0x815   : > { %2483 = vrot.lane.b32.xlu0 %v2482_v30, %s4560_s14 }
 0x817   : > { %v2407_v6 = vld [vmem:[%s5752_s26] sm:$0xff]  ;;  %s4565_s26 = smov 116  }
 0x818   : > { %v2817_v55 = vld [vmem:[%s5754_s23] sm:$0xf] }
 0x87f   : > { %v2268_v0 = vpop.permute.xlu1 %2267  ;;  %v2264_v1 = vpop.permute.xlu0 %2263 }
 0x880   : > { %v2279_v2 = vsel %vm2278_vm13, %v2257_v58, %v2264_v1 }
 0x881   : > { %v2280_v17 = vsel %vm1145_vm3, %v2279_v2, %v2268_v0 }
 0x883   : > { %v2276_v3 = vpop.permute.xlu1 %2275  ;;  %v2272_v19 = vpop.permute.xlu0 %2271 }
 0x884   : > { %v2282_v24 = vsel %vm2281_vm14, %v2280_v17, %v2272_v19  ;;  %v2976_v19 = vld [vmem:[#allocation13] sm:$0x1] }
 0x885   : > { %v2283_v7 = vsel %vm1129_vm4, %v2282_v24, %v2276_v3 }
 0x886   : > { %3783 = vmatmul.mubr.msk.f32.vlgmr.msra.gmra.mrb[18].mxu0 %vm2182_vm11, %v2283_v7 }
 0x887   : > { %v2484_v8 = vpop.permute.xlu0 %2483  ;;  %3791 = vmatpush3.msra.mxu0 %v2407_v6  ;;  %3792 = vmatprep.mubr.msk.f32.mxu0 %vm4553_vm5, %v4549_v23 }
 0x888   : > { %v2486_v9 = vsel %vm1129_vm4, %v2477_v60, %v2484_v8  ;;  %3800 = vmatprep.subr.mxu0 %v4549_v23 }
 0x88a   : > { %3793 = vmatmul.mubr.msk.f32.vlgmr.msra.gmra.mrb[20].mxu0 %vm2182_vm11, %v2486_v9 }
 0x88b   : > { %3802 = vmatprep.mubr.msk.f32.mxu0 %vm4553_vm5, %v4549_v23  ;;  %3801 = vmatpush3.msk.msra.mxu0 %vm1129_vm4, %v2561_v43 }
 0x88c   : > { %3810 = vmatprep.subr.mxu0 %v4549_v23 }
 0x959   : > { %v5434_v11 = vpop.f32.mrb[18].mxu0 }
 0x95a   : > { %v3784_v12 = vpop.f32.mrb[19].mxu0 }
 0x95d   : > { %v2556_v13 = vpop.f32.mrb[20].mxu0 }
 0x95e   : > { %v3794_v14 = vpop.f32.mrb[21].mxu0  ;;  %v2570_v15 = vrot.slane %v2556_v13, 4  ;;  %v2568_v25 = vmul.f32 %v2556_v13, %v2556_v13 }
 0x960   : > { %2573 = vrot.lane.b32.xlu1 %v2570_v15, %s4562_s13  ;;  %2577 = vrot.lane.b32.xlu0 %v2568_v25, %s4558_s8  ;;  %v2572_v26 = vmul.f32 %v2570_v15, %v2556_v13  ;;  %v2580_v28 = vrot.slane %v2568_v25, 4  ;;  %v4145_v15 = vld [vmem:[%s5061_s0] sm:$0xff] }
 0x961   : > { %v4146_v25 = vld [vmem:[%s5030_s20] sm:$0xff] }
 0x964   : > { %2585 = vrot.lane.b32.xlu0 %v2572_v26, %s4554_s5  ;;  %2581 = vrot.lane.b32.xlu1 %v2580_v28, %s4563_s6  ;;  %s4568_s6 = smov 126   ;;  %s4569_s5 = smov 122   ;;  %v906_v26 = vsub.f32 %v4146_v25, %v4145_v15  ;;  %v4147_v28 = vld [vmem:[%s5061_s0 + $0x8] sm:$0xff] }
 0x9d2   : > { %v2574_v29 = vpop.permute.xlu1 %2573  ;;  %v2578_v22 = vpop.permute.xlu0 %2577 }
 0x9d3   : > { %v2589_v37 = vsel %vm2588_vm15, %v2556_v13, %v2574_v29  ;;  %v4148_v29 = vld [vmem:[%s5030_s20 + $0x8] sm:$0xff] }
 0x9d4   : > { %v2590_v38 = vsel %vm2182_vm11, %v2589_v37, %v2578_v22  ;;  %v907_v22 = vsub.f32 %v4148_v29, %v4147_v28 }
 0x9d6   : > { %v2586_v39 = vpop.permute.xlu0 %2585  ;;  %v2582_v40 = vpop.permute.xlu1 %2581 }
 0x9d7   : > { %v2592_v41 = vsel %vm2591_vm1, %v2590_v38, %v2582_v40  ;;  %v4150_v38 = vld [vmem:[%s5030_s20 + $0x10] sm:$0xff]  ;;  %v910_v40 = vmul.f32 %v906_v26, %v906_v26 }
 0x9d8   : > { %v2593_v4 = vsel %vm1729_vm7, %v2592_v41, %v2586_v39  ;;  %v911_v41 = vmul.f32 %v907_v22, %v907_v22 }
 0x9d9   : > { %3796 = vmatpush3.msk.msra.mxu1 %vm1129_vm4, %v2593_v4  ;;  %v4152_v4 = vld [vmem:[%s5030_s20 + $0x18] sm:$0xff]  ;;  %s3597_s20 = sld [smem:[#allocation3 + $0x2]] }
 0x9da   : > { %3798 = vmatmul.mubr.msk.f32.vlgmr.msra.gmra.mrb[22].mxu1 %vm2588_vm15, %v2560_v10  ;;  %3805 = vmatprep.subr.mxu1 %v4549_v23  ;;  %v4151_v10 = vld [vmem:[%s5061_s0 + $0x18] sm:$0xff] }
 0x9db   : > { %3806 = vmatpush3.msk.msra.mxu1 %vm1129_vm4, %v2589_v37  ;;  %3807 = vmatprep.mubr.msk.f32.mxu1 %vm4553_vm5, %v4549_v23  ;;  %v4149_v37 = vld [vmem:[%s5061_s0 + $0x10] sm:$0xff]  ;;  %s3602_s0 = sld [smem:[#allocation3 + $0x3]] }
 0x9dc   : > { %3815 = vmatprep.subr.mxu1 %v4549_v23  ;;  %v908_v39 = vsub.f32 %v4150_v38, %v4149_v37 }
 0x9de   : > { %3808 = vmatmul.mubr.msk.f32.vlgmr.msra.gmra.mrb[24].mxu1 %vm2588_vm15, %v2816_v42  ;;  %v909_v42 = vsub.f32 %v4152_v4, %v4151_v10  ;;  %v912_v43 = vmul.f32 %v908_v39, %v908_v39 }
 0x9df   : > { %3817 = vmatprep.mubr.msk.f32.mxu1 %vm4553_vm5, %v4549_v23 }
 0x9e1   : > { %s2563_s23 = scvt.s32.f32 %s3602_s0 }
 0xaad   : > { %v2666_v45 = vpop.f32.mrb[22].mxu1 }
 0xaae   : > { %v2675_v32 = vrot.slane %v2666_v45, 6  ;;  %v2671_v46 = vrot.slane %v2666_v45, 7  ;;  %v3799_v48 = vpop.f32.mrb[23].mxu1  ;;  %v2683_v35 = vrot.slane %v2666_v45, 4  ;;  %v2679_v33 = vrot.slane %v2666_v45, 5 }
 0xaaf   : > { %v913_v48 = vmul.f32 %v909_v42, %v909_v42 }
 0xab0   : > { %2676 = vrot.lane.b32.xlu0 %v2675_v32, %s4560_s14  ;;  %2672 = vrot.lane.b32.xlu1 %v2671_v46, %s4564_s2  ;;  %v916_v32 = vsel %vm914_vm0, %v911_v41, 0.0 }
 0xab1   : > { %v2890_v49 = vpop.f32.mrb[24].mxu1 }
 0xab2   : > { %v3809_v44 = vpop.f32.mrb[25].mxu1  ;;  %v2895_v51 = vrot.slane %v2890_v49, 6 }
 0xab4   : > { %2684 = vrot.lane.b32.xlu0 %v2683_v35, %s4556_s25  ;;  %2680 = vrot.lane.b32.xlu1 %v2679_v33, %s4565_s26  ;;  %s4566_s25 = smov 2   ;;  %s5755_s26 = sld [smem:[#allocation41_spill]]  ;;  %v920_v33 = vsel %vm914_vm0, %v913_v48, 0.0 }
 0xab8   : > { %2896 = vrot.lane.b32.xlu1 %v2895_v51, %s4564_s2  ;;  %v1977_v51 = vsel %vm1976_vm6, %v5397_v27, 0.0 }
 0xaba   : > { %v2977_v6 = vld [vmem:[%s5755_s26] sm:$0x3] }
 0xb22   : > { %v2677_v53 = vpop.permute.xlu0 %2676  ;;  %v2673_v34 = vpop.permute.xlu1 %2672 }
 0xb23   : > { %v2687_v20 = vsel %vm2278_vm13, %v2666_v45, %v2673_v34  ;;  %v915_v45 = vsel %vm914_vm0, %v910_v40, 0.0 }
 0xb24   : > { %v2688_v16 = vsel %vm1145_vm3, %v2687_v20, %v2677_v53  ;;  %v917_v46 = vadd.f32 %v916_v32, %v915_v45  ;;  %v1987_v53 = vsel %vm1976_vm6, %v5394_v52, 0.0 }
 0xb26   : > { %v2685_v54 = vpop.permute.xlu0 %2684  ;;  %v2681_v18 = vpop.permute.xlu1 %2680 }
 0xb27   : > { %v2689_v21 = vsel %vm2281_vm14, %v2688_v16, %v2681_v18 }
 0xb28   : > { %v2690_v56 = vsel %vm1129_vm4, %v2689_v21, %v2685_v54 }
 0xb29   : > { %3803 = vmatmul.mubr.msk.f32.vlgmr.msra.gmra.mrb[22].mxu0 %vm2588_vm15, %v2690_v56 }
 0xb2a   : > { %v2897_v5 = vpop.permute.xlu1 %2896  ;;  %3811 = vmatpush3.msk.msra.mxu0 %vm1129_vm4, %v2817_v55  ;;  %3812 = vmatprep.mubr.msk.f32.mxu0 %vm4553_vm5, %v4549_v23 }
 0xb2b   : > { %v2899_v57 = vsel %vm1145_vm3, %v2890_v49, %v2897_v5  ;;  %3820 = vmatprep.subr.mxu0 %v4549_v23  ;;  %v918_v49 = vsel %vm914_vm0, %v912_v43, 0.0 }
 0xb2c   : > { %v919_v35 = vadd.f32 %v918_v49, %v917_v46 }
 0xb2d   : > { %3813 = vmatmul.mubr.msk.f32.vlgmr.msra.gmra.mrb[24].mxu0 %vm2588_vm15, %v2899_v57 }
 0xb2e   : > { %3822 = vmatprep.mubr.msk.f32.mxu0 %vm4553_vm5, %v4549_v23  ;;  %vm3007_vm5 = vcmask 48128   ;;  %3821 = vmatpush3.msk.msra.mxu0 %vm1145_vm3, %v2977_v6  ;;  %v921_v44 = vadd.f32 %v920_v33, %v919_v35 }
 0xbfc   : > { %v5477_v58 = vpop.f32.mrb[22].mxu0 }
 0xbfd   : > { %v3804_v59 = vpop.f32.mrb[23].mxu0  ;;  %v2769_v29 = vrot.slane %v5477_v58, 1 }
 0xbff   : > { %v2771_v10 = vmul.f32 %v2769_v29, %v5477_v58 }
 0xc00   : > { %v2972_v36 = vpop.f32.mrb[24].mxu0 }
 0xc01   : > { %v3814_v31 = vpop.f32.mrb[25].mxu0  ;;  %v2986_v60 = vrot.slane %v2972_v36, 2  ;;  %v2984_v61 = vmul.f32 %v2972_v36, %v2972_v36  ;;  %v2777_v32 = vrot.slane %v2771_v10, 4 }
 0xc03   : > { %2989 = vrot.lane.b32.xlu0 %v2986_v60, %s4566_s25  ;;  %2993 = vrot.lane.b32.xlu1 %v2984_v61, %s4562_s13  ;;  %v2988_v62 = vmul.f32 %v2986_v60, %v2972_v36  ;;  %v2996_v63 = vrot.slane %v2984_v61, 2  ;;  %s5757_s25 = sld [smem:[#allocation48_spill]]  ;;  %s5758_s13 = sld [smem:[#allocation49_spill]] }
 0xc07   : > { %3001 = vrot.lane.b32.xlu1 %v2988_v62, %s4558_s8  ;;  %2997 = vrot.lane.b32.xlu0 %v2996_v63, %s4567_s21  ;;  %s2565_s21 = smul.f32 0.03, %s2563_s23 }
 0xc09   : > { %v3235_v54 = vld [vmem:[%s5757_s25] sm:$0xff] }
 0xc0a   : > { %v3252_v16 = vadd.f32 1e-12, %v3235_v54  ;;  %v3236_v52 = vld [vmem:[%s5758_s13] sm:$0xff]  ;;  %s2564_s13 = smul.f32 0.01, %s2563_s23 }
 0xc0b   : > { %v3266_v5 = vmul.f32 %v3236_v52, %v3236_v52 }
 0xc75   : > { %v2990_v30 = vpop.permute.xlu0 %2989  ;;  %v2994_v23 = vpop.permute.xlu1 %2993 }
 0xc76   : > { %v3005_v0 = vsel %vm3004_vm2, %v2972_v36, %v2990_v30 }
 0xc77   : > { %v3006_v1 = vsel %vm2588_vm15, %v3005_v0, %v2994_v23  ;;  %v2357_v23 = vmul.f32 %v5434_v11, %v5434_v11  ;;  %v2767_v0 = vmul.f32 %v5477_v58, %v5477_v58 }
 0xc79   : > { %v3002_v2 = vpop.permute.xlu1 %3001  ;;  %v2998_v3 = vpop.permute.xlu0 %2997 }
 0xc7a   : > { %v3008_v17 = vsel %vm3007_vm5, %v3006_v1, %v2998_v3  ;;  %v2363_v1 = vrot.slane %v2357_v23, 6 }
 0xc7b   : > { %v3009_v24 = vsel %vm2182_vm11, %v3008_v17, %v3002_v2  ;;  %v2773_v2 = vrot.slane %v2767_v0, 6 }
 0xc7c   : > { %3816 = vmatpush3.msk.msra.mxu1 %vm1145_vm3, %v3009_v24  ;;  %v2365_v3 = vsub.f32 %v5434_v11, %v2363_v1  ;;  %v2386_v24 = vrot.slane %v2357_v23, 1 }
 0xc7d   : > { %3818 = vmatmul.mubr.msk.f32.vlgmr.msra.gmra.mrb[26].mxu1 %vm3004_vm2, %v2976_v19  ;;  %v2775_v17 = vsub.f32 %v5477_v58, %v2773_v2 }
 0xc7e   : > { %v2374_v19 = vrot.slane %v2365_v3, 1 }
 0xc7f   : > { %v2784_v6 = vrot.slane %v2775_v17, 1 }
 0xc81   : > { %v2786_v15 = vadd.f32 %v2784_v6, %v2775_v17 }
 0xd50   : > { %v5490_v7 = vpop.f32.mrb[26].mxu1 }
 0xd51   : > { %v3091_v8 = vrot.slane %v5490_v7, 6  ;;  %v3087_v9 = vrot.slane %v5490_v7, 7  ;;  %v3819_v12 = vpop.f32.mrb[27].mxu1  ;;  %v3099_v13 = vrot.slane %v5490_v7, 4  ;;  %v3095_v14 = vrot.slane %v5490_v7, 5 }
 0xd52   : > { %v2388_v12 = vadd.f32 %v2386_v24, %v2357_v23 }
 0xd53   : > { %3092 = vrot.lane.b32.xlu1 %v3091_v8, %s4564_s2  ;;  %3088 = vrot.lane.b32.xlu0 %v3087_v9, %s4568_s6  ;;  %s2567_s6 = smul.f32 %s2565_s21, %s2565_s21  ;;  %v2796_v9 = vrot.slane %v2767_v0, 1 }
 0xd55   : > { %v2781_v26 = vstv %s2567_s6  ;;  %v2798_v28 = vadd.f32 %v2796_v9, %v2767_v0 }
 0xd56   : > { %v2787_v39 = vadd.f32 %v2786_v15, %v2781_v26 }
 0xd57   : > { %3100 = vrot.lane.b32.xlu1 %v3099_v13, %s4560_s14  ;;  %3096 = vrot.lane.b32.xlu0 %v3095_v14, %s4569_s5  ;;  %s5756_s14 = sld [smem:[#allocation47_spill]]  ;;  %s5759_s5 = sld [smem:[#allocation50_spill]]  ;;  %v2359_v13 = vrot.slane %v5434_v11, 1 }
 0xd58   : > { %v2789_v42 = vrot.slane %v2787_v39, 6 }
 0xd59   : > { %v2361_v38 = vmul.f32 %v2359_v13, %v5434_v11 }
 0xd5b   : > { %v2367_v4 = vrot.slane %v2361_v38, 4  ;;  %v2383_v35 = vmul.f32 2.0, %v2361_v38 }
 0xd5d   : > { %v3234_v34 = vld [vmem:[%s5756_s14] sm:$0xff]  ;;  %s2158_s14 = scvt.s32.f32 %s3597_s20  ;;  %v2369_v46 = vsub.f32 %v5434_v11, %v2367_v4  ;;  %s3611_s20 = sld [smem:[#allocation3 + $0x4]] }
 0xd5e   : > { %v3238_v20 = vadd.f32 1e-12, %v3234_v34  ;;  %v3237_v55 = vld [vmem:[%s5759_s5] sm:$0xff]  ;;  %s2566_s5 = smul.f32 %s2564_s13, %s2564_s13 }
 0xd5f   : > { %v3277_v57 = vmul.f32 %v3237_v55, %v3237_v55  ;;  %s2160_s2 = smul.f32 0.03, %s2158_s14 }
 0xd60   : > { %4129 = vlog2.f32 %v3238_v20  ;;  %s2159_s25 = smul.f32 0.01, %s2158_s14  ;;  %v2794_v37 = vstv %s2566_s5  ;;  %v2370_v20 = vmul.f32 2.0, %v2369_v46 }
 0xd61   : > { %4131 = vlog2.f32 %v3252_v16  ;;  %s2162_s8 = smul.f32 %s2160_s2, %s2160_s2  ;;  %v2799_v41 = vadd.f32 %v2798_v28, %v2794_v37 }
 0xd62   : > { %s2161_s26 = smul.f32 %s2159_s25, %s2159_s25 }
 0xd63   : > { %v2371_v8 = vstv %s2162_s8  ;;  %s2979_s0 = scvt.s32.f32 %s3611_s20 }
 0xd64   : > { %v2384_v14 = vstv %s2161_s26 }
 0xd65   : > { %v2389_v22 = vadd.f32 %v2388_v12, %v2384_v14  ;;  %v2385_v52 = vadd.f32 %v2384_v14, %v2383_v35  ;;  %s2980_s14 = smul.f32 0.01, %s2979_s0 }
 0xd66   : > { %s2981_s2 = smul.f32 0.03, %s2979_s0 }
 0xd67   : > { %4133 = vrcp.f32 %v2389_v22  ;;  %s2982_s23 = smul.f32 %s2980_s14, %s2980_s14  ;;  %s3562_s14 = sshll.u32 %s5026_s15, 3 }
 0xd68   : > { %s2983_s25 = smul.f32 %s2981_s2, %s2981_s2 }
 0xd76   : > { %922 = vadd.xlane.f32.xlu0 %v921_v44 }
 0xd7a   : > { %1487 = vadd.xlane.f32.xlu0 %v5390_v47  ;;  %v4130_v47 = vpop.eup %4129 }
 0xd7b   : > { %1473 = vadd.xlane.f32.xlu1 %v5392_v50  ;;  %v4132_v50 = vpop.eup %4131  ;;  %v3240_v18 = vmul.f32 0.6931472, %v4130_v47 }
 0xd7c   : > { %v3254_v27 = vmul.f32 0.6931472, %v4132_v50  ;;  %v2793_v50 = vmul.f32 2.0, %v2771_v10 }
 0xd7d   : > { %v3241_v21 = vmul.f32 %v3240_v18, %v3234_v34 }
 0xd7e   : > { %1978 = vadd.xlane.f32.xlu0 %v1977_v51  ;;  %v3255_v56 = vmul.f32 %v3254_v27, %v3235_v54  ;;  %v4134_v54 = vpop.eup %4133 }
 0xd7f   : > { %1988 = vadd.xlane.f32.xlu1 %v1987_v53  ;;  %v2779_v53 = vsub.f32 %v5477_v58, %v2777_v32  ;;  %v2391_v58 = vmul.f32 %v4134_v54, %v2385_v52 }
 0xd81   : > { %v2393_v13 = vrot.slane %v2391_v58, 4 }
 0xd82   : > { %3242 = vadd.xlane.f32.xlu0 %v3241_v21 }
 0xd83   : > { %3256 = vadd.xlane.f32.xlu1 %v3255_v56 }
 0xd86   : > { %3267 = vadd.xlane.f32.xlu0 %v3266_v5 }
 0xd87   : > { %3278 = vadd.xlane.f32.xlu1 %v3277_v57  ;;  %v2780_v57 = vmul.f32 2.0, %v2779_v53 }
 0xdc5   : > { %v3089_v59 = vpop.permute.xlu0 %3088  ;;  %v3093_v36 = vpop.permute.xlu1 %3092 }
 0xdc6   : > { %v3103_v31 = vsel %vm2278_vm13, %v5490_v7, %v3089_v59  ;;  %v2376_v7 = vadd.f32 %v2374_v19, %v2365_v3  ;;  %v2782_v19 = vadd.f32 %v2781_v26, %v2780_v57 }
 0xdc7   : > { %v3104_v60 = vsel %vm1145_vm3, %v3103_v31, %v3093_v36 }
 0xdc8   : > { %v2377_v25 = vadd.f32 %v2376_v7, %v2371_v8 }
 0xdc9   : > { %v3097_v61 = vpop.permute.xlu0 %3096  ;;  %v3101_v62 = vpop.permute.xlu1 %3100 }
 0xdca   : > { %v3105_v63 = vsel %vm2281_vm14, %v3104_v60, %v3097_v61  ;;  %v2379_v40 = vrot.slane %v2377_v25, 6  ;;  %v2372_v60 = vadd.f32 %v2371_v8, %v2370_v20  ;;  %v3197_v20 = vstv %s2983_s25 }
 0xdcb   : > { %v3106_v30 = vsel %vm1129_vm4, %v3105_v63, %v3101_v62 }
 0xdcc   : > { %3823 = vmatmul.mubr.msk.f32.vlgmr.msra.gmra.mrb[26].mxu0 %vm3004_vm2, %v3106_v30  ;;  %4135 = vrcp.f32 %v2379_v40  ;;  %v2795_v30 = vadd.f32 %v2794_v37, %v2793_v50 }
 0xdcd   : > { %4137 = vrcp.f32 %v2799_v41 }
 0xdce   : > { %4139 = vrcp.f32 %v2789_v42 }
 0xdd6   : > { %v4136_v21 = vpop.eup %4135 }
 0xdd7   : > { %v4138_v59 = vpop.eup %4137  ;;  %v2382_v2 = vmul.f32 %v4136_v21, %v2372_v60 }
 0xdd8   : > { %v4140_v23 = vpop.eup %4139  ;;  %v2801_v24 = vmul.f32 %v4138_v59, %v2795_v30 }
 0xdd9   : > { %v2792_v8 = vmul.f32 %v4140_v23, %v2782_v19  ;;  %v2395_v28 = vmul.f32 %v2393_v13, %v2382_v2  ;;  %v2403_v40 = vrot.slane %v2382_v2, 4 }
 0xdda   : > { %v2803_v29 = vrot.slane %v2801_v24, 4 }
 0xddb   : > { %v2398_v26 = vrot.slane %v2395_v28, 4  ;;  %v2813_v10 = vrot.slane %v2792_v8, 4 }
 0xddc   : > { %v2805_v38 = vmul.f32 %v2803_v29, %v2792_v8 }
 0xdde   : > { %v2808_v41 = vrot.slane %v2805_v38, 4  ;;  %v3288_v38 = vlaneseq }
 0xe03   : > { %v923_v43 = vpop.xlane.xlu0 %922 }
 0xe04   : > { %v924_v45 = vrot.slane %v923_v43, 4 }
 0xe06   : > { %v925_v48 = vadd.f32 %v924_v45, %v923_v43 }
 0xe07   : > { %v1488_v49 = vpop.xlane.xlu0 %1487 }
 0xe08   : > { %v926_v33 = vrot.slane %v925_v48, 2  ;;  %v1489_v44 = vrot.slane %v1488_v49, 4  ;;  %v1474_v51 = vpop.xlane.xlu1 %1473 }
 0xe09   : > { %v1475_v34 = vrot.slane %v1474_v51, 4 }
 0xe0a   : > { %v1490_v16 = vadd.f32 %v1489_v44, %v1488_v49  ;;  %v927_v47 = vadd.f32 %v926_v33, %v925_v48  ;;  %v3210_v48 = vstv %s2982_s23  ;;  %s5581_s23 = scalar_select %p5760_p6, 1.0, 0.0 }
 0xe0b   : > { %v1476_v18 = vadd.f32 %v1475_v34, %v1474_v51  ;;  %v1979_v27 = vpop.xlane.xlu0 %1978 }
 0xe0c   : > { %v1491_v11 = vrot.slane %v1490_v16, 2  ;;  %v1980_v55 = vrot.slane %v1979_v27, 4  ;;  %v1989_v56 = vpop.xlane.xlu1 %1988  ;;  %v928_v5 = vrot.slane %v927_v47, 1 }
 0xe0d   : > { %v1477_v36 = vrot.slane %v1476_v18, 2  ;;  %v1990_v31 = vrot.slane %v1989_v56, 4 }
 0xe0e   : > { %v1981_v61 = vadd.f32 %v1980_v55, %v1979_v27  ;;  %v929_v62 = vadd.f32 %v928_v5, %v927_v47  ;;  %v1492_v63 = vadd.f32 %v1491_v11, %v1490_v16 }
 0xe0f   : > { %v1991_v0 = vadd.f32 %v1990_v31, %v1989_v56  ;;  %v1478_v1 = vadd.f32 %v1477_v36, %v1476_v18  ;;  %v3243_v35 = vpop.xlane.xlu0 %3242 }
 0xe10   : > { %v1982_v3 = vrot.slane %v1981_v61, 2  ;;  %3871 = vpush %v929_v62  ;;  %v1493_v17 = vrot.slane %v1492_v63, 1  ;;  %v3257_v44 = vpop.xlane.xlu1 %3256  ;;  %v3244_v50 = vrot.slane %v3243_v35, 4 }
 0xe11   : > { %v1992_v6 = vrot.slane %v1991_v0, 2  ;;  %v1479_v7 = vrot.slane %v1478_v1, 1  ;;  %v3258_v52 = vrot.slane %v3257_v44, 4 }
 0xe12   : > { %v1494_v9 = vadd.f32 %v1493_v17, %v1492_v63  ;;  %v1983_v12 = vadd.f32 %v1982_v3, %v1981_v61  ;;  %v3245_v56 = vadd.f32 %v3244_v50, %v3243_v35 }
 0xe13   : > { %v1480_v14 = vadd.f32 %v1479_v7, %v1478_v1  ;;  %v1993_v15 = vadd.f32 %v1992_v6, %v1991_v0  ;;  %v3268_v16 = vpop.xlane.xlu0 %3267  ;;  %v3259_v59 = vadd.f32 %v3258_v52, %v3257_v44 }
 0xe14   : > { %v1984_v25 = vrot.slane %v1983_v12, 1  ;;  %v3279_v18 = vpop.xlane.xlu1 %3278  ;;  %v3269_v11 = vrot.slane %v3268_v16, 4  ;;  %v3246_v58 = vrot.slane %v3245_v56, 2 }
 0xe15   : > { %3873 = vpush %v1480_v14  ;;  %v1994_v22 = vrot.slane %v1993_v15, 1  ;;  %v3280_v55 = vrot.slane %v3279_v18, 4  ;;  %v3260_v63 = vrot.slane %v3259_v59, 2 }
 0xe16   : > { %3875 = vpush %v1494_v9  ;;  %v1985_v37 = vadd.f32 %v1984_v25, %v1983_v12  ;;  %v3270_v36 = vadd.f32 %v3269_v11, %v3268_v16  ;;  %v3247_v2 = vadd.f32 %v3246_v58, %v3245_v56 }
 0xe17   : > { %v1995_v39 = vadd.f32 %v1994_v22, %v1993_v15  ;;  %v3281_v60 = vadd.f32 %v3280_v55, %v3279_v18  ;;  %v3261_v17 = vadd.f32 %v3260_v63, %v3259_v59 }
 0xe18   : > { %3877 = vpush %v1985_v37  ;;  %v3271_v30 = vrot.slane %v3270_v36, 2  ;;  %v3248_v12 = vrot.slane %v3247_v2, 1 }
 0xe19   : > { %3879 = vpush %v1995_v39  ;;  %v3282_v0 = vrot.slane %v3281_v60, 2  ;;  %v3262_v13 = vrot.slane %v3261_v17, 1  ;;  %v5544_v39 = vshrl.u32 %v3288_v38, 7 }
 0xe1a   : > { %3881 = vpush %v2398_v26  ;;  %v3272_v19 = vadd.f32 %v3271_v30, %v3270_v36  ;;  %v3249_v28 = vadd.f32 %v3248_v12, %v3247_v2  ;;  %v5546_v26 = vand.u32 127, %v3288_v38 }
 0xe1b   : > { %3883 = vpush %v2403_v40  ;;  %v3283_v7 = vadd.f32 %v3282_v0, %v3281_v60  ;;  %v3263_v29 = vadd.f32 %v3262_v13, %v3261_v17  ;;  %vm3292_vm0 = vcmp.eq.s32.totalorder %v5544_v39, 0 }
 0xe1c   : > { %3885 = vpush %v2808_v41  ;;  %v3273_v14 = vrot.slane %v3272_v19, 1  ;;  %vm3293_vm3 = vcmp.eq.s32.totalorder %v5546_v26, 10  ;;  %vm3297_vm7 = vcmp.eq.s32.totalorder %v5546_v26, 0  ;;  %vm3301_vm9 = vcmp.eq.s32.totalorder %v5546_v26, 5 }
 0xe1d   : > { %3887 = vpush %v2813_v10  ;;  %v3284_v25 = vrot.slane %v3283_v7, 1  ;;  %vm3294_vm4 = vmand %vm3292_vm0, %vm3293_vm3  ;;  %vm3305_vm11 = vcmp.eq.s32.totalorder %v5546_v26, 1  ;;  %vm3309_vm13 = vcmp.eq.s32.totalorder %v5546_v26, 6  ;;  %vm3313_vm15 = vcmp.eq.s32.totalorder %v5546_v26, 2 }
 0xe1e   : > { %v3274_v22 = vadd.f32 %v3273_v14, %v3272_v19  ;;  %vm3298_vm8 = vmand %vm3292_vm0, %vm3297_vm7  ;;  %vm3317_vm2 = vcmp.eq.s32.totalorder %v5546_v26, 7  ;;  %vm3321_vm6 = vcmp.eq.s32.totalorder %v5546_v26, 3  ;;  %vm3329_vm7 = vcmp.eq.s32.totalorder %v5546_v26, 4 }
 0xe1f   : > { %v3285_v37 = vadd.f32 %v3284_v25, %v3283_v7  ;;  %vm3302_vm10 = vmand %vm3292_vm0, %vm3301_vm9 }
 0xe20   : > { %vm3306_vm12 = vmand %vm3292_vm0, %vm3305_vm11 }
 0xe21   : > { %vm3310_vm14 = vmand %vm3292_vm0, %vm3309_vm13  ;;  %vm3341_vm13 = vcmp.eq.s32.totalorder %v5546_v26, 12 }
 0xe22   : > { %vm3314_vm1 = vmand %vm3292_vm0, %vm3313_vm15 }
 0xe23   : > { %vm3318_vm5 = vmand %vm3292_vm0, %vm3317_vm2 }
 0xe24   : > { %vm3322_vm3 = vmand %vm3292_vm0, %vm3321_vm6 }
 0xe25   : > { %vm3342_vm2 = vmand %vm3292_vm0, %vm3341_vm13 }
 0xe41   : > { %s3872_s21 = spop %3871 }
 0xe42   : > { %v3295_v40 = vstv %s3872_s21 }
 0xe43   : > { %v3296_v41 = vsel %vm3294_vm4, %v3295_v40, 0.0  ;;  %vm3325_vm4 = vcmp.eq.s32.totalorder %v5546_v26, 8 }
 0xe44   : > { %vm3326_vm9 = vmand %vm3292_vm0, %vm3325_vm4 }
 0xe46   : > { %s3874_s8 = spop %3873 }
 0xe47   : > { %v3299_v10 = vstv %s3874_s8  ;;  %s3876_s13 = spop %3875  ;;  %s3617_s8 = sshll.u32 %s4734_s29, 7 }
 0xe49   : > { %s3878_s26 = spop %3877 }
 0xe4a   : > { %s3880_s6 = spop %3879 }
 0xe4b   : > { %s3882_s5 = spop %3881 }
 0xe4c   : > { %s3884_s20 = spop %3883 }
 0xe4d   : > { %s3886_s0 = spop %3885 }
 0xe4e   : > { %s3888_s2 = spop %3887 }
 0xe9f   : > { %v3179_v4 = vpop.f32.mrb[26].mxu0 }
 0xea0   : > { %v3183_v42 = vmul.f32 %v3179_v4, %v3179_v4  ;;  %v3824_v43 = vpop.f32.mrb[27].mxu0  ;;  %v3185_v46 = vrot.slane %v3179_v4, 1 }
 0xea2   : > { %v3189_v45 = vrot.slane %v3183_v42, 6  ;;  %v3212_v32 = vrot.slane %v3183_v42, 1  ;;  %v3187_v34 = vmul.f32 %v3185_v46, %v3179_v4  ;;  %v3311_v46 = vstv %s3880_s6 }
 0xea4   : > { %v3191_v49 = vsub.f32 %v3179_v4, %v3189_v45  ;;  %v3214_v33 = vadd.f32 %v3212_v32, %v3183_v42  ;;  %v3193_v27 = vrot.slane %v3187_v34, 4  ;;  %v3209_v57 = vmul.f32 2.0, %v3187_v34 }
 0xea5   : > { %v3303_v42 = vstv %s3876_s13  ;;  %v3307_v45 = vstv %s3878_s26  ;;  %v3327_v34 = vstv %s3888_s2  ;;  %s892_s26 = scalar_lea.vmem [#allocation21], %s3562_s14 }
 0xea6   : > { %v3200_v51 = vrot.slane %v3191_v49, 1  ;;  %v3215_v53 = vadd.f32 %v3214_v33, %v3210_v48  ;;  %v3195_v5 = vsub.f32 %v3179_v4, %v3193_v27  ;;  %v3211_v62 = vadd.f32 %v3210_v48, %v3209_v57  ;;  %s3368_s6 = sshll.u32 %s892_s26, 4  ;;  %s5609_s6 = int_to_ptr.vmem [resolvable:$true] %s3368_s6 }
 0xea7   : > { %v3300_v4 = vsel %vm3298_vm8, %v3299_v10, %v3296_v41  ;;  %v3319_v33 = vstv %s3884_s20  ;;  %vm3333_vm8 = vcmp.eq.s32.totalorder %v5546_v26, 9 }
 0xea8   : > { %v3202_v54 = vadd.f32 %v3200_v51, %v3191_v49  ;;  %4141 = vrcp.f32 %v3215_v53  ;;  %v3196_v61 = vmul.f32 2.0, %v3195_v5  ;;  %v3304_v43 = vsel %vm3302_vm10, %v3303_v42, %v3300_v4  ;;  %vm3330_vm10 = vmand %vm3292_vm0, %vm3329_vm7 }
 0xea9   : > { %v3308_v32 = vsel %vm3306_vm12, %v3307_v45, %v3304_v43  ;;  %v3315_v49 = vstv %s3882_s5  ;;  %v3323_v51 = vstv %s3886_s0  ;;  %vm3334_vm11 = vmand %vm3292_vm0, %vm3333_vm8  ;;  %vm3337_vm12 = vcmp.eq.s32.totalorder %v5546_v26, 11 }
 0xeaa   : > { %v3203_v47 = vadd.f32 %v3202_v54, %v3197_v20  ;;  %v3198_v1 = vadd.f32 %v3197_v20, %v3196_v61  ;;  %v3312_v48 = vsel %vm3310_vm14, %v3311_v46, %v3308_v32  ;;  %vm3345_vm14 = vcmp.eq.s32.totalorder %v5546_v26, 13  ;;  %vm3338_vm15 = vmand %vm3292_vm0, %vm3337_vm12 }
 0xeab   : > { %v3316_v35 = vsel %vm3314_vm1, %v3315_v49, %v3312_v48  ;;  %vm3349_vm1 = vcmp.eq.s32.totalorder %v5546_v26, 14 }
 0xeac   : > { %v3205_v21 = vrot.slane %v3203_v47, 6  ;;  %v3320_v44 = vsel %vm3318_vm5, %v3319_v33, %v3316_v35  ;;  %vm3346_vm5 = vmand %vm3292_vm0, %vm3345_vm14 }
 0xead   : > { %v3324_v53 = vsel %vm3322_vm3, %v3323_v51, %v3320_v44  ;;  %vm3350_vm6 = vmand %vm3292_vm0, %vm3349_vm1 }
 0xeae   : > { %4143 = vrcp.f32 %v3205_v21  ;;  %v3328_v20 = vsel %vm3326_vm9, %v3327_v34, %v3324_v53 }
 0xeb2   : > { %v4142_v31 = vpop.eup %4141 }
 0xeb3   : > { %v3217_v23 = vmul.f32 %v4142_v31, %v3211_v62 }
 0xeb5   : > { %v3219_v6 = vrot.slane %v3217_v23, 4 }
 0xeb8   : > { %v4144_v3 = vpop.eup %4143 }
 0xeb9   : > { %v3208_v24 = vmul.f32 %v4144_v3, %v3198_v1 }
 0xebb   : > { %v3221_v9 = vmul.f32 %v3219_v6, %v3208_v24  ;;  %v3229_v15 = vrot.slane %v3208_v24, 4 }
 0xebd   : > { %v3224_v8 = vrot.slane %v3221_v9, 4 }
 0xebf   : > { %3889 = vpush %v3224_v8 }
 0xec0   : > { %3891 = vpush %v3229_v15 }
 0xec1   : > { %3893 = vpush %v3249_v28 }
 0xec2   : > { %3895 = vpush %v3263_v29 }
 0xec3   : > { %3897 = vpush %v3274_v22 }
 0xec4   : > { %3899 = vpush %v3285_v37 }
 0xef0   : > { %s3890_s25 = spop %3889 }
 0xef1   : > { %v3331_v54 = vstv %s3890_s25  ;;  %s3892_s21 = spop %3891 }
 0xef2   : > { %v3332_v16 = vsel %vm3330_vm10, %v3331_v54, %v3328_v20  ;;  %v3335_v47 = vstv %s3892_s21  ;;  %s3894_s13 = spop %3893 }
 0xef3   : > { %v3336_v50 = vsel %vm3334_vm11, %v3335_v47, %v3332_v16  ;;  %s3251_s5 = smul.f32 %s3894_s13, %s5581_s23  ;;  %s3896_s20 = spop %3895 }
 0xef4   : > { %s3265_s0 = smul.f32 %s3896_s20, %s5581_s23  ;;  %s3898_s29 = spop %3897 }
 0xef5   : > { %v3339_v18 = vstv %s3251_s5  ;;  %s3276_s2 = smul.f32 %s3898_s29, %s5581_s23  ;;  %s3900_s14 = spop %3899 }
 0xef6   : > { %v3340_v27 = vsel %vm3338_vm15, %v3339_v18, %v3336_v50  ;;  %v3343_v52 = vstv %s3265_s0  ;;  %s3287_s25 = smul.f32 %s3900_s14, %s5581_s23  ;;  %s5761_s5 = sld [smem:[#allocation51_spill]] }
 0xef7   : > { %v3344_v21 = vsel %vm3342_vm2, %v3343_v52, %v3340_v27  ;;  %v3347_v11 = vstv %s3276_s2  ;;  %s3355_s23 = scalar_lea.sflag [#allocation6], %s5026_s15  ;;  %s4445_s0 = scalar_lea.vmem %s5609_s6, 128 }
 0xef8   : > { %v3348_v55 = vsel %vm3346_vm5, %v3347_v11, %v3344_v21  ;;  %v3351_v56 = vstv %s3287_s25  ;;  %p4446_p5 = scmp.ne.s32.totalorder %s5609_s6, %s4445_s0  ;;  %s4570_s29 = smov [#allocation21]  }
 0xef9   : > { %v3352_v5 = vsel %vm3350_vm6, %v3351_v56, %v3348_v55  ;;  %s4449_s2 = sshll.u32 %s4570_s29, 4  ;;  %s4450_s2 = int_to_ptr.vmem [resolvable:$false] %s4449_s2 }
 0xefa   : > { %3353 = vst [vmem:[%s892_s26] sm:$0xff] %v3352_v5  ;;  %p4447_p8 = pnand %p4446_p5, %p5762_p10  ;;  %s4451_s14 = scalar_lea.vmem %s4450_s2, 256 }
 0xefb   : > { %p4452_p0 = scmp.lt.s32.totalorder %s5609_s6, %s4450_s2  ;;  %p4453_p3 = scmp.lt.s32.totalorder %s4451_s14, %s4445_s0 }
 0xefc   : > { %s5607_s20 = scalar_lea.hbm %s5761_s5, %s3617_s8  ;;  %p4448_p13 = pneg %p4447_p8 }
 0xefd   : > { %p4454_p7 = por %p4453_p3, %p4452_p0 }
 0xeff   : > { %p4455_p11 = pnand %p4454_p7, %p4448_p13 }
 0xf01   : > { %4458 = shalt.err (!%p4455_p11)
}
 0xf02   : > { %s4459_s15 = scalar_lea.hbm %s5607_s20, 128  ;;  %s4463_s25 = scalar_lea.hbm %s5761_s5, 768 }
 0xf03   : > { %p4460_p9 = scmp.ne.s32.totalorder %s5607_s20, %s4459_s15  ;;  %p4464_p2 = scmp.lt.u32.totalorder %s5607_s20, %s5761_s5 }
 0xf04   : > { %p4465_p4 = scmp.lt.u32.totalorder %s4463_s25, %s4459_s15  ;;  %p4467_p5 = scmp.lt.u32.totalorder %s4459_s15, %s5607_s20 }
 0xf05   : > { %p4461_p12 = pnand %p4460_p9, %p5762_p10 }
 0xf06   : > { %p4466_p6 = por %p4465_p4, %p4464_p2 }
 0xf07   : > { %p4462_p1 = pneg %p4461_p12 }
 0xf08   : > { %p4468_p8 = por %p4467_p5, %p4466_p6 }
 0xf0a   : > { %p4469_p13 = pnand %p4468_p8, %p4462_p1 }
 0xf0c   : > { %4472 = shalt.err (!%p4469_p13)
}
 0xf0d   : > { %3939 = dma.vmem_to_hbm [thread:$0]  (%p5762_p10), %s5609_s6, 128, %s5607_s20, %s3355_s23  }
 0xf0e PF: > { %p3996_p0 = scmp.ge.s32.totalorder %s4533_s9, 2  ;;  %s3380_s0 = sand.u32 1, %s4521_s12  }
 0xf0f   : > { %p5763_p3 = scmp.ne.s32.totalorder %s5735_s19, 0  ;;  %s3381_s29 = scalar_lea.sflag [#allocation6], %s3380_s0 }
 0xf11   : > { %p3974_p7 = pnand %p3996_p0, %p5763_p3 }
 0xf13   : > { %4516 = dma.done.wait (!%p3974_p7), %s3381_s29, 128  }
 0xf14   : > { %4518 = vsyncadd (!%p3974_p7), %s3381_s29, 4294967168  ;;  %p47_p11 = scmp.ge.s32.totalorder %s4950_s7, 8   ;;  %s5764_s12 = smov %s4525_s4 }
 0xf15   : > { %s5765_s4 = smov %s4529_s28  ;;  %s5766_s28 = smov %s4962_s11 }
 0xf16   : > { %s5767_s9 = smov %s4950_s7  ;;  %49 = sbr.rel (!%p47_p11) target bundleno = 39 (0x27), region = 200 }
 0xf1d   :  { %3386 = vsyncpa [#allocation5], 1 }
 0xf1e   :  { %3388 = vsyncpa [#allocation5 + $0x1], 1 }
 0xf1f   :  { %3389 = vsyncpa [#allocation8], 1 }
 0xf20   :  { %3390 = vsyncpa [#allocation11], 1 }
 0xf21   :  { %3391 = vsyncpa [#allocation14], 1 }
 0xf22   :  { %3392 = vsyncpa [#allocation17], 1 }
 0xf23   :  { %3393 = vsyncpa [#allocation20], 1 }
 0xf24   :  { %3394 = vsyncpa [#allocation6], 1 }
 0xf25   :  { %3396 = vsyncpa [#allocation6 + $0x1], 1 }

</bundles_post_ra>
